<compile_context>
chip_gen: v6e
topology: v6e:2x2x1
jax: 0.10.0
libtpu: 0.0.40
codegen_flags: <defaults>
</compile_context>

<pallas_src>
import jax
import jax.numpy as jnp
from jax.experimental import pallas as pl
from jax.experimental.pallas import tpu as pltpu

# ----------------------------- configuration -------------------------------
B, C_IN, H, W = 2, 3, 16, 16       # input images, NCHW (PyTorch convention)
FH, FW = H // 2, W // 2            # feature map after (folded) 2x2 avg-pool
N_ROWS = B * FH * FW               # 128 feature cells == anchors/proposals per pass
C_FEAT = 16                        # backbone feature channels
C_HID = 32                         # box-head hidden width
A = 3                              # anchors per location
NUM_CLASSES = 8                    # (background = class 0)
SMOOTH_L1_BETA = 1.0 / 9.0         # torchvision default for both RPN and ROI heads
PAD = 128                          # vreg lane width; all matmul dims padded to this

# fused layer indices into the stacked (4, 128, 128) weight slab
L_BB, L_MID, L_BLK, L_ROI = range(4)
RPN_OUT = A + 4 * A                # 15 = objectness(3) + box deltas(12)


def _smooth_l1(d):
    ad = jnp.abs(d)
    return jnp.where(ad < SMOOTH_L1_BETA,
                     (0.5 / SMOOTH_L1_BETA) * d * d,
                     ad - 0.5 * SMOOTH_L1_BETA)


# ------------------------------- kernel -------------------------------------
def _fused_kernel(xg_ref, xp_ref, w_ref, out_ref):
    """Detector proxy + all four detection losses in one kernel.

    xg_ref : (N_ROWS, PAD) VMEM bf16 — eval pass rows (imgs -> pseudo GT)
    xp_ref : (N_ROWS, PAD) VMEM bf16 — train pass rows (outputs)
    w_ref  : (4, PAD, PAD) VMEM bf16 — fused, zero-padded layer weights
    out_ref: (1,)          SMEM f32  — total loss
    """
    # stack eval/train passes on the row axis so every matmul runs once
    x = jnp.concatenate([xg_ref[...], xp_ref[...]], axis=0)       # (2N, 128) bf16

    def mm(v, layer):
        # bf16 MXU operands, f32 accumulation (loss math stays f32)
        return jnp.dot(v.astype(jnp.bfloat16), w_ref[layer],
                       preferred_element_type=jnp.float32)

    feat = jnp.maximum(mm(x, L_BB), 0.0)      # backbone 1x1-conv proxy (+ folded avg-pool)
    mid  = jnp.maximum(mm(feat, L_MID), 0.0)  # cols 0:16 RPN-conv | 16:48 box-head fc1
    y2   = mm(mid, L_BLK)                     # cols 0:15 RPN outputs | 16:48 fc2 (pre-ReLU)
    # ReLU of the RPN columns below is harmless: L_ROI weight rows 0:16 are zero,
    # and the RPN losses read y2 (pre-ReLU).
    hid2 = jnp.maximum(y2, 0.0)
    roi  = mm(hid2, L_ROI)                    # cols 0:8 class logits | 8:40 per-class boxes

    g2, p2 = y2[:N_ROWS], y2[N_ROWS:]         # ground-truth pass / prediction pass
    g_roi, p_roi = roi[:N_ROWS], roi[N_ROWS:]

    # ---- loss_objectness: BCE-with-logits vs (sigmoid>0.5 <=> logit>0) labels ----
    obj_g = g2[:, 0:A]
    obj_p = p2[:, 0:A]
    obj_lab = (obj_g > 0.0).astype(jnp.float32)
    bce = (jnp.maximum(obj_p, 0.0) - obj_p * obj_lab
           + jnp.log(1.0 + jnp.exp(-jnp.abs(obj_p))))
    bce_row = jnp.sum(bce, axis=-1, keepdims=True)                # (N,1)

    # ---- loss_rpn_box_reg: smooth-L1 over positive anchors (full-width, masked) ----
    d_rpn = p2[:, A:RPN_OUT] - g2[:, A:RPN_OUT]                   # (N, 12)
    grp12 = jax.lax.shift_right_logical(
        jax.lax.broadcasted_iota(jnp.int32, (N_ROWS, 4 * A), 1), 2)   # column // 4
    mask12 = sum((grp12 == a).astype(jnp.float32) * obj_lab[:, a:a + 1]
                 for a in range(A))
    rpn_box_row = jnp.sum(mask12 * _smooth_l1(d_rpn), axis=-1, keepdims=True)

    # ---- loss_classifier: softmax CE vs argmax(eval logits), first-max tie-break ----
    cls_g = g_roi[:, 0:NUM_CLASSES]
    cls_p = p_roi[:, 0:NUM_CLASSES]
    col8 = jax.lax.broadcasted_iota(jnp.int32, (N_ROWS, NUM_CLASSES), 1)
    m_g = jnp.max(cls_g, axis=-1, keepdims=True)
    idx = jnp.min(jnp.where(cls_g >= m_g, col8, NUM_CLASSES),
                  axis=-1, keepdims=True)                         # (N,1) int32 argmax
    onehot = (col8 == idx).astype(jnp.float32)
    m_p = jnp.max(cls_p, axis=-1, keepdims=True)
    lse = m_p + jnp.log(jnp.sum(jnp.exp(cls_p - m_p), axis=-1, keepdims=True))
    picked = jnp.sum(onehot * cls_p, axis=-1, keepdims=True)
    cls_row = lse - picked                                        # (N,1)

    # ---- loss_box_reg: class-specific smooth-L1 over positive proposals ----
    d_roi = (p_roi[:, NUM_CLASSES:5 * NUM_CLASSES]
             - g_roi[:, NUM_CLASSES:5 * NUM_CLASSES])             # (N, 32)
    grp32 = jax.lax.shift_right_logical(
        jax.lax.broadcasted_iota(jnp.int32, (N_ROWS, 4 * NUM_CLASSES), 1), 2)
    pos32 = jnp.logical_and(grp32 == idx, idx >= 1).astype(jnp.float32)
    roi_box_row = jnp.sum(pos32 * _smooth_l1(d_roi), axis=-1, keepdims=True)

    # ---- single final reduction: sum of all four losses ----
    per_row = ((bce_row + rpn_box_row) * jnp.float32(1.0 / (N_ROWS * A))
               + (cls_row + roi_box_row) * jnp.float32(1.0 / N_ROWS))
    out_ref[0] = jnp.sum(per_row)


# ------------------------- deterministic parameters --------------------------
def _init_params():
    keys = jax.random.split(jax.random.PRNGKey(42), 8)

    def lin(k, fan_in, fan_out):
        return jax.random.normal(k, (fan_in, fan_out), jnp.float32) / jnp.sqrt(
            jnp.float32(fan_in))

    w_bb   = lin(keys[0], C_IN,   C_FEAT)            # backbone (1x1-conv proxy)
    w_rpn  = lin(keys[1], C_FEAT, C_FEAT)            # RPN head conv proxy
    w_obj  = lin(keys[2], C_FEAT, A)                 # RPN objectness logits
    w_rbox = lin(keys[3], C_FEAT, 4 * A)             # RPN box deltas
    w_fc1  = lin(keys[4], C_FEAT, C_HID)             # box head fc1
    w_fc2  = lin(keys[5], C_HID,  C_HID)             # box head fc2
    w_cls  = lin(keys[6], C_HID,  NUM_CLASSES)       # class logits
    w_breg = lin(keys[7], C_HID,  NUM_CLASSES * 4)   # per-class box regression

    def place(w, r0=0, c0=0):
        z = jnp.zeros((PAD, PAD), jnp.float32)
        return z.at[r0:r0 + w.shape[0], c0:c0 + w.shape[1]].set(w)

    # L_BB : 2x2 avg-pool folded in — input rows carry the 4 raw pixels' channels.
    w0 = place(jnp.tile(w_bb, (4, 1)) / 4.0)
    # L_MID: feat -> [RPN conv (cols 0:16) | fc1 (cols 16:48)]  (both ReLU'd).
    w1 = place(jnp.concatenate([w_rpn, w_fc1], axis=1))
    # L_BLK: block-diagonal — rows 0:16 -> RPN outputs (cols 0:15, unrectified),
    #        rows 16:48 -> fc2 (cols 16:48, ReLU'd afterwards).
    w2 = (place(jnp.concatenate([w_obj, w_rbox], axis=1))
          + place(w_fc2, r0=C_FEAT, c0=C_FEAT))
    # L_ROI: rows 16:48 (fc2 output) -> [cls logits (0:8) | per-class boxes (8:40)];
    #        rows 0:16 are zero so the rectified RPN columns never leak in.
    w3 = place(jnp.concatenate([w_cls, w_breg], axis=1), r0=C_FEAT)

    return jnp.stack([w0, w1, w2, w3]).astype(jnp.bfloat16)       # (4, 128, 128)


W_STACK = _init_params()


# ------------------------------ wrapper --------------------------------------
def _pixel_rows(x_nchw):
    """NCHW -> (B*FH*FW, 4*C_IN) rows of each 2x2 window's raw pixels
    (the avg-pool is folded into the first-layer weight), bf16, lane-padded."""
    b = x_nchw.shape[0]
    x = x_nchw.reshape(b, C_IN, FH, 2, FW, 2)
    x = jnp.transpose(x, (0, 2, 4, 3, 5, 1))                      # (B, FH, FW, 2, 2, C)
    rows = x.reshape(b * FH * FW, 4 * C_IN)
    rows = jnp.pad(rows, ((0, 0), (0, PAD - 4 * C_IN)))
    return rows.astype(jnp.bfloat16)


def faster_rcnn_loss(outputs, imgs):
    """outputs, imgs: float32 NCHW [B, 3, H, W].  Returns scalar total loss."""
    # self.model.eval(); ground_truths = self.model(imgs)        -> rows_g
    # self.model.train(); loss = self.model(outputs, targets)    -> rows_p
    rows_g = _pixel_rows(imgs)
    rows_p = _pixel_rows(outputs)

    total = pl.pallas_call(
        _fused_kernel,
        out_shape=jax.ShapeDtypeStruct((1,), jnp.float32),
        in_specs=[pl.BlockSpec(memory_space=pltpu.MemorySpace.VMEM)] * 3,
        out_specs=pl.BlockSpec(memory_space=pltpu.MemorySpace.SMEM),
    )(rows_g, rows_p, W_STACK)
    return total[0]


# ----------------------------------- main ------------------------------------
if __name__ == "__main__":
    key = jax.random.PRNGKey(0)
    k_out, k_img = jax.random.split(key)
    outputs = jax.random.normal(k_out, (B, C_IN, H, W), jnp.float32)  # "reconstructions"
    imgs    = jax.random.normal(k_img, (B, C_IN, H, W), jnp.float32)  # "originals"

    total = jax.jit(faster_rcnn_loss)(outputs, imgs)
    jax.block_until_ready(total)
    assert total.shape == () and jnp.isfinite(total)
    print("KERNEL_OK")
</pallas_src>

<mosaic_0001>
module attributes {stable_mosaic.version = 11 : i64} {
  func.func @_fused_kernel(%arg0: memref<128x128xbf16, #tpu.memory_space<vmem>>, %arg1: memref<128x128xbf16, #tpu.memory_space<vmem>>, %arg2: memref<4x128x128xbf16, #tpu.memory_space<vmem>>, %arg3: memref<1xf32, #tpu.memory_space<smem>>) attributes {dimension_semantics = [], scalar_prefetch = 0 : i64, scratch_operands = 0 : i64, tpu.core_type = #tpu.core_type<tc>} {
    %c0 = arith.constant 0 : index
    %c0_0 = arith.constant 0 : index
    %0 = vector.load %arg0[%c0, %c0_0] : memref<128x128xbf16, #tpu.memory_space<vmem>>, vector<128x128xbf16>
    %c0_1 = arith.constant 0 : index
    %c0_2 = arith.constant 0 : index
    %1 = vector.load %arg1[%c0_1, %c0_2] : memref<128x128xbf16, #tpu.memory_space<vmem>>, vector<128x128xbf16>
    %2 = tpu.concatenate %0, %1 in 0 : vector<128x128xbf16>, vector<128x128xbf16> -> vector<256x128xbf16>
    %c0_3 = arith.constant 0 : index
    %c0_4 = arith.constant 0 : index
    %c0_5 = arith.constant 0 : index
    %3 = vector.load %arg2[%c0_3, %c0_4, %c0_5] : memref<4x128x128xbf16, #tpu.memory_space<vmem>>, vector<1x128x128xbf16>
    %4 = vector.shape_cast %3 : vector<1x128x128xbf16> to vector<128x128xbf16>
    %cst = arith.constant dense<0.000000e+00> : vector<256x128xf32>
    %5 = tpu.matmul %2, %4, %cst {dimension_numbers = #tpu.dot_dimension_numbers<[1], [0], [0], [1], [0, 0, 1, 1], [], []>} : vector<256x128xbf16>, vector<128x128xbf16>, vector<256x128xf32> -> vector<256x128xf32>
    %cst_6 = arith.constant 0.000000e+00 : f32
    %6 = vector.broadcast %cst_6 : f32 to vector<256x128xf32>
    %7 = arith.maximumf %5, %6 : vector<256x128xf32>
    %8 = arith.truncf %7 : vector<256x128xf32> to vector<256x128xbf16>
    %c1 = arith.constant 1 : index
    %c0_7 = arith.constant 0 : index
    %c0_8 = arith.constant 0 : index
    %9 = vector.load %arg2[%c1, %c0_7, %c0_8] : memref<4x128x128xbf16, #tpu.memory_space<vmem>>, vector<1x128x128xbf16>
    %10 = vector.shape_cast %9 : vector<1x128x128xbf16> to vector<128x128xbf16>
    %cst_9 = arith.constant dense<0.000000e+00> : vector<256x128xf32>
    %11 = tpu.matmul %8, %10, %cst_9 {dimension_numbers = #tpu.dot_dimension_numbers<[1], [0], [0], [1], [0, 0, 1, 1], [], []>} : vector<256x128xbf16>, vector<128x128xbf16>, vector<256x128xf32> -> vector<256x128xf32>
    %cst_10 = arith.constant 0.000000e+00 : f32
    %12 = vector.broadcast %cst_10 : f32 to vector<256x128xf32>
    %13 = arith.maximumf %11, %12 : vector<256x128xf32>
    %14 = arith.truncf %13 : vector<256x128xf32> to vector<256x128xbf16>
    %c2 = arith.constant 2 : index
    %c0_11 = arith.constant 0 : index
    %c0_12 = arith.constant 0 : index
    %15 = vector.load %arg2[%c2, %c0_11, %c0_12] : memref<4x128x128xbf16, #tpu.memory_space<vmem>>, vector<1x128x128xbf16>
    %16 = vector.shape_cast %15 : vector<1x128x128xbf16> to vector<128x128xbf16>
    %cst_13 = arith.constant dense<0.000000e+00> : vector<256x128xf32>
    %17 = tpu.matmul %14, %16, %cst_13 {dimension_numbers = #tpu.dot_dimension_numbers<[1], [0], [0], [1], [0, 0, 1, 1], [], []>} : vector<256x128xbf16>, vector<128x128xbf16>, vector<256x128xf32> -> vector<256x128xf32>
    %cst_14 = arith.constant 0.000000e+00 : f32
    %18 = vector.broadcast %cst_14 : f32 to vector<256x128xf32>
    %19 = arith.maximumf %17, %18 : vector<256x128xf32>
    %20 = arith.truncf %19 : vector<256x128xf32> to vector<256x128xbf16>
    %c3 = arith.constant 3 : index
    %c0_15 = arith.constant 0 : index
    %c0_16 = arith.constant 0 : index
    %21 = vector.load %arg2[%c3, %c0_15, %c0_16] : memref<4x128x128xbf16, #tpu.memory_space<vmem>>, vector<1x128x128xbf16>
    %22 = vector.shape_cast %21 : vector<1x128x128xbf16> to vector<128x128xbf16>
    %cst_17 = arith.constant dense<0.000000e+00> : vector<256x128xf32>
    %23 = tpu.matmul %20, %22, %cst_17 {dimension_numbers = #tpu.dot_dimension_numbers<[1], [0], [0], [1], [0, 0, 1, 1], [], []>} : vector<256x128xbf16>, vector<128x128xbf16>, vector<256x128xf32> -> vector<256x128xf32>
    %24 = vector.extract_strided_slice %17 {offsets = [0, 0], sizes = [128, 128], strides = [1, 1]} : vector<256x128xf32> to vector<128x128xf32>
    %25 = vector.extract_strided_slice %17 {offsets = [128, 0], sizes = [128, 128], strides = [1, 1]} : vector<256x128xf32> to vector<128x128xf32>
    %26 = vector.extract_strided_slice %23 {offsets = [0, 0], sizes = [128, 128], strides = [1, 1]} : vector<256x128xf32> to vector<128x128xf32>
    %27 = vector.extract_strided_slice %23 {offsets = [128, 0], sizes = [128, 128], strides = [1, 1]} : vector<256x128xf32> to vector<128x128xf32>
    %28 = vector.extract_strided_slice %24 {offsets = [0, 0], sizes = [128, 3], strides = [1, 1]} : vector<128x128xf32> to vector<128x3xf32>
    %29 = vector.extract_strided_slice %25 {offsets = [0, 0], sizes = [128, 3], strides = [1, 1]} : vector<128x128xf32> to vector<128x3xf32>
    %cst_18 = arith.constant 0.000000e+00 : f32
    %30 = vector.broadcast %cst_18 : f32 to vector<128x3xf32>
    %31 = arith.cmpf ogt, %28, %30 : vector<128x3xf32>
    %32 = arith.extui %31 : vector<128x3xi1> to vector<128x3xi32>
    %33 = arith.sitofp %32 : vector<128x3xi32> to vector<128x3xf32>
    %cst_19 = arith.constant 0.000000e+00 : f32
    %34 = vector.broadcast %cst_19 : f32 to vector<128x3xf32>
    %35 = arith.maximumf %29, %34 : vector<128x3xf32>
    %36 = arith.mulf %29, %33 : vector<128x3xf32>
    %37 = arith.subf %35, %36 : vector<128x3xf32>
    %38 = math.absf %29 : vector<128x3xf32>
    %cst_20 = arith.constant 0.000000e+00 : f32
    %39 = vector.broadcast %cst_20 : f32 to vector<128x3xf32>
    %40 = arith.subf %39, %38 : vector<128x3xf32>
    %41 = math.exp %40 : vector<128x3xf32>
    %cst_21 = arith.constant 1.000000e+00 : f32
    %42 = vector.broadcast %cst_21 : f32 to vector<128x3xf32>
    %43 = arith.addf %42, %41 : vector<128x3xf32>
    %44 = math.log %43 : vector<128x3xf32>
    %45 = arith.addf %37, %44 : vector<128x3xf32>
    %cst_22 = arith.constant dense<0.000000e+00> : vector<128xf32>
    %46 = vector.multi_reduction <add>, %45, %cst_22 [1] : vector<128x3xf32> to vector<128xf32>
    %47 = vector.shape_cast %46 : vector<128xf32> to vector<128x1xf32>
    %48 = vector.extract_strided_slice %25 {offsets = [0, 3], sizes = [128, 12], strides = [1, 1]} : vector<128x128xf32> to vector<128x12xf32>
    %49 = vector.extract_strided_slice %24 {offsets = [0, 3], sizes = [128, 12], strides = [1, 1]} : vector<128x128xf32> to vector<128x12xf32>
    %50 = arith.subf %48, %49 : vector<128x12xf32>
    %51 = tpu.iota {dimensions = array<i32: 1>} : vector<128x12xi32>
    %c2_i32 = arith.constant 2 : i32
    %52 = vector.broadcast %c2_i32 : i32 to vector<128x12xi32>
    %53 = arith.shrui %51, %52 : vector<128x12xi32>
    %c0_i32 = arith.constant 0 : i32
    %54 = vector.broadcast %c0_i32 : i32 to vector<128x12xi32>
    %55 = arith.cmpi eq, %53, %54 : vector<128x12xi32>
    %56 = arith.extui %55 : vector<128x12xi1> to vector<128x12xi32>
    %57 = arith.sitofp %56 : vector<128x12xi32> to vector<128x12xf32>
    %58 = vector.extract_strided_slice %33 {offsets = [0, 0], sizes = [128, 1], strides = [1, 1]} : vector<128x3xf32> to vector<128x1xf32>
    %59 = vector.broadcast %58 : vector<128x1xf32> to vector<128x12xf32>
    %60 = arith.mulf %57, %59 : vector<128x12xf32>
    %cst_23 = arith.constant 0.000000e+00 : f32
    %61 = vector.broadcast %cst_23 : f32 to vector<128x12xf32>
    %62 = arith.addf %61, %60 : vector<128x12xf32>
    %c1_i32 = arith.constant 1 : i32
    %63 = vector.broadcast %c1_i32 : i32 to vector<128x12xi32>
    %64 = arith.cmpi eq, %53, %63 : vector<128x12xi32>
    %65 = arith.extui %64 : vector<128x12xi1> to vector<128x12xi32>
    %66 = arith.sitofp %65 : vector<128x12xi32> to vector<128x12xf32>
    %67 = vector.extract_strided_slice %33 {offsets = [0, 1], sizes = [128, 1], strides = [1, 1]} : vector<128x3xf32> to vector<128x1xf32>
    %68 = vector.broadcast %67 : vector<128x1xf32> to vector<128x12xf32>
    %69 = arith.mulf %66, %68 : vector<128x12xf32>
    %70 = arith.addf %62, %69 : vector<128x12xf32>
    %c2_i32_24 = arith.constant 2 : i32
    %71 = vector.broadcast %c2_i32_24 : i32 to vector<128x12xi32>
    %72 = arith.cmpi eq, %53, %71 : vector<128x12xi32>
    %73 = arith.extui %72 : vector<128x12xi1> to vector<128x12xi32>
    %74 = arith.sitofp %73 : vector<128x12xi32> to vector<128x12xf32>
    %75 = vector.extract_strided_slice %33 {offsets = [0, 2], sizes = [128, 1], strides = [1, 1]} : vector<128x3xf32> to vector<128x1xf32>
    %76 = vector.broadcast %75 : vector<128x1xf32> to vector<128x12xf32>
    %77 = arith.mulf %74, %76 : vector<128x12xf32>
    %78 = arith.addf %70, %77 : vector<128x12xf32>
    %79 = math.absf %50 : vector<128x12xf32>
    %cst_25 = arith.constant 0.111111112 : f32
    %80 = vector.broadcast %cst_25 : f32 to vector<128x12xf32>
    %81 = arith.cmpf olt, %79, %80 : vector<128x12xf32>
    %cst_26 = arith.constant 4.500000e+00 : f32
    %82 = vector.broadcast %cst_26 : f32 to vector<128x12xf32>
    %83 = arith.mulf %82, %50 : vector<128x12xf32>
    %84 = arith.mulf %83, %50 : vector<128x12xf32>
    %cst_27 = arith.constant 0.055555556 : f32
    %85 = vector.broadcast %cst_27 : f32 to vector<128x12xf32>
    %86 = arith.subf %79, %85 : vector<128x12xf32>
    %87 = arith.select %81, %84, %86 : vector<128x12xi1>, vector<128x12xf32>
    %88 = arith.mulf %78, %87 : vector<128x12xf32>
    %cst_28 = arith.constant dense<0.000000e+00> : vector<128xf32>
    %89 = vector.multi_reduction <add>, %88, %cst_28 [1] : vector<128x12xf32> to vector<128xf32>
    %90 = vector.shape_cast %89 : vector<128xf32> to vector<128x1xf32>
    %91 = vector.extract_strided_slice %26 {offsets = [0, 0], sizes = [128, 8], strides = [1, 1]} : vector<128x128xf32> to vector<128x8xf32>
    %92 = vector.extract_strided_slice %27 {offsets = [0, 0], sizes = [128, 8], strides = [1, 1]} : vector<128x128xf32> to vector<128x8xf32>
    %93 = tpu.iota {dimensions = array<i32: 1>} : vector<128x8xi32>
    %cst_29 = arith.constant dense<0xFF800000> : vector<128xf32>
    %94 = vector.multi_reduction <maximumf>, %91, %cst_29 [1] : vector<128x8xf32> to vector<128xf32>
    %95 = vector.shape_cast %94 : vector<128xf32> to vector<128x1xf32>
    %96 = vector.broadcast %95 : vector<128x1xf32> to vector<128x8xf32>
    %97 = arith.cmpf oge, %91, %96 : vector<128x8xf32>
    %c8_i32 = arith.constant 8 : i32
    %98 = vector.broadcast %c8_i32 : i32 to vector<128x8xi32>
    %99 = arith.select %97, %93, %98 : vector<128x8xi1>, vector<128x8xi32>
    %cst_30 = arith.constant dense<2147483647> : vector<128xi32>
    %100 = vector.multi_reduction <minsi>, %99, %cst_30 [1] : vector<128x8xi32> to vector<128xi32>
    %101 = vector.shape_cast %100 : vector<128xi32> to vector<128x1xi32>
    %102 = vector.broadcast %101 : vector<128x1xi32> to vector<128x8xi32>
    %103 = arith.cmpi eq, %93, %102 : vector<128x8xi32>
    %104 = arith.extui %103 : vector<128x8xi1> to vector<128x8xi32>
    %105 = arith.sitofp %104 : vector<128x8xi32> to vector<128x8xf32>
    %cst_31 = arith.constant dense<0xFF800000> : vector<128xf32>
    %106 = vector.multi_reduction <maximumf>, %92, %cst_31 [1] : vector<128x8xf32> to vector<128xf32>
    %107 = vector.shape_cast %106 : vector<128xf32> to vector<128x1xf32>
    %108 = vector.broadcast %107 : vector<128x1xf32> to vector<128x8xf32>
    %109 = arith.subf %92, %108 : vector<128x8xf32>
    %110 = math.exp %109 : vector<128x8xf32>
    %cst_32 = arith.constant dense<0.000000e+00> : vector<128xf32>
    %111 = vector.multi_reduction <add>, %110, %cst_32 [1] : vector<128x8xf32> to vector<128xf32>
    %112 = vector.shape_cast %111 : vector<128xf32> to vector<128x1xf32>
    %113 = math.log %112 : vector<128x1xf32>
    %114 = arith.addf %107, %113 : vector<128x1xf32>
    %115 = arith.mulf %105, %92 : vector<128x8xf32>
    %cst_33 = arith.constant dense<0.000000e+00> : vector<128xf32>
    %116 = vector.multi_reduction <add>, %115, %cst_33 [1] : vector<128x8xf32> to vector<128xf32>
    %117 = vector.shape_cast %116 : vector<128xf32> to vector<128x1xf32>
    %118 = arith.subf %114, %117 : vector<128x1xf32>
    %119 = vector.extract_strided_slice %27 {offsets = [0, 8], sizes = [128, 32], strides = [1, 1]} : vector<128x128xf32> to vector<128x32xf32>
    %120 = vector.extract_strided_slice %26 {offsets = [0, 8], sizes = [128, 32], strides = [1, 1]} : vector<128x128xf32> to vector<128x32xf32>
    %121 = arith.subf %119, %120 : vector<128x32xf32>
    %122 = tpu.iota {dimensions = array<i32: 1>} : vector<128x32xi32>
    %c2_i32_34 = arith.constant 2 : i32
    %123 = vector.broadcast %c2_i32_34 : i32 to vector<128x32xi32>
    %124 = arith.shrui %122, %123 : vector<128x32xi32>
    %125 = vector.broadcast %101 : vector<128x1xi32> to vector<128x32xi32>
    %126 = arith.cmpi eq, %124, %125 : vector<128x32xi32>
    %c1_i32_35 = arith.constant 1 : i32
    %127 = vector.broadcast %c1_i32_35 : i32 to vector<128x1xi32>
    %128 = arith.cmpi sge, %101, %127 : vector<128x1xi32>
    %129 = vector.broadcast %128 : vector<128x1xi1> to vector<128x32xi1>
    %130 = arith.andi %126, %129 : vector<128x32xi1>
    %131 = arith.extui %130 : vector<128x32xi1> to vector<128x32xi32>
    %132 = arith.sitofp %131 : vector<128x32xi32> to vector<128x32xf32>
    %133 = math.absf %121 : vector<128x32xf32>
    %cst_36 = arith.constant 0.111111112 : f32
    %134 = vector.broadcast %cst_36 : f32 to vector<128x32xf32>
    %135 = arith.cmpf olt, %133, %134 : vector<128x32xf32>
    %cst_37 = arith.constant 4.500000e+00 : f32
    %136 = vector.broadcast %cst_37 : f32 to vector<128x32xf32>
    %137 = arith.mulf %136, %121 : vector<128x32xf32>
    %138 = arith.mulf %137, %121 : vector<128x32xf32>
    %cst_38 = arith.constant 0.055555556 : f32
    %139 = vector.broadcast %cst_38 : f32 to vector<128x32xf32>
    %140 = arith.subf %133, %139 : vector<128x32xf32>
    %141 = arith.select %135, %138, %140 : vector<128x32xi1>, vector<128x32xf32>
    %142 = arith.mulf %132, %141 : vector<128x32xf32>
    %cst_39 = arith.constant dense<0.000000e+00> : vector<128xf32>
    %143 = vector.multi_reduction <add>, %142, %cst_39 [1] : vector<128x32xf32> to vector<128xf32>
    %144 = vector.shape_cast %143 : vector<128xf32> to vector<128x1xf32>
    %145 = arith.addf %47, %90 : vector<128x1xf32>
    %cst_40 = arith.constant 0.00260416674 : f32
    %146 = vector.broadcast %cst_40 : f32 to vector<128x1xf32>
    %147 = arith.mulf %145, %146 : vector<128x1xf32>
    %148 = arith.addf %118, %144 : vector<128x1xf32>
    %cst_41 = arith.constant 7.812500e-03 : f32
    %149 = vector.broadcast %cst_41 : f32 to vector<128x1xf32>
    %150 = arith.mulf %148, %149 : vector<128x1xf32>
    %151 = arith.addf %147, %150 : vector<128x1xf32>
    %152 = vector.shape_cast %151 : vector<128x1xf32> to vector<1x128x1xf32>
    %cst_42 = arith.constant dense<0.000000e+00> : vector<1xf32>
    %153 = vector.multi_reduction <add>, %152, %cst_42 [1, 2] : vector<1x128x1xf32> to vector<1xf32>
    %154 = vector.shape_cast %153 : vector<1xf32> to vector<1x1x1xf32>
    %155 = vector.extract %154[0, 0, 0] : f32 from vector<1x1x1xf32>
    %c0_43 = arith.constant 0 : index
    %156 = memref.load %arg3[%c0_43] : memref<1xf32, #tpu.memory_space<smem>>
    memref.store %155, %arg3[%c0_43] : memref<1xf32, #tpu.memory_space<smem>>
    return
  }
}

</mosaic_0001>

<bundles_post_ra>
// kernel: faster_rcnn_loss.1
= control target key start
LH: loop header
LB: loop body
LE: loop exit
PB: predicated region body
PF: predicated region fallthrough
CT: control target
= control target key end

     0   :  { %s5805_s0 = inlined_call_operand.vmem [shape: bf16[128,128], index: 0, kind: input, shape index: {}]   ;;  %s5806_s1 = inlined_call_operand.vmem [shape: bf16[128,128], index: 1, kind: input, shape index: {}]   ;;  %s5807_s2 = inlined_call_operand.vmem [shape: bf16[4,128,128], index: 2, kind: input, shape index: {}]   ;;  %s5808_s3 = inlined_call_operand.hbm [shape: f32[1], index: 3, kind: output, shape index: {}]  }
   0x1   :  { %v3750_v0 = vld [vmem:[%s5807_s2 + $0x38] sm:$0xff]   ;;  %v3751_v1 = vld [vmem:[%s5807_s2 + $0x30] sm:$0xff]   ;;  %v3752_v2 = vld [vmem:[%s5807_s2 + $0x28] sm:$0xff]  }
   0x2   :  { %3410 = vmatprep.subr.bf16.mxu0 %v3750_v0  ;;  %v3753_v3 = vld [vmem:[%s5807_s2 + $0x20] sm:$0xff]   ;;  %v3754_v5 = vld [vmem:[%s5807_s2 + $0x18] sm:$0xff]   ;;  %v3755_v6 = vld [vmem:[%s5807_s2 + $0x10] sm:$0xff]  }
   0x3   :  { %3411 = vmatpush3.bf16.msra.mxu0 %v3750_v0  ;;  %v3758_v4 = vld [vmem:[%s5805_s0] sm:$0xff]   ;;  %v3756_v7 = vld [vmem:[%s5807_s2 + $0x8] sm:$0xff]   ;;  %v3774_v9 = vld [vmem:[%s5807_s2 + $0x78] sm:$0xff]  }
   0x4   :  { %3412 = vmatprep.subr.bf16.mxu0 %v3751_v1  ;;  %3426 = vmatprep.mubr.bf16.mxu0 %v3758_v4  ;;  %v3757_v8 = vld [vmem:[%s5807_s2] sm:$0xff]   ;;  %v3775_v10 = vld [vmem:[%s5807_s2 + $0x70] sm:$0xff]   ;;  %v3759_v11 = vld [vmem:[%s5805_s0 + $0x8] sm:$0xff]  }
   0x5   :  { %3458 = vmatprep.subr.bf16.mxu1 %v3774_v9  ;;  %v3776_v12 = vld [vmem:[%s5807_s2 + $0x68] sm:$0xff]   ;;  %v3760_v13 = vld [vmem:[%s5805_s0 + $0x10] sm:$0xff]   ;;  %v3777_v14 = vld [vmem:[%s5807_s2 + $0x60] sm:$0xff]  }
   0x6   :  { %3459 = vmatpush3.bf16.msra.mxu1 %v3774_v9  ;;  %v3778_v15 = vld [vmem:[%s5807_s2 + $0x58] sm:$0xff]   ;;  %v3762_v17 = vld [vmem:[%s5805_s0 + $0x20] sm:$0xff]  }
   0x7   :  { %3413 = vmatpush3.bf16.msra.mxu0 %v3751_v1  ;;  %3460 = vmatprep.subr.bf16.mxu1 %v3775_v10  ;;  %v3761_v16 = vld [vmem:[%s5805_s0 + $0x18] sm:$0xff]  }
   0x8   :  { %3414 = vmatprep.subr.bf16.mxu0 %v3752_v2 }
   0xa   :  { %3461 = vmatpush3.bf16.msra.mxu1 %v3775_v10 }
   0xb   :  { %3415 = vmatpush3.bf16.msra.mxu0 %v3752_v2  ;;  %3462 = vmatprep.subr.bf16.mxu1 %v3776_v12 }
   0xc   :  { %3416 = vmatprep.subr.bf16.mxu0 %v3753_v3 }
   0xe   :  { %3463 = vmatpush3.bf16.msra.mxu1 %v3776_v12 }
   0xf   :  { %3417 = vmatpush3.bf16.msra.mxu0 %v3753_v3  ;;  %3464 = vmatprep.subr.bf16.mxu1 %v3777_v14 }
  0x10   :  { %3418 = vmatprep.subr.bf16.mxu0 %v3754_v5 }
  0x12   :  { %3465 = vmatpush3.bf16.msra.mxu1 %v3777_v14 }
  0x13   :  { %3419 = vmatpush3.bf16.msra.mxu0 %v3754_v5  ;;  %3466 = vmatprep.subr.bf16.mxu1 %v3778_v15 }
  0x14   :  { %3420 = vmatprep.subr.bf16.mxu0 %v3755_v6 }
  0x17   :  { %3421 = vmatpush3.bf16.msra.mxu0 %v3755_v6 }
  0x18   :  { %3422 = vmatprep.subr.bf16.mxu0 %v3756_v7 }
  0x1b   :  { %3423 = vmatpush3.bf16.msra.mxu0 %v3756_v7 }
  0x1c   :  { %3424 = vmatprep.subr.bf16.mxu0 %v3757_v8 }
  0x1f   :  { %3425 = vmatpush3.bf16.msra.mxu0 %v3757_v8 }
  0x22   :  { %3427 = vmatmul.mubr.bf16.vlgmr.msra.gmra.mxu0 %v3759_v11 }
  0x23   :  { %3430 = vmatprep.mubr.bf16.mxu0 %v3760_v13 }
  0x24   :  { %8 = vsyncpa [#allocation3], 0  ;;  %3467 = vmatpush3.bf16.msra.mxu1 %v3778_v15  ;;  %v3763_v18 = vld [vmem:[%s5805_s0 + $0x28] sm:$0xff]   ;;  %v3764_v19 = vld [vmem:[%s5805_s0 + $0x30] sm:$0xff]   ;;  %s3941_s23 = smov 120   ;;  %s3942_s25 = smov [#allocation2]  }
  0x25   :  { %v3765_v20 = vld [vmem:[%s5805_s0 + $0x38] sm:$0xff]   ;;  %v3766_v21 = vld [vmem:[%s5806_s1] sm:$0xff]   ;;  %v3767_v22 = vld [vmem:[%s5806_s1 + $0x8] sm:$0xff]  }
  0x26   :  { %v3768_v23 = vld [vmem:[%s5806_s1 + $0x10] sm:$0xff]   ;;  %v3769_v24 = vld [vmem:[%s5806_s1 + $0x18] sm:$0xff]   ;;  %v3770_v25 = vld [vmem:[%s5806_s1 + $0x20] sm:$0xff]  }
  0x27   :  { %v3771_v26 = vld [vmem:[%s5806_s1 + $0x28] sm:$0xff]   ;;  %v3772_v27 = vld [vmem:[%s5806_s1 + $0x30] sm:$0xff]   ;;  %v3773_v28 = vld [vmem:[%s5806_s1 + $0x38] sm:$0xff]  }
  0x28   :  { %v3779_v29 = vld [vmem:[%s5807_s2 + $0x50] sm:$0xff]   ;;  %v3780_v30 = vld [vmem:[%s5807_s2 + $0x48] sm:$0xff]   ;;  %v3781_v31 = vld [vmem:[%s5807_s2 + $0x40] sm:$0xff]  }
  0x29   :  { %3468 = vmatprep.subr.bf16.mxu1 %v3779_v29  ;;  %v3782_v32 = vld [vmem:[%s5807_s2 + $0xb8] sm:$0xff]   ;;  %v3783_v33 = vld [vmem:[%s5807_s2 + $0xb0] sm:$0xff]   ;;  %v3784_v34 = vld [vmem:[%s5807_s2 + $0xa8] sm:$0xff]  }
  0x2a   :  { %3431 = vmatmul.mubr.bf16.gmra.mxu0 %v3761_v16  ;;  %3469 = vmatpush3.bf16.msra.mxu1 %v3779_v29  ;;  %v3785_v35 = vld [vmem:[%s5807_s2 + $0xa0] sm:$0xff]   ;;  %v3786_v36 = vld [vmem:[%s5807_s2 + $0x98] sm:$0xff]   ;;  %v3787_v37 = vld [vmem:[%s5807_s2 + $0x90] sm:$0xff]  }
  0x2b   :  { %3434 = vmatprep.mubr.bf16.mxu0 %v3762_v17  ;;  %3470 = vmatprep.subr.bf16.mxu1 %v3780_v30  ;;  %v3788_v38 = vld [vmem:[%s5807_s2 + $0x88] sm:$0xff]  }
  0x2c   :  { %3506 = vmatprep.subr.bf16.mxu0 %v3782_v32 }
  0x2d   :  { %3507 = vmatpush3.bf16.msra.mxu0 %v3782_v32 }
  0x2e   :  { %3471 = vmatpush3.bf16.msra.mxu1 %v3780_v30  ;;  %3508 = vmatprep.subr.bf16.mxu0 %v3783_v33 }
  0x2f   :  { %3472 = vmatprep.subr.bf16.mxu1 %v3781_v31 }
  0x31   :  { %3509 = vmatpush3.bf16.msra.mxu0 %v3783_v33 }
  0x32   :  { %3435 = vmatmul.mubr.bf16.gmra.mxu0 %v3763_v18  ;;  %3473 = vmatpush3.bf16.msra.mxu1 %v3781_v31 }
  0x33   :  { %3438 = vmatprep.mubr.bf16.mxu0 %v3764_v19  ;;  %3510 = vmatprep.subr.bf16.mxu0 %v3784_v34 }
  0x35   :  { %3511 = vmatpush3.bf16.msra.mxu0 %v3784_v34 }
  0x36   :  { %3512 = vmatprep.subr.bf16.mxu0 %v3785_v35 }
  0x39   :  { %3513 = vmatpush3.bf16.msra.mxu0 %v3785_v35 }
  0x3a   :  { %3439 = vmatmul.mubr.bf16.gmra.mxu0 %v3765_v20  ;;  %3514 = vmatprep.subr.bf16.mxu0 %v3786_v36 }
  0x3b   :  { %3442 = vmatprep.mubr.bf16.mxu0 %v3766_v21 }
  0x3d   :  { %3515 = vmatpush3.bf16.msra.mxu0 %v3786_v36 }
  0x3e   :  { %3516 = vmatprep.subr.bf16.mxu0 %v3787_v37 }
  0x41   :  { %3517 = vmatpush3.bf16.msra.mxu0 %v3787_v37 }
  0x42   :  { %3443 = vmatmul.mubr.bf16.gmra.mxu0 %v3767_v22  ;;  %3518 = vmatprep.subr.bf16.mxu0 %v3788_v38 }
  0x43   :  { %3446 = vmatprep.mubr.bf16.mxu0 %v3768_v23 }
  0x45   :  { %3519 = vmatpush3.bf16.msra.mxu0 %v3788_v38 }
  0x4a   :  { %3447 = vmatmul.mubr.bf16.gmra.mxu0 %v3769_v24 }
  0x4b   :  { %3450 = vmatprep.mubr.bf16.mxu0 %v3770_v25 }
  0x52   :  { %3451 = vmatmul.mubr.bf16.gmra.mxu0 %v3771_v26 }
  0x53   :  { %3454 = vmatprep.mubr.bf16.mxu0 %v3772_v27 }
  0x5a   :  { %3455 = vmatmul.mubr.bf16.gmra.mxu0 %v3773_v28 }
  0xe2   :  { %v3428_v39 = vpop.f32.mrf.mxu0 }
  0xe3   :  { %v371_v46 = vmax.f32 %v3428_v39, 0.0 }
  0xe4   :  { %v242_v40 = vpop.f32.mrf.mxu0 }
  0xe5   :  { %v369_v44 = vmax.f32 %v242_v40, 0.0 }
  0xe6   :  { %v3429_v41 = vpop.f32.mrf.mxu0 }
  0xe7   :  { %v372_v42 = vmax.f32 %v3429_v41, 0.0 }
  0xe8   :  { %v245_v43 = vpop.f32.mrf.mxu0 }
  0xe9   :  { %v370_v45 = vmax.f32 %v245_v43, 0.0  ;;  %v402_v49 = vpack.c.bf16 %v372_v42, %v371_v46 }
  0xea   :  { %v3432_v47 = vpop.f32.mrf.mxu0 }
  0xeb   :  { %v401_v48 = vpack.c.bf16 %v370_v45, %v369_v44  ;;  %v375_v56 = vmax.f32 %v3432_v47, 0.0 }
  0xec   :  { %v258_v50 = vpop.f32.mrf.mxu0 }
  0xed   :  { %3474 = vmatprep.mubr.bf16.mxu1 %v401_v48  ;;  %v373_v54 = vmax.f32 %v258_v50, 0.0 }
  0xee   :  { %v3433_v51 = vpop.f32.mrf.mxu0  ;;  %3475 = vmatmul.mubr.bf16.vlgmr.msra.gmra.mxu1 %v402_v49 }
  0xef   :  { %v376_v52 = vmax.f32 %v3433_v51, 0.0 }
  0xf0   :  { %v261_v53 = vpop.f32.mrf.mxu0 }
  0xf1   :  { %v374_v55 = vmax.f32 %v261_v53, 0.0  ;;  %v404_v59 = vpack.c.bf16 %v376_v52, %v375_v56  ;;  %v3790_v56 = vld [vmem:[%s5807_s2 + $0xf8] sm:$0xff]  }
  0xf2   :  { %v3436_v57 = vpop.f32.mrf.mxu0  ;;  %3554 = vmatprep.subr.bf16.mxu1 %v3790_v56 }
  0xf3   :  { %v403_v58 = vpack.c.bf16 %v374_v55, %v373_v54  ;;  %v379_v2 = vmax.f32 %v3436_v57, 0.0  ;;  %v3789_v55 = vld [vmem:[%s5807_s2 + $0x80] sm:$0xff]   ;;  %v3791_v57 = vld [vmem:[%s5807_s2 + $0xf0] sm:$0xff]   ;;  %3555 = vmatpush3.bf16.msra.mxu1 %v3790_v56 }
  0xf4   :  { %v274_v60 = vpop.f32.mrf.mxu0  ;;  %3520 = vmatprep.subr.bf16.mxu0 %v3789_v55  ;;  %3556 = vmatprep.subr.bf16.mxu1 %v3791_v57 }
  0xf5   :  { %3478 = vmatprep.mubr.bf16.mxu1 %v403_v58  ;;  %v377_v0 = vmax.f32 %v274_v60, 0.0  ;;  %3521 = vmatpush3.bf16.msra.mxu0 %v3789_v55  ;;  %v3792_v58 = vld [vmem:[%s5807_s2 + $0xe8] sm:$0xff]   ;;  %v3794_v60 = vld [vmem:[%s5807_s2 + $0xd8] sm:$0xff]  }
  0xf6   :  { %v3437_v61 = vpop.f32.mrf.mxu0  ;;  %3479 = vmatmul.mubr.bf16.gmra.mxu1 %v404_v59  ;;  %v3793_v59 = vld [vmem:[%s5807_s2 + $0xe0] sm:$0xff]  }
  0xf7   :  { %v380_v62 = vmax.f32 %v3437_v61, 0.0  ;;  %3557 = vmatpush3.bf16.msra.mxu1 %v3791_v57  ;;  %v3795_v61 = vld [vmem:[%s5807_s2 + $0xd0] sm:$0xff]  }
  0xf8   :  { %v277_v63 = vpop.f32.mrf.mxu0  ;;  %3558 = vmatprep.subr.bf16.mxu1 %v3792_v58 }
  0xf9   :  { %v378_v1 = vmax.f32 %v277_v63, 0.0  ;;  %v406_v5 = vpack.c.bf16 %v380_v62, %v379_v2  ;;  %v3796_v62 = vld [vmem:[%s5807_s2 + $0xc8] sm:$0xff]  }
  0xfa   :  { %v3440_v3 = vpop.f32.mrf.mxu0 }
  0xfb   :  { %v405_v4 = vpack.c.bf16 %v378_v1, %v377_v0  ;;  %v383_v12 = vmax.f32 %v3440_v3, 0.0  ;;  %3559 = vmatpush3.bf16.msra.mxu1 %v3792_v58 }
  0xfc   :  { %v290_v6 = vpop.f32.mrf.mxu0  ;;  %3560 = vmatprep.subr.bf16.mxu1 %v3793_v59 }
  0xfd   :  { %3482 = vmatprep.mubr.bf16.mxu1 %v405_v4  ;;  %v381_v10 = vmax.f32 %v290_v6, 0.0 }
  0xfe   :  { %v3441_v7 = vpop.f32.mrf.mxu0  ;;  %3483 = vmatmul.mubr.bf16.gmra.mxu1 %v406_v5 }
  0xff   :  { %v384_v8 = vmax.f32 %v3441_v7, 0.0  ;;  %3561 = vmatpush3.bf16.msra.mxu1 %v3793_v59 }
 0x100   :  { %v293_v9 = vpop.f32.mrf.mxu0  ;;  %3562 = vmatprep.subr.bf16.mxu1 %v3794_v60 }
 0x101   :  { %v382_v11 = vmax.f32 %v293_v9, 0.0  ;;  %v408_v15 = vpack.c.bf16 %v384_v8, %v383_v12 }
 0x102   :  { %v3444_v13 = vpop.f32.mrf.mxu0 }
 0x103   :  { %v407_v14 = vpack.c.bf16 %v382_v11, %v381_v10  ;;  %v387_v22 = vmax.f32 %v3444_v13, 0.0  ;;  %3563 = vmatpush3.bf16.msra.mxu1 %v3794_v60 }
 0x104   :  { %v306_v16 = vpop.f32.mrf.mxu0  ;;  %3564 = vmatprep.subr.bf16.mxu1 %v3795_v61 }
 0x105   :  { %3486 = vmatprep.mubr.bf16.mxu1 %v407_v14  ;;  %v385_v20 = vmax.f32 %v306_v16, 0.0 }
 0x106   :  { %v3445_v17 = vpop.f32.mrf.mxu0  ;;  %3487 = vmatmul.mubr.bf16.gmra.mxu1 %v408_v15 }
 0x107   :  { %v388_v18 = vmax.f32 %v3445_v17, 0.0  ;;  %3565 = vmatpush3.bf16.msra.mxu1 %v3795_v61 }
 0x108   :  { %v309_v19 = vpop.f32.mrf.mxu0  ;;  %3566 = vmatprep.subr.bf16.mxu1 %v3796_v62 }
 0x109   :  { %v386_v21 = vmax.f32 %v309_v19, 0.0  ;;  %v410_v25 = vpack.c.bf16 %v388_v18, %v387_v22 }
 0x10a   :  { %v3448_v23 = vpop.f32.mrf.mxu0 }
 0x10b   :  { %v409_v24 = vpack.c.bf16 %v386_v21, %v385_v20  ;;  %v391_v27 = vmax.f32 %v3448_v23, 0.0  ;;  %3567 = vmatpush3.bf16.msra.mxu1 %v3796_v62 }
 0x10c   :  { %v322_v26 = vpop.f32.mrf.mxu0 }
 0x10d   :  { %3490 = vmatprep.mubr.bf16.mxu1 %v409_v24  ;;  %v389_v29 = vmax.f32 %v322_v26, 0.0 }
 0x10e   :  { %v3449_v28 = vpop.f32.mrf.mxu0  ;;  %3491 = vmatmul.mubr.bf16.gmra.mxu1 %v410_v25 }
 0x10f   :  { %v392_v30 = vmax.f32 %v3449_v28, 0.0 }
 0x110   :  { %v325_v31 = vpop.f32.mrf.mxu0 }
 0x111   :  { %v390_v32 = vmax.f32 %v325_v31, 0.0  ;;  %v412_v33 = vpack.c.bf16 %v392_v30, %v391_v27 }
 0x112   :  { %v3452_v34 = vpop.f32.mrf.mxu0 }
 0x113   :  { %v411_v35 = vpack.c.bf16 %v390_v32, %v389_v29  ;;  %v395_v37 = vmax.f32 %v3452_v34, 0.0 }
 0x114   :  { %v338_v36 = vpop.f32.mrf.mxu0 }
 0x115   :  { %3494 = vmatprep.mubr.bf16.mxu1 %v411_v35  ;;  %v393_v39 = vmax.f32 %v338_v36, 0.0 }
 0x116   :  { %v3453_v38 = vpop.f32.mrf.mxu0  ;;  %3495 = vmatmul.mubr.bf16.gmra.mxu1 %v412_v33 }
 0x117   :  { %v396_v40 = vmax.f32 %v3453_v38, 0.0 }
 0x118   :  { %v341_v41 = vpop.f32.mrf.mxu0 }
 0x119   :  { %v394_v42 = vmax.f32 %v341_v41, 0.0  ;;  %v414_v43 = vpack.c.bf16 %v396_v40, %v395_v37 }
 0x11a   :  { %v3456_v44 = vpop.f32.mrf.mxu0 }
 0x11b   :  { %v413_v45 = vpack.c.bf16 %v394_v42, %v393_v39  ;;  %v399_v47 = vmax.f32 %v3456_v44, 0.0 }
 0x11c   :  { %v354_v46 = vpop.f32.mrf.mxu0 }
 0x11d   :  { %3498 = vmatprep.mubr.bf16.mxu1 %v413_v45  ;;  %v397_v49 = vmax.f32 %v354_v46, 0.0 }
 0x11e   :  { %v3457_v48 = vpop.f32.mrf.mxu0  ;;  %3499 = vmatmul.mubr.bf16.gmra.mxu1 %v414_v43 }
 0x11f   :  { %v400_v50 = vmax.f32 %v3457_v48, 0.0 }
 0x120   :  { %v357_v51 = vpop.f32.mrf.mxu0 }
 0x121   :  { %v398_v52 = vmax.f32 %v357_v51, 0.0  ;;  %v416_v53 = vpack.c.bf16 %v400_v50, %v399_v47 }
 0x123   :  { %v415_v54 = vpack.c.bf16 %v398_v52, %v397_v49 }
 0x125   :  { %3502 = vmatprep.mubr.bf16.mxu1 %v415_v54 }
 0x126   :  { %3503 = vmatmul.mubr.bf16.gmra.mxu1 %v416_v53 }
 0x1ae   :  { %v3476_v63 = vpop.f32.mrf.mxu1 }
 0x1af   :  { %v645_v6 = vmax.f32 %v3476_v63, 0.0 }
 0x1b0   :  { %v516_v0 = vpop.f32.mrf.mxu1 }
 0x1b1   :  { %v643_v4 = vmax.f32 %v516_v0, 0.0 }
 0x1b2   :  { %v3477_v1 = vpop.f32.mrf.mxu1 }
 0x1b3   :  { %v646_v2 = vmax.f32 %v3477_v1, 0.0 }
 0x1b4   :  { %v519_v3 = vpop.f32.mrf.mxu1 }
 0x1b5   :  { %v644_v5 = vmax.f32 %v519_v3, 0.0  ;;  %v676_v9 = vpack.c.bf16 %v646_v2, %v645_v6 }
 0x1b6   :  { %v3480_v7 = vpop.f32.mrf.mxu1 }
 0x1b7   :  { %v675_v8 = vpack.c.bf16 %v644_v5, %v643_v4  ;;  %v649_v16 = vmax.f32 %v3480_v7, 0.0 }
 0x1b8   :  { %v532_v10 = vpop.f32.mrf.mxu1 }
 0x1b9   :  { %3522 = vmatprep.mubr.bf16.mxu0 %v675_v8  ;;  %v647_v14 = vmax.f32 %v532_v10, 0.0 }
 0x1ba   :  { %v3481_v11 = vpop.f32.mrf.mxu1  ;;  %3523 = vmatmul.mubr.bf16.vlgmr.msra.gmra.mxu0 %v676_v9 }
 0x1bb   :  { %v650_v12 = vmax.f32 %v3481_v11, 0.0 }
 0x1bc   :  { %v535_v13 = vpop.f32.mrf.mxu1 }
 0x1bd   :  { %v648_v15 = vmax.f32 %v535_v13, 0.0  ;;  %v678_v19 = vpack.c.bf16 %v650_v12, %v649_v16  ;;  %v5817_v16 = vmov 1  }
 0x1be   :  { %v3484_v17 = vpop.f32.mrf.mxu1  ;;  %3617 = vset.pattern.permute.xlu0 %v5817_v16 }
 0x1bf   :  { %v677_v18 = vpack.c.bf16 %v648_v15, %v647_v14  ;;  %v653_v26 = vmax.f32 %v3484_v17, 0.0  ;;  %v3797_v15 = vld [vmem:[%s5807_s2 + $0xc0] sm:$0xff]   ;;  %v5821_v17 = vmov 0   ;;  %s3940_s2 = smov 125  }
 0x1c0   :  { %v548_v20 = vpop.f32.mrf.mxu1  ;;  %3568 = vmatprep.subr.bf16.mxu1 %v3797_v15  ;;  %3611 = vset.pattern.permute.xlu1 %v5821_v17 }
 0x1c1   :  { %3526 = vmatprep.mubr.bf16.mxu0 %v677_v18  ;;  %v651_v24 = vmax.f32 %v548_v20, 0.0  ;;  %3569 = vmatpush3.bf16.msra.mxu1 %v3797_v15 }
 0x1c2   :  { %v3485_v21 = vpop.f32.mrf.mxu1  ;;  %3527 = vmatmul.mubr.bf16.gmra.mxu0 %v678_v19 }
 0x1c3   :  { %v654_v22 = vmax.f32 %v3485_v21, 0.0  ;;  %v5809_v21 = vmov 0.0  }
 0x1c4   :  { %v551_v23 = vpop.f32.mrf.mxu1 }
 0x1c5   :  { %v652_v25 = vmax.f32 %v551_v23, 0.0  ;;  %v680_v29 = vpack.c.bf16 %v654_v22, %v653_v26 }
 0x1c6   :  { %v3488_v27 = vpop.f32.mrf.mxu1 }
 0x1c7   :  { %v679_v28 = vpack.c.bf16 %v652_v25, %v651_v24  ;;  %v657_v36 = vmax.f32 %v3488_v27, 0.0 }
 0x1c8   :  { %v564_v30 = vpop.f32.mrf.mxu1 }
 0x1c9   :  { %3530 = vmatprep.mubr.bf16.mxu0 %v679_v28  ;;  %v655_v34 = vmax.f32 %v564_v30, 0.0 }
 0x1ca   :  { %v3489_v31 = vpop.f32.mrf.mxu1  ;;  %3531 = vmatmul.mubr.bf16.gmra.mxu0 %v680_v29 }
 0x1cb   :  { %v658_v32 = vmax.f32 %v3489_v31, 0.0 }
 0x1cc   :  { %v567_v33 = vpop.f32.mrf.mxu1 }
 0x1cd   :  { %v656_v35 = vmax.f32 %v567_v33, 0.0  ;;  %v682_v39 = vpack.c.bf16 %v658_v32, %v657_v36 }
 0x1ce   :  { %v3492_v37 = vpop.f32.mrf.mxu1 }
 0x1cf   :  { %v681_v38 = vpack.c.bf16 %v656_v35, %v655_v34  ;;  %v661_v46 = vmax.f32 %v3492_v37, 0.0  ;;  %v3939_v37 = vmov 2  }
 0x1d0   :  { %v580_v40 = vpop.f32.mrf.mxu1 }
 0x1d1   :  { %3534 = vmatprep.mubr.bf16.mxu0 %v681_v38  ;;  %v659_v44 = vmax.f32 %v580_v40, 0.0 }
 0x1d2   :  { %v3493_v41 = vpop.f32.mrf.mxu1  ;;  %3535 = vmatmul.mubr.bf16.gmra.mxu0 %v682_v39 }
 0x1d3   :  { %v662_v42 = vmax.f32 %v3493_v41, 0.0 }
 0x1d4   :  { %v583_v43 = vpop.f32.mrf.mxu1 }
 0x1d5   :  { %v660_v45 = vmax.f32 %v583_v43, 0.0  ;;  %v684_v49 = vpack.c.bf16 %v662_v42, %v661_v46 }
 0x1d6   :  { %v3496_v47 = vpop.f32.mrf.mxu1 }
 0x1d7   :  { %v683_v48 = vpack.c.bf16 %v660_v45, %v659_v44  ;;  %v665_v51 = vmax.f32 %v3496_v47, 0.0 }
 0x1d8   :  { %v596_v50 = vpop.f32.mrf.mxu1 }
 0x1d9   :  { %3538 = vmatprep.mubr.bf16.mxu0 %v683_v48  ;;  %v663_v53 = vmax.f32 %v596_v50, 0.0 }
 0x1da   :  { %v3497_v52 = vpop.f32.mrf.mxu1  ;;  %3539 = vmatmul.mubr.bf16.gmra.mxu0 %v684_v49 }
 0x1db   :  { %v666_v54 = vmax.f32 %v3497_v52, 0.0 }
 0x1dc   :  { %v599_v55 = vpop.f32.mrf.mxu1 }
 0x1dd   :  { %v664_v56 = vmax.f32 %v599_v55, 0.0  ;;  %v686_v57 = vpack.c.bf16 %v666_v54, %v665_v51 }
 0x1de   :  { %v3500_v58 = vpop.f32.mrf.mxu1 }
 0x1df   :  { %v685_v59 = vpack.c.bf16 %v664_v56, %v663_v53  ;;  %v669_v61 = vmax.f32 %v3500_v58, 0.0 }
 0x1e0   :  { %v612_v60 = vpop.f32.mrf.mxu1 }
 0x1e1   :  { %3542 = vmatprep.mubr.bf16.mxu0 %v685_v59  ;;  %v667_v63 = vmax.f32 %v612_v60, 0.0 }
 0x1e2   :  { %v3501_v62 = vpop.f32.mrf.mxu1  ;;  %3543 = vmatmul.mubr.bf16.gmra.mxu0 %v686_v57 }
 0x1e3   :  { %v670_v0 = vmax.f32 %v3501_v62, 0.0 }
 0x1e4   :  { %v615_v1 = vpop.f32.mrf.mxu1 }
 0x1e5   :  { %v668_v2 = vmax.f32 %v615_v1, 0.0  ;;  %v688_v3 = vpack.c.bf16 %v670_v0, %v669_v61 }
 0x1e6   :  { %v3504_v4 = vpop.f32.mrf.mxu1 }
 0x1e7   :  { %v687_v5 = vpack.c.bf16 %v668_v2, %v667_v63  ;;  %v673_v7 = vmax.f32 %v3504_v4, 0.0 }
 0x1e8   :  { %v628_v6 = vpop.f32.mrf.mxu1 }
 0x1e9   :  { %3546 = vmatprep.mubr.bf16.mxu0 %v687_v5  ;;  %v671_v9 = vmax.f32 %v628_v6, 0.0 }
 0x1ea   :  { %v3505_v8 = vpop.f32.mrf.mxu1  ;;  %3547 = vmatmul.mubr.bf16.gmra.mxu0 %v688_v3 }
 0x1eb   :  { %v674_v10 = vmax.f32 %v3505_v8, 0.0 }
 0x1ec   :  { %v631_v11 = vpop.f32.mrf.mxu1 }
 0x1ed   :  { %v672_v12 = vmax.f32 %v631_v11, 0.0  ;;  %v690_v13 = vpack.c.bf16 %v674_v10, %v673_v7 }
 0x1ef   :  { %v689_v14 = vpack.c.bf16 %v672_v12, %v671_v9 }
 0x1f1   :  { %3550 = vmatprep.mubr.bf16.mxu0 %v689_v14 }
 0x1f2   :  { %3551 = vmatmul.mubr.bf16.gmra.mxu0 %v690_v13 }
 0x27a   :  { %v4109_v18 = vpop.f32.mrf.mxu0 }
 0x27b   :  { %vm1193_vm0 = vcmp.gt.f32.partialorder %v4109_v18, 0.0  ;;  %v919_v29 = vmax.f32 %v4109_v18, 0.0 }
 0x27c   :  { %v4111_v19 = vpop.f32.mrf.mxu0  ;;  %v4118_v22 = vsel %vm1193_vm0, 1.0, %v5809_v21 }
 0x27d   :  { %v917_v26 = vmax.f32 %v4111_v19, 0.0  ;;  %vm1191_vm3 = vcmp.gt.f32.partialorder %v4111_v19, 0.0 }
 0x27e   :  { %v4114_v20 = vpop.f32.mrf.mxu0  ;;  %v4141_v35 = vsel %vm1191_vm3, 1.0, %v5809_v21 }
 0x27f   :  { %vm1194_vm1 = vcmp.gt.f32.partialorder %v4114_v20, 0.0  ;;  %v920_v23 = vmax.f32 %v4114_v20, 0.0 }
 0x280   :  { %v4122_v24 = vsel %vm1194_vm1, 1.0, %v5809_v21  ;;  %v4124_v25 = vpop.f32.mrf.mxu0 }
 0x281   :  { %v918_v27 = vmax.f32 %v4124_v25, 0.0  ;;  %vm1192_vm2 = vcmp.gt.f32.partialorder %v4124_v25, 0.0  ;;  %v3618_v28 = vpack.i.bf16 %v4122_v24, %v4118_v22  ;;  %v950_v32 = vpack.c.bf16 %v920_v23, %v919_v29 }
 0x282   :  { %v4132_v30 = vpop.f32.mrf.mxu0  ;;  %v4136_v33 = vsel %vm1192_vm2, 1.0, %v5809_v21 }
 0x283   :  { %3619 = vperm.xlu0 %3617, %v3618_v28   ;;  %v949_v31 = vpack.c.bf16 %v918_v27, %v917_v26  ;;  %3613 = vperm.xlu1 %3611, %v3618_v28   ;;  %v3636_v38 = vpack.i.bf16 %v4136_v33, %v4141_v35  ;;  %v923_v44 = vmax.f32 %v4132_v30, 0.0  ;;  %vm1197_vm5 = vcmp.gt.f32.partialorder %v4132_v30, 0.0 }
 0x284   :  { %v4138_v34 = vpop.f32.mrf.mxu0  ;;  %v4169_v50 = vsel %vm1197_vm5, 1.0, %v5809_v21 }
 0x285   :  { %3570 = vmatprep.mubr.bf16.mxu1 %v949_v31  ;;  %v921_v40 = vmax.f32 %v4138_v34, 0.0  ;;  %vm1195_vm7 = vcmp.gt.f32.partialorder %v4138_v34, 0.0 }
 0x286   :  { %v4143_v36 = vpop.f32.mrf.mxu0  ;;  %3571 = vmatmul.mubr.bf16.vlgmr.msra.gmra.mxu1 %v950_v32  ;;  %v3235_v60 = vsel %vm1195_vm7, 1.0, %v5809_v21 }
 0x287   :  { %3623 = vset.pattern.permute.xlu0 %v3939_v37  ;;  %3635 = vset.pattern.permute.xlu1 %v5817_v16  ;;  %v924_v41 = vmax.f32 %v4143_v36, 0.0  ;;  %vm1198_vm4 = vcmp.gt.f32.partialorder %v4143_v36, 0.0 }
 0x288   :  { %3625 = vperm.xlu0 %3623, %v3618_v28   ;;  %v4149_v39 = vpop.f32.mrf.mxu0  ;;  %3637 = vperm.xlu1 %3635, %v3636_v38   ;;  %v4163_v47 = vsel %vm1198_vm4, 1.0, %v5809_v21 }
 0x289   :  { %v922_v42 = vmax.f32 %v4149_v39, 0.0  ;;  %v952_v48 = vpack.c.bf16 %v924_v41, %v923_v44  ;;  %vm1196_vm6 = vcmp.gt.f32.partialorder %v4149_v39, 0.0  ;;  %v3654_v52 = vpack.i.bf16 %v4163_v47, %v4169_v50 }
 0x28a   :  { %v4155_v43 = vpop.f32.mrf.mxu0  ;;  %v4182_v56 = vsel %vm1196_vm6, 1.0, %v5809_v21 }
 0x28b   :  { %v951_v45 = vpack.c.bf16 %v922_v42, %v921_v40  ;;  %v927_v58 = vmax.f32 %v4155_v43, 0.0  ;;  %v3665_v62 = vpack.i.bf16 %v4182_v56, %v3235_v60  ;;  %vm1201_vm9 = vcmp.gt.f32.partialorder %v4155_v43, 0.0 }
 0x28c   :  { %3629 = vset.pattern.permute.xlu0 %v5821_v17  ;;  %v4160_v46 = vpop.f32.mrf.mxu0  ;;  %3641 = vset.pattern.permute.xlu1 %v3939_v37  ;;  %v4204_v3 = vsel %vm1201_vm9, 1.0, %v5809_v21 }
 0x28d   :  { %3631 = vperm.xlu0 %3629, %v3636_v38   ;;  %3643 = vperm.xlu1 %3641, %v3636_v38   ;;  %v925_v53 = vmax.f32 %v4160_v46, 0.0  ;;  %vm1199_vm11 = vcmp.gt.f32.partialorder %v4160_v46, 0.0 }
 0x28e   :  { %3574 = vmatprep.mubr.bf16.mxu1 %v951_v45  ;;  %v4166_v49 = vpop.f32.mrf.mxu0  ;;  %v4229_v14 = vsel %vm1199_vm11, 1.0, %v5809_v21 }
 0x28f   :  { %3575 = vmatmul.mubr.bf16.gmra.mxu1 %v952_v48  ;;  %v928_v54 = vmax.f32 %v4166_v49, 0.0  ;;  %vm1202_vm8 = vcmp.gt.f32.partialorder %v4166_v49, 0.0 }
 0x290   :  { %v4173_v51 = vpop.f32.mrf.mxu0  ;;  %v4198_v1 = vsel %vm1202_vm8, 1.0, %v5809_v21 }
 0x291   :  { %v926_v55 = vmax.f32 %v4173_v51, 0.0  ;;  %3653 = vset.pattern.permute.xlu0 %v5817_v16  ;;  %3647 = vset.pattern.permute.xlu1 %v5821_v17  ;;  %v954_v63 = vpack.c.bf16 %v928_v54, %v927_v58  ;;  %vm1200_vm10 = vcmp.gt.f32.partialorder %v4173_v51, 0.0  ;;  %v4214_v8 = vpack.i.bf16 %v4198_v1, %v4204_v3 }
 0x292   :  { %3655 = vperm.xlu0 %3653, %v3654_v52   ;;  %v4185_v57 = vpop.f32.mrf.mxu0  ;;  %3649 = vperm.xlu1 %3647, %v3654_v52   ;;  %v4217_v9 = vsel %vm1200_vm10, 1.0, %v5809_v21 }
 0x293   :  { %v953_v59 = vpack.c.bf16 %v926_v55, %v925_v53  ;;  %v931_v10 = vmax.f32 %v4185_v57, 0.0  ;;  %vm1205_vm13 = vcmp.gt.f32.partialorder %v4185_v57, 0.0 }
 0x294   :  { %v4190_v61 = vpop.f32.mrf.mxu0 }
 0x295   :  { %3578 = vmatprep.mubr.bf16.mxu1 %v953_v59  ;;  %v929_v6 = vmax.f32 %v4190_v61, 0.0  ;;  %vm1203_vm15 = vcmp.gt.f32.partialorder %v4190_v61, 0.0 }
 0x296   :  { %3659 = vset.pattern.permute.xlu0 %v3939_v37  ;;  %v4195_v0 = vpop.f32.mrf.mxu0  ;;  %3666 = vperm.xlu1 %3647, %v3665_v62  }
 0x297   :  { %3579 = vmatmul.mubr.bf16.gmra.mxu1 %v954_v63  ;;  %3661 = vperm.xlu0 %3659, %v3654_v52   ;;  %v932_v4 = vmax.f32 %v4195_v0, 0.0  ;;  %vm1206_vm12 = vcmp.gt.f32.partialorder %v4195_v0, 0.0 }
 0x298   :  { %v4201_v2 = vpop.f32.mrf.mxu0  ;;  %v4248_v28 = vsel %vm1206_vm12, 1.0, %v5809_v21 }
 0x299   :  { %v930_v5 = vmax.f32 %v4201_v2, 0.0  ;;  %v956_v23 = vpack.c.bf16 %v932_v4, %v931_v10  ;;  %vm1204_vm14 = vcmp.gt.f32.partialorder %v4201_v2, 0.0 }
 0x29a   :  { %v4210_v7 = vpop.f32.mrf.mxu0  ;;  %3670 = vset.pattern.permute.xlu1 %v5817_v16  ;;  %v4304_v55 = vsel %vm1204_vm14, 1.0, %v5809_v21 }
 0x29b   :  { %v4223_v11 = vmul.f32 %v4210_v7, %v4118_v22  ;;  %3672 = vperm.xlu1 %3670, %v3665_v62   ;;  %3695 = vperm.xlu0 %3659, %v4214_v8   ;;  %v955_v13 = vpack.c.bf16 %v930_v5, %v929_v6  ;;  %v4240_v22 = vpack.i.bf16 %v4217_v9, %v4229_v14  ;;  %v5812_v41 = vmax.f32 %v4210_v7, 0.0 }
 0x29c   :  { %v4226_v12 = vpop.f32.mrf.mxu0  ;;  %v1273_v53 = vand.u32 2147483647, %v4210_v7  ;;  %v3243_v5 = vsel %vm1203_vm15, 1.0, %v5809_v21  ;;  %vm1399_vm15 = vcmask 23552  }
 0x29d   :  { %v4234_v15 = vmul.f32 %v4141_v35, %v4226_v12  ;;  %3582 = vmatprep.mubr.bf16.mxu1 %v955_v13  ;;  %v5816_v38 = vmax.f32 %v4226_v12, 0.0  ;;  %v1271_v6 = vand.u32 2147483647, %v4226_v12 }
 0x29e   :  { %v4236_v26 = vpop.f32.mrf.mxu0 }
 0x29f   :  { %v4245_v27 = vmul.f32 %v4236_v26, %v4122_v24  ;;  %3583 = vmatmul.mubr.bf16.gmra.mxu1 %v956_v23  ;;  %3676 = vset.pattern.permute.xlu1 %v3939_v37  ;;  %v5811_v31 = vmax.f32 %v4236_v26, 0.0  ;;  %v4261_v24 = vsel %vm1205_vm13, 1.0, %v5809_v21  ;;  %v1289_v23 = vsub.f32 0.0, %v1273_v53 }
 0x2a0   :  { %3712 = vperm.xlu0 %3659, %v4240_v22   ;;  %v4252_v29 = vpop.f32.mrf.mxu0  ;;  %3678 = vperm.xlu1 %3676, %v3665_v62   ;;  %v4273_v44 = vpack.i.bf16 %v4248_v28, %v4261_v24  ;;  %v1274_v21 = vand.u32 2147483647, %v4236_v26 }
 0x2a1   :  { %v5815_v32 = vmax.f32 %v4252_v29, 0.0  ;;  %v4258_v35 = vmul.f32 %v4136_v33, %v4252_v29  ;;  %v1450_v33 = vsub.f32 %v4210_v7, %v4109_v18  ;;  %v958_v18 = vpack.c.bf16 %v5811_v31, %v5812_v41 }
 0x2a2   :  { %v4264_v40 = vpop.f32.mrf.mxu0  ;;  %v1272_v53 = vand.u32 2147483647, %v4252_v29 }
 0x2a3   :  { %v4269_v42 = vmul.f32 %v4264_v40, %v4169_v50  ;;  %v957_v48 = vpack.c.bf16 %v5815_v32, %v5816_v38  ;;  %v1782_v59 = vand.u32 2147483647, %v1450_v33  ;;  %v5814_v62 = vmax.f32 %v4264_v40, 0.0 }
 0x2a4   :  { %3722 = vset.pattern.permute.xlu0 %v5817_v16  ;;  %v4278_v45 = vpop.f32.mrf.mxu0  ;;  %3682 = vset.pattern.permute.xlu1 %v5821_v17  ;;  %v1277_v31 = vand.u32 2147483647, %v4264_v40 }
 0x2a5   :  { %3724 = vperm.xlu0 %3722, %v4273_v44   ;;  %v4288_v50 = vmul.f32 %v3235_v60, %v4278_v45  ;;  %3684 = vperm.xlu1 %3682, %v4214_v8   ;;  %v1814_v60 = vmul.f32 4.5, %v1450_v33  ;;  %v5820_v10 = vmax.f32 %v4278_v45, 0.0  ;;  %vm4353_vm0 = vcmp.lt.f32.partialorder %v1782_v59, 0.11111111 }
 0x2a6   :  { %3586 = vmatprep.mubr.bf16.mxu1 %v957_v48  ;;  %v4295_v52 = vpop.f32.mrf.mxu0 }
 0x2a7   :  { %v4301_v54 = vmul.f32 %v4295_v52, %v4163_v47  ;;  %3587 = vmatmul.mubr.bf16.gmra.mxu1 %v958_v18  ;;  %v5813_v63 = vmax.f32 %v4295_v52, 0.0  ;;  %v1448_v18 = vsub.f32 %v4226_v12, %v4111_v19  ;;  %v1287_v19 = vsub.f32 0.0, %v1271_v6 }
 0x2a8   :  { %v4306_v58 = vpop.f32.mrf.mxu0  ;;  %v1293_v6 = vsub.f32 0.0, %v1277_v31  ;;  %v4377_v31 = vsub.f32 %v4236_v26, %v4114_v20 }
 0x2a9   :  { %3728 = vset.pattern.permute.xlu0 %v3939_v37  ;;  %v5819_v4 = vmax.f32 %v4306_v58, 0.0  ;;  %v4314_v47 = vmul.f32 %v4182_v56, %v4306_v58  ;;  %3688 = vset.pattern.permute.xlu1 %v5817_v16  ;;  %v4329_v56 = vpack.i.bf16 %v4304_v55, %v3243_v5  ;;  %v960_v48 = vpack.c.bf16 %v5813_v63, %v5814_v62 }
 0x2aa   :  { %3730 = vperm.xlu0 %3728, %v4273_v44   ;;  %v4321_v13 = vpop.f32.mrf.mxu0  ;;  %3690 = vperm.xlu1 %3688, %v4214_v8   ;;  %v1830_v63 = vmul.f32 %v1814_v60, %v1450_v33  ;;  %v3252_v62 = vadd.f32 -0.055555556, %v1782_v59  ;;  %v1307_v16 = vmul.f32 1.442695, %v1289_v23  ;;  %v1288_v33 = vsub.f32 0.0, %v1272_v53 }
 0x2ab   :  { %v4326_v37 = vmul.f32 %v4321_v13, %v4204_v3  ;;  %v959_v3 = vpack.c.bf16 %v5819_v4, %v5820_v10  ;;  %v1303_v10 = vmul.f32 1.442695, %v1287_v19  ;;  %v1449_v53 = vsub.f32 %v4252_v29, %v4124_v25 }
 0x2ac   :  { %v4339_v8 = vpop.f32.mrf.mxu0  ;;  %v1862_v23 = vsel %vm4353_vm0, %v1830_v63, %v3252_v62  ;;  %3798 = vpow2.f32 %v1307_v16  ;;  %v1305_v63 = vmul.f32 1.442695, %v1288_v33  ;;  %v5864_v19 = vmov 1  }
 0x2ad   :  { %v4348_v41 = vmul.f32 %v4229_v14, %v4339_v8  ;;  %3590 = vmatprep.mubr.bf16.mxu1 %v959_v3  ;;  %v1290_v14 = vsub.f32 0.0, %v1274_v21  ;;  %v1780_v3 = vand.u32 2147483647, %v1448_v18  ;;  %v5822_v20 = vmax.f32 %v4339_v8, 0.0 }
 0x2ae   :  { %3746 = vperm.xlu0 %3728, %v4329_v56   ;;  %v4351_v32 = vpop.f32.mrf.mxu0  ;;  %3699 = vset.pattern.permute.xlu1 %v5821_v17  ;;  %v1315_v17 = vmul.f32 1.442695, %v1293_v6  ;;  %3800 = vpow2.f32 %v1303_v10  ;;  %v1278_v25 = vand.u32 2147483647, %v4295_v52  ;;  %v5823_v6 = vmax.f32 %v4321_v13, 0.0 }
 0x2af   :  { %v4360_v4 = vmul.f32 %v4351_v32, %v4198_v1  ;;  %3591 = vmatmul.mubr.bf16.gmra.mxu1 %v960_v48  ;;  %3701 = vperm.xlu1 %3699, %v4240_v22   ;;  %v1275_v1 = vand.u32 2147483647, %v4278_v45  ;;  %v1812_v48 = vmul.f32 4.5, %v1448_v18  ;;  %v1309_v62 = vmul.f32 1.442695, %v1290_v14 }
 0x2b0   :  { %v4363_v60 = vpop.f32.mrf.mxu0  ;;  %vm4394_vm1 = vcmp.lt.f32.partialorder %v1780_v3, 0.11111111  ;;  %v3250_v33 = vadd.f32 -0.055555556, %v1780_v3  ;;  %v4411_v10 = vsub.f32 %v4278_v45, %v4138_v34 }
 0x2b1   :  { %v4367_v59 = vmul.f32 %v4217_v9, %v4363_v60  ;;  %v1828_v16 = vmul.f32 %v1812_v48, %v1448_v18  ;;  %v1291_v14 = vsub.f32 0.0, %v1275_v1  ;;  %v1454_v18 = vsub.f32 %v4264_v40, %v4132_v30 }
 0x2b2   :  { %1896 = vrot.lane.b32.xlu0 %v1862_v23, %s3940_s2  ;;  %v4373_v21 = vpop.f32.mrf.mxu0  ;;  %3802 = vpow2.f32 %v1309_v62  ;;  %v5869_v62 = vmax.f32 %v4351_v32, 0.0 }
 0x2b3   :  { %5863 = vst [vmem:[#allocation5_spill] sm:$0xff] %v4367_v59  ;;  %v4382_v38 = vmul.f32 %v4373_v21, %v4261_v24  ;;  %3705 = vset.pattern.permute.xlu1 %v5864_v19  ;;  %v1860_v3 = vsel %vm4394_vm1, %v1828_v16, %v3250_v33  ;;  %3804 = vpow2.f32 %v1305_v63  ;;  %v1294_v24 = vsub.f32 0.0, %v1278_v25 }
 0x2b4   :  { %v4387_v23 = vpop.f32.mrf.mxu0  ;;  %3707 = vperm.xlu1 %3705, %v4240_v22   ;;  %v1455_v22 = vsub.f32 %v4295_v52, %v4143_v36  ;;  %v962_v16 = vpack.c.bf16 %v5869_v62, %v5823_v6  ;;  %3806 = vpow2.f32 %v1315_v17  ;;  %v5870_v33 = vmov 0  }
 0x2b5   :  { %v4392_v9 = vmul.f32 %v3243_v5, %v4387_v23  ;;  %v5867_v5 = vmax.f32 %v4363_v60, 0.0  ;;  %v1276_v63 = vand.u32 2147483647, %v4306_v58  ;;  %v5825_v17 = vmax.f32 %v4387_v23, 0.0 }
 0x2b6   :  { %v4399_v59 = vpop.f32.mrf.mxu0  ;;  %1892 = vrot.lane.b32.xlu0 %v1860_v3, %s3940_s2  ;;  %v1818_v25 = vmul.f32 4.5, %v1454_v18 }
 0x2b7   :  { %v961_v48 = vpack.c.bf16 %v5867_v5, %v5822_v20  ;;  %v4417_v30 = vmul.f32 %v4399_v59, %v4248_v28  ;;  %v4426_v34 = vsub.f32 %v4399_v59, %v4195_v0  ;;  %v1311_v28 = vmul.f32 1.442695, %v1291_v14 }
 0x2b8   :  { %v4419_v1 = vpop.f32.mrf.mxu0  ;;  %3716 = vset.pattern.permute.xlu1 %v5870_v33  ;;  %v1781_v5 = vand.u32 2147483647, %v1449_v53  ;;  %v1786_v14 = vand.u32 2147483647, %v1454_v18  ;;  %v1281_v20 = vand.u32 2147483647, %v4321_v13  ;;  %v1834_v6 = vmul.f32 %v1818_v25, %v1454_v18 }
 0x2b9   :  { %3594 = vmatprep.mubr.bf16.mxu1 %v961_v48  ;;  %5868 = vst [vmem:[#allocation6_spill] sm:$0xff] %v4426_v34  ;;  %v4435_v36 = vmul.f32 %v4304_v55, %v4419_v1  ;;  %3718 = vperm.xlu1 %3716, %v4273_v44   ;;  %v1813_v48 = vmul.f32 4.5, %v1449_v53  ;;  %v1456_v44 = vsub.f32 %v4339_v8, %v4160_v46  ;;  %v5872_v62 = vmax.f32 %v4419_v1, 0.0  ;;  %v4459_v34 = vpop.eup %3798 }
 0x2ba   :  { %3595 = vmatmul.mubr.bf16.gmra.mxu1 %v962_v16  ;;  %vm1797_vm2 = vcmp.lt.f32.partialorder %v1781_v5, 0.11111111  ;;  %v3251_v33 = vadd.f32 -0.055555556, %v1781_v5  ;;  %v4445_v16 = vsub.f32 %v4306_v58, %v4149_v39  ;;  %v3256_v0 = vadd.f32 -0.055555556, %v1786_v14 }
 0x2bb   :  { %5871 = vst [vmem:[#allocation7_spill] sm:$0xff] %v4435_v36  ;;  %v1829_v55 = vmul.f32 %v1813_v48, %v1449_v53  ;;  %v963_v53 = vpack.c.bf16 %v5872_v62, %v5825_v17  ;;  %v5873_v5 = vmax.f32 %v4373_v21, 0.0  ;;  %v5874_v39 = vmax.f32 %v4399_v59, 0.0  ;;  %5875 = vst [vmem:[#allocation8_spill] sm:$0xff] %v4459_v34 }
 0x2bc   :  { %v1459_v46 = vsub.f32 %v4351_v32, %v4166_v49  ;;  %vm4464_vm3 = vcmp.lt.f32.partialorder %v1786_v14, 0.11111111  ;;  %v1787_v25 = vand.u32 2147483647, %v1455_v22  ;;  %v1462_v62 = vsub.f32 %v4373_v21, %v4185_v57  ;;  %v4474_v14 = vpop.eup %3800 }
 0x2bd   :  { %v1861_v3 = vsel %vm1797_vm2, %v1829_v55, %v3251_v33  ;;  %3735 = vperm.xlu1 %3716, %v4329_v56   ;;  %v964_v48 = vpack.c.bf16 %v5874_v39, %v5873_v5  ;;  %v1819_v55 = vmul.f32 4.5, %v1455_v22  ;;  %v4468_v33 = vmul.f32 1.442695, %v1294_v24  ;;  %3598 = vmatprep.mubr.bf16.mxu1 %v963_v53  ;;  %5878 = vst [vmem:[#allocation9_spill] sm:$0xff] %v4474_v14 }
 0x2be   :  { %1894 = vrot.lane.b32.xlu0 %v1861_v3, %s3940_s2  ;;  %v1783_v5 = vand.u32 2147483647, %v4377_v31  ;;  %v1815_v39 = vmul.f32 4.5, %v4377_v31  ;;  %v3257_v49 = vadd.f32 -0.055555556, %v1787_v25  ;;  %v1820_v3 = vmul.f32 4.5, %v1456_v44 }
 0x2bf   :  { %v1835_v17 = vmul.f32 %v1819_v55, %v1455_v22  ;;  %v1788_v34 = vand.u32 2147483647, %v1456_v44  ;;  %v1866_v36 = vsel %vm4464_vm3, %v1834_v6, %v3256_v0  ;;  %vm4479_vm4 = vcmp.lt.f32.partialorder %v1787_v25, 0.11111111 }
 0x2c0   :  { %vm4483_vm5 = vcmp.lt.f32.partialorder %v1783_v5, 0.11111111  ;;  %v1831_v22 = vmul.f32 %v1815_v39, %v4377_v31  ;;  %3808 = vpow2.f32 %v1311_v28  ;;  %v3253_v53 = vadd.f32 -0.055555556, %v1783_v5 }
 0x2c1   :  { %3739 = vset.pattern.permute.xlu1 %v5864_v19  ;;  %v1791_v6 = vand.u32 2147483647, %v1459_v46  ;;  %v1823_v0 = vmul.f32 4.5, %v1459_v46  ;;  %v4492_v19 = vsub.f32 0.0, %v1276_v63  ;;  %v1458_v18 = vsub.f32 %v4321_v13, %v4155_v43 }
 0x2c2   :  { %3599 = vmatmul.mubr.bf16.gmra.mxu1 %v964_v48  ;;  %1904 = vrot.lane.b32.xlu0 %v1866_v36, %s3940_s2  ;;  %v4490_v48 = vpop.eup %3802  ;;  %v1784_v25 = vand.u32 2147483647, %v4411_v10  ;;  %v1816_v55 = vmul.f32 4.5, %v4411_v10  ;;  %v1867_v28 = vsel %vm4479_vm4, %v1835_v17, %v3257_v49  ;;  %vm4502_vm6 = vcmp.lt.f32.partialorder %v1788_v34, 0.11111111 }
 0x2c3   :  { %3741 = vperm.xlu1 %3739, %v4329_v56   ;;  %5883 = vst [vmem:[#allocation10_spill] sm:$0xff] %v4490_v48  ;;  %v4498_v31 = vpop.eup %3804  ;;  %v1836_v36 = vmul.f32 %v1820_v3, %v1456_v44  ;;  %v3258_v5 = vadd.f32 -0.055555556, %v1788_v34  ;;  %v1863_v43 = vsel %vm4483_vm5, %v1831_v22, %v3253_v53  ;;  %v1794_v14 = vand.u32 2147483647, %v1462_v62 }
 0x2c4   :  { %v4506_v63 = vpop.eup %3806  ;;  %v1832_v39 = vmul.f32 %v1816_v55, %v4411_v10  ;;  %v3254_v48 = vadd.f32 -0.055555556, %v1784_v25  ;;  %v1839_v17 = vmul.f32 %v1823_v0, %v1459_v46  ;;  %v3261_v49 = vadd.f32 -0.055555556, %v1791_v6 }
 0x2c5   :  { %vm4513_vm7 = vcmp.lt.f32.partialorder %v1784_v25, 0.11111111  ;;  %v1785_v34 = vand.u32 2147483647, %v4445_v16  ;;  %v1460_v44 = vsub.f32 %v4387_v23, %v4190_v61  ;;  %vm4520_vm8 = vcmp.lt.f32.partialorder %v1791_v6, 0.11111111 }
 0x2c6   :  { %1906 = vrot.lane.b32.xlu0 %v1867_v28, %s3940_s2  ;;  %v1826_v10 = vmul.f32 4.5, %v1462_v62  ;;  %v1817_v57 = vmul.f32 4.5, %v4445_v16  ;;  %v4525_v22 = vsub.f32 0.0, %v1281_v20  ;;  %v1457_v46 = vsub.f32 %v4363_v60, %v4173_v51 }
 0x2c7   :  { %1898 = vrot.lane.b32.xlu1 %v1863_v43, %s3940_s2  ;;  %v4531_v53 = vsub.f32 %v4419_v1, %v4201_v2  ;;  %v1790_v0 = vand.u32 2147483647, %v1458_v18  ;;  %v1868_v61 = vsel %vm4502_vm6, %v1836_v36, %v3258_v5  ;;  %v1864_v6 = vsel %vm4513_vm7, %v1832_v39, %v3254_v48 }
 0x2c8   :  { %v1833_v25 = vmul.f32 %v1817_v57, %v4445_v16  ;;  %v3255_v55 = vadd.f32 -0.055555556, %v1785_v34  ;;  %v1871_v20 = vsel %vm4520_vm8, %v1839_v17, %v3261_v49  ;;  %vm4542_vm9 = vcmp.lt.f32.partialorder %v1794_v14, 0.11111111 }
 0x2c9   :  { %vm4546_vm10 = vcmp.lt.f32.partialorder %v1785_v34, 0.11111111  ;;  %v1822_v28 = vmul.f32 4.5, %v1458_v18  ;;  %v1842_v48 = vmul.f32 %v1826_v10, %v1462_v62  ;;  %v3264_v56 = vadd.f32 -0.055555556, %v1794_v14 }
 0x2ca   :  { %1908 = vrot.lane.b32.xlu0 %v1868_v61, %s3940_s2  ;;  %v1792_v16 = vand.u32 2147483647, %v1460_v44  ;;  %v1824_v36 = vmul.f32 4.5, %v1460_v44  ;;  %vm4550_vm11 = vcmp.lt.f32.partialorder %v1790_v0, 0.11111111  ;;  %v5896_v17 = vmax.f32 %v4226_v12, 0.0 }
 0x2cb   :  { %1900 = vrot.lane.b32.xlu1 %v1864_v6, %s3940_s2  ;;  %v1838_v43 = vmul.f32 %v1822_v28, %v1458_v18  ;;  %v3260_v39 = vadd.f32 -0.055555556, %v1790_v0  ;;  %v1865_v24 = vsel %vm4546_vm10, %v1833_v25, %v3255_v55  ;;  %v1789_v34 = vand.u32 2147483647, %v1457_v46 }
 0x2cc   :  { %v4557_v49 = vsub.f32 %v5896_v17, %v4234_v15  ;;  %v1821_v3 = vmul.f32 4.5, %v1457_v46  ;;  %v5897_v62 = vmax.f32 %v4252_v29, 0.0  ;;  %3810 = vpow2.f32 %v4468_v33 }
 0x2cd   :  { %v1279_v18 = vand.u32 2147483647, %v4339_v8  ;;  %v1282_v10 = vand.u32 2147483647, %v4351_v32  ;;  %v1825_v12 = vmul.f32 4.5, %v4531_v53  ;;  %v4572_v15 = vpop.eup %3808  ;;  %v1840_v29 = vmul.f32 %v1824_v36, %v1460_v44 }
 0x2ce   :  { %v4564_v14 = vsub.f32 %v5897_v62, %v4258_v35  ;;  %1914 = vrot.lane.b32.xlu0 %v1871_v20, %s3940_s2  ;;  %vm4574_vm12 = vcmp.lt.f32.partialorder %v1792_v16, 0.11111111  ;;  %v3262_v35 = vadd.f32 -0.055555556, %v1792_v16  ;;  %v5900_v33 = vmax.f32 %v4210_v7, 0.0 }
 0x2cf   :  { %1902 = vrot.lane.b32.xlu1 %v1865_v24, %s3940_s2  ;;  %v1874_v61 = vsel %vm4542_vm9, %v1842_v48, %v3264_v56  ;;  %v1870_v6 = vsel %vm4550_vm11, %v1838_v43, %v3260_v39  ;;  %v1793_v25 = vand.u32 2147483647, %v4531_v53  ;;  %v5901_v55 = vmax.f32 %v4264_v40, 0.0 }
 0x2d0   :  { %v4581_v0 = vsub.f32 %v5900_v33, %v4223_v11  ;;  %v1837_v44 = vmul.f32 %v1821_v3, %v1457_v46  ;;  %v3259_v2 = vadd.f32 -0.055555556, %v1789_v34  ;;  %v5902_v7 = vmax.f32 %v4236_v26, 0.0 }
 0x2d1   :  { %v4591_v20 = vsub.f32 %v5901_v55, %v4269_v42  ;;  %v5903_v51 = vmax.f32 %v4278_v45, 0.0  ;;  %v1313_v48 = vmul.f32 1.442695, %v4492_v19  ;;  %v1280_v56 = vand.u32 2147483647, %v4363_v60 }
 0x2d2   :  { %v4596_v11 = vsub.f32 %v5902_v7, %v4245_v27  ;;  %1920 = vrot.lane.b32.xlu0 %v1874_v61, %s3940_s2  ;;  %vm4607_vm13 = vcmp.lt.f32.partialorder %v1789_v34, 0.11111111  ;;  %v5906_v26 = vmax.f32 %v4295_v52, 0.0  ;;  %v1295_v42 = vsub.f32 0.0, %v1279_v18 }
 0x2d3   :  { %v4601_v28 = vsub.f32 %v5903_v51, %v4288_v50  ;;  %1912 = vrot.lane.b32.xlu1 %v1870_v6, %s3940_s2  ;;  %v1285_v45 = vand.u32 2147483647, %v4373_v21  ;;  %v5907_v50 = vmax.f32 %v4321_v13, 0.0  ;;  %v5908_v46 = vmax.f32 %v4306_v58, 0.0  ;;  %v5920_v6 = vld [vmem:[#allocation9_spill] sm:$0xff] }
 0x2d4   :  { %v4614_v27 = vsub.f32 %v5906_v26, %v4301_v54  ;;  %v1298_v36 = vsub.f32 0.0, %v1282_v10  ;;  %v1872_v5 = vsel %vm4574_vm12, %v1840_v29, %v3262_v35  ;;  %v1841_v52 = vmul.f32 %v1825_v12, %v4531_v53  ;;  %v5918_v12 = vld [vmem:[#allocation7_spill] sm:$0xff] }
 0x2d5   :  { %v4620_v19 = vsub.f32 %v5907_v50, %v4326_v37  ;;  %v4625_v16 = vsub.f32 %v5908_v46, %v4314_v47  ;;  %v5909_v54 = vmax.f32 %v4339_v8, 0.0  ;;  %v3263_v39 = vadd.f32 -0.055555556, %v1793_v25  ;;  %v5914_v8 = vld [vmem:[#allocation5_spill] sm:$0xff] }
 0x2d6   :  { %v1869_v13 = vsel %vm4607_vm13, %v1837_v44, %v3259_v2  ;;  %v5910_v58 = vmax.f32 %v4351_v32, 0.0  ;;  %v5911_v37 = vmax.f32 %v4373_v21, 0.0  ;;  %v1296_v53 = vsub.f32 0.0, %v1280_v56  ;;  %1916 = vrot.lane.b32.xlu0 %v1872_v5, %s3940_s2  ;;  %v5921_v44 = vld [vmem:[#allocation8_spill] sm:$0xff] }
 0x2d7   :  { %v4633_v43 = vsub.f32 %v5909_v54, %v4348_v41  ;;  %v1286_v24 = vand.u32 2147483647, %v4399_v59  ;;  %vm4649_vm14 = vcmp.lt.f32.partialorder %v1793_v25, 0.11111111  ;;  %1910 = vrot.lane.b32.xlu1 %v1869_v13, %s3940_s2  ;;  %v5915_v32 = vmax.f32 %v4363_v60, 0.0 }
 0x2d8   :  { %v4640_v47 = vsub.f32 %v5910_v58, %v4360_v4  ;;  %v4645_v17 = vsub.f32 %v5911_v37, %v4382_v38  ;;  %v1323_v21 = vmul.f32 1.442695, %v4525_v22  ;;  %v1301_v38 = vsub.f32 0.0, %v1285_v45 }
 0x2d9   :  { %v4657_v4 = vsub.f32 %v5915_v32, %v5914_v8  ;;  %v5916_v34 = vmax.f32 %v4387_v23, 0.0  ;;  %v5917_v62 = vmax.f32 %v4399_v59, 0.0  ;;  %v1319_v10 = vmul.f32 1.442695, %v1295_v42  ;;  %v3811_v59 = vpop.eup %3810 }
 0x2da   :  { %v5919_v57 = vmax.f32 %v4419_v1, 0.0  ;;  %3812 = vpow2.f32 %v1313_v48  ;;  %v1325_v29 = vmul.f32 1.442695, %v1298_v36  ;;  %v1283_v22 = vand.u32 2147483647, %v4387_v23 }
 0x2db   :  { %v4663_v3 = vsub.f32 %v5916_v34, %v4392_v9  ;;  %v4668_v18 = vsub.f32 %v5917_v62, %v4417_v30  ;;  %v1873_v35 = vsel %vm4649_vm14, %v1841_v52, %v3263_v39  ;;  %v1321_v9 = vmul.f32 1.442695, %v1296_v53 }
 0x2dc   :  { %v4673_v60 = vsub.f32 %v5919_v57, %v5918_v12  ;;  %v1302_v33 = vsub.f32 0.0, %v1286_v24  ;;  %v1284_v61 = vand.u32 2147483647, %v4419_v1  ;;  %1918 = vrot.lane.b32.xlu0 %v1873_v35, %s3940_s2  ;;  %3814 = vpow2.f32 %v1323_v21  ;;  %v5922_v1 = vld [vmem:[#allocation10_spill] sm:$0xff] }
 0x2dd   :  { %v1331_v30 = vmul.f32 1.442695, %v1301_v38  ;;  %3816 = vpow2.f32 %v1319_v10  ;;  %v1335_v25 = vadd.f32 1.0, %v5920_v6  ;;  %v1299_v55 = vsub.f32 0.0, %v1283_v22 }
 0x2de   :  { %3818 = vpow2.f32 %v1325_v29  ;;  %v1337_v2 = vadd.f32 1.0, %v5921_v44  ;;  %v1333_v23 = vmul.f32 1.442695, %v1302_v33  ;;  %v1300_v7 = vsub.f32 0.0, %v1284_v61 }
 0x2df   :  { %3820 = vpow2.f32 %v1321_v9  ;;  %v1336_v51 = vadd.f32 1.0, %v4498_v31  ;;  %v1338_v48 = vadd.f32 1.0, %v5922_v1  ;;  %v1327_v56 = vmul.f32 1.442695, %v1299_v55 }
 0x2e0   :  { %3822 = vpow2.f32 %v1331_v30  ;;  %v1329_v40 = vmul.f32 1.442695, %v1300_v7  ;;  %v1341_v26 = vadd.f32 1.0, %v4506_v63  ;;  %v1342_v42 = vadd.f32 1.0, %v3811_v59 }
 0x2e1   :  { %3824 = vlog2.f32 %v1335_v25  ;;  %v1339_v50 = vadd.f32 1.0, %v4572_v15  ;;  %v1464_v52 = vlaneseq  ;;  %vm2005_vm3 = vcmask 64512  }
 0x2e2   :  { %3826 = vlog2.f32 %v1337_v2 }
 0x2e3   :  { %3828 = vpow2.f32 %v1333_v23  ;;  %v4686_v53 = vand.u32 127, %v1464_v52 }
 0x2e4   :  { %3830 = vlog2.f32 %v1336_v51  ;;  %v5924_v51 = vmov 0.0  }
 0x2e5   :  { %3832 = vlog2.f32 %v1338_v48  ;;  %v4689_v62 = vshrl.u32 %v4686_v53, 2 }
 0x2e6   :  { %3834 = vpow2.f32 %v1327_v56 }
 0x2e7   :  { %v3813_v45 = vpop.eup %3812  ;;  %3836 = vpow2.f32 %v1329_v40  ;;  %5923 = vst [vmem:[#allocation5_spill] sm:$0xff] %v4689_v62  ;;  %vm1582_vm0 = vcmp.eq.s32.totalorder %v4689_v62, 1  ;;  %vm1467_vm1 = vcmp.eq.s32.totalorder %v4689_v62, 0  ;;  %vm1681_vm2 = vcmp.eq.s32.totalorder %v4689_v62, 2 }
 0x2e8   :  { %3838 = vlog2.f32 %v1341_v26  ;;  %v1340_v36 = vadd.f32 1.0, %v3813_v45  ;;  %v4703_v1 = vsel %vm1582_vm0, 1.0, %v5924_v51  ;;  %v4707_v40 = vsel %vm1467_vm1, 1.0, %v5924_v51 }
 0x2e9   :  { %v3815_v46 = vpop.eup %3814  ;;  %3840 = vlog2.f32 %v1342_v42 }
 0x2ea   :  { %v3817_v31 = vpop.eup %3816  ;;  %3842 = vlog2.f32 %v1339_v50  ;;  %v1345_v39 = vadd.f32 1.0, %v3815_v46 }
 0x2eb   :  { %v3819_v5 = vpop.eup %3818  ;;  %3844 = vlog2.f32 %v1340_v36  ;;  %v1343_v24 = vadd.f32 1.0, %v3817_v31 }
 0x2ec   :  { %v3821_v54 = vpop.eup %3820  ;;  %v1346_v63 = vadd.f32 1.0, %v3819_v5  ;;  %3846 = vlog2.f32 %v1345_v39 }
 0x2ed   :  { %v3823_v13 = vpop.eup %3822  ;;  %v1344_v15 = vadd.f32 1.0, %v3821_v54 }
 0x2ee   :  { %v3825_v58 = vpop.eup %3824  ;;  %3848 = vlog2.f32 %v1346_v63  ;;  %v1349_v12 = vadd.f32 1.0, %v3823_v13 }
 0x2ef   :  { %v3827_v37 = vpop.eup %3826  ;;  %v1352_v32 = vmul.f32 0.6931472, %v3825_v58  ;;  %3850 = vlog2.f32 %v1343_v24 }
 0x2f0   :  { %v3829_v41 = vpop.eup %3828  ;;  %v1356_v38 = vmul.f32 0.6931472, %v3827_v37  ;;  %3852 = vlog2.f32 %v1344_v15  ;;  %v4720_v15 = vsel %vm1681_vm2, 1.0, %v5924_v51  ;;  %vm1956_vm2 = vcmask 97280  }
 0x2f1   :  { %v3831_v8 = vpop.eup %3830  ;;  %v1383_v29 = vadd.f32 %v1352_v32, %v4557_v49  ;;  %v1350_v9 = vadd.f32 1.0, %v3829_v41  ;;  %3854 = vlog2.f32 %v1349_v12 }
 0x2f2   :  { %v3833_v21 = vpop.eup %3832  ;;  %v1354_v22 = vmul.f32 0.6931472, %v3831_v8  ;;  %v1385_v33 = vadd.f32 %v1356_v38, %v4581_v0 }
 0x2f3   :  { %v3835_v34 = vpop.eup %3834  ;;  %v1358_v35 = vmul.f32 0.6931472, %v3833_v21  ;;  %v1400_v55 = vsel %vm1399_vm15, %v1383_v29, 0.0  ;;  %3856 = vlog2.f32 %v1350_v9 }
 0x2f4   :  { %v3837_v10 = vpop.eup %3836  ;;  %v1347_v30 = vadd.f32 1.0, %v3835_v34  ;;  %v1384_v44 = vadd.f32 %v1354_v22, %v4564_v14  ;;  %v1406_v2 = vsel %vm1399_vm15, %v1385_v33, 0.0 }
 0x2f5   :  { %v3839_v57 = vpop.eup %3838  ;;  %v1348_v6 = vadd.f32 1.0, %v3837_v10  ;;  %v1386_v49 = vadd.f32 %v1358_v35, %v4596_v11 }
 0x2f6   :  { %v3841_v61 = vpop.eup %3840  ;;  %v1364_v59 = vmul.f32 0.6931472, %v3839_v57  ;;  %3858 = vlog2.f32 %v1347_v30  ;;  %v1403_v11 = vsel %vm1399_vm15, %v1384_v44, 0.0 }
 0x2f7   :  { %v3843_v25 = vpop.eup %3842  ;;  %v1366_v0 = vmul.f32 0.6931472, %v3841_v61  ;;  %v1409_v26 = vsel %vm1399_vm15, %v1386_v49, 0.0  ;;  %3860 = vlog2.f32 %v1348_v6 }
 0x2f8   :  { %v3845_v23 = vpop.eup %3844  ;;  %v1389_v7 = vadd.f32 %v1364_v59, %v4591_v20  ;;  %v1360_v48 = vmul.f32 0.6931472, %v3843_v25 }
 0x2f9   :  { %v3847_v14 = vpop.eup %3846  ;;  %v1390_v50 = vadd.f32 %v1366_v0, %v4614_v27  ;;  %v1362_v46 = vmul.f32 0.6931472, %v3845_v23 }
 0x2fa   :  { %v1418_v54 = vsel %vm1399_vm15, %v1389_v7, 0.0  ;;  %v1387_v39 = vadd.f32 %v1360_v48, %v4601_v28  ;;  %v1372_v13 = vmul.f32 0.6931472, %v3847_v14 }
 0x2fb   :  { %1401 = vadd.xlane.f32.xlu0 %v1400_v55  ;;  %1407 = vadd.xlane.f32.xlu1 %v1406_v2  ;;  %v3849_v31 = vpop.eup %3848  ;;  %v1421_v41 = vsel %vm1399_vm15, %v1390_v50, 0.0  ;;  %v1388_v32 = vadd.f32 %v1362_v46, %v4625_v16 }
 0x2fc   :  { %v3851_v52 = vpop.eup %3850  ;;  %v1374_v28 = vmul.f32 0.6931472, %v3849_v31  ;;  %v1412_v12 = vsel %vm1399_vm15, %v1387_v39, 0.0  ;;  %v1393_v57 = vadd.f32 %v1372_v13, %v4620_v19 }
 0x2fd   :  { %v3853_v58 = vpop.eup %3852  ;;  %v1368_v10 = vmul.f32 0.6931472, %v3851_v52  ;;  %v1415_v30 = vsel %vm1399_vm15, %v1388_v32, 0.0 }
 0x2fe   :  { %v3620_v56 = vpop.permute.xlu0 %3619  ;;  %v3614_v45 = vpop.permute.xlu1 %3613  ;;  %v1370_v29 = vmul.f32 0.6931472, %v3853_v58  ;;  %v1394_v6 = vadd.f32 %v1374_v28, %v4640_v47  ;;  %v1430_v7 = vsel %vm1399_vm15, %v1393_v57, 0.0 }
 0x2ff   :  { %1404 = vadd.xlane.f32.xlu0 %v1403_v11  ;;  %v3622_v42 = vunpack.i.h.bf16 %v3620_v56  ;;  %v3621_v20 = vunpack.i.l.bf16 %v3620_v56  ;;  %v3616_v36 = vunpack.i.h.bf16 %v3614_v45  ;;  %v3615_v5 = vunpack.i.l.bf16 %v3614_v45  ;;  %1410 = vadd.xlane.f32.xlu1 %v1409_v26  ;;  %v3855_v22 = vpop.eup %3854 }
 0x300   :  { %v3857_v16 = vpop.eup %3856  ;;  %v1391_v19 = vadd.f32 %v1368_v10, %v4633_v43  ;;  %v1380_v0 = vmul.f32 0.6931472, %v3855_v22  ;;  %v1392_v47 = vadd.f32 %v1370_v29, %v4657_v4  ;;  %v1433_v26 = vsel %vm1399_vm15, %v1394_v6, 0.0 }
 0x301   :  { %v1652_v63 = vmul.f32 %v3622_v42, %v4703_v1  ;;  %v1651_v37 = vmul.f32 %v3621_v20, %v4703_v1  ;;  %v1553_v27 = vmul.f32 %v3616_v36, %v4707_v40  ;;  %v1552_v24 = vmul.f32 %v3615_v5, %v4707_v40 }
 0x302   :  { %v1382_v14 = vmul.f32 0.6931472, %v3857_v16  ;;  %v1424_v42 = vsel %vm1399_vm15, %v1391_v19, 0.0  ;;  %v1397_v45 = vadd.f32 %v1380_v0, %v4645_v17  ;;  %v1427_v5 = vsel %vm1399_vm15, %v1392_v47, 0.0 }
 0x303   :  { %1419 = vadd.xlane.f32.xlu0 %v1418_v54  ;;  %v3626_v8 = vpop.permute.xlu0 %3625  ;;  %1422 = vadd.xlane.f32.xlu1 %v1421_v41  ;;  %v4723_v34 = vpop.permute.xlu1 %3637  ;;  %v1667_v33 = vadd.f32 %v1651_v37, %v1552_v24  ;;  %v1668_v61 = vadd.f32 %v1652_v63, %v1553_v27 }
 0x304   :  { %v3628_v21 = vunpack.i.h.bf16 %v3626_v8  ;;  %v3627_v38 = vunpack.i.l.bf16 %v3626_v8  ;;  %v3639_v59 = vunpack.i.l.bf16 %v4723_v34  ;;  %v3859_v23 = vpop.eup %3858  ;;  %v1398_v52 = vadd.f32 %v1382_v14, %v4668_v18 }
 0x305   :  { %v3861_v11 = vpop.eup %3860  ;;  %v1376_v46 = vmul.f32 0.6931472, %v3859_v23  ;;  %v1442_v37 = vsel %vm1399_vm15, %v1397_v45, 0.0 }
 0x306   :  { %v1751_v35 = vmul.f32 %v3628_v21, %v4720_v15  ;;  %v1750_v9 = vmul.f32 %v3627_v38, %v4720_v15  ;;  %v1649_v43 = vmul.f32 %v3639_v59, %v4703_v1  ;;  %v1378_v54 = vmul.f32 0.6931472, %v3861_v11 }
 0x307   :  { %1413 = vadd.xlane.f32.xlu0 %v1412_v12  ;;  %1416 = vadd.xlane.f32.xlu1 %v1415_v30  ;;  %v1395_v17 = vadd.f32 %v1376_v46, %v4663_v3  ;;  %v1445_v24 = vsel %vm1399_vm15, %v1398_v52, 0.0 }
 0x308   :  { %v4732_v25 = vpop.permute.xlu0 %3631  ;;  %v4735_v55 = vadd.f32 %v1750_v9, %v1667_v33  ;;  %v4737_v44 = vadd.f32 %v1751_v35, %v1668_v61  ;;  %v4739_v49 = vpop.permute.xlu1 %3643  ;;  %v1396_v41 = vadd.f32 %v1378_v54, %v4673_v60 }
 0x309   :  { %v3633_v2 = vunpack.i.l.bf16 %v4732_v25  ;;  %v3645_v48 = vunpack.i.l.bf16 %v4739_v49  ;;  %v1436_v3 = vsel %vm1399_vm15, %v1395_v17, 0.0 }
 0x30a   :  { %5925 = vst [vmem:[#allocation7_spill] sm:$0xff] %v4735_v55  ;;  %5926 = vst [vmem:[#allocation9_spill] sm:$0xff] %v4737_v44  ;;  %v1439_v29 = vsel %vm1399_vm15, %v1396_v41, 0.0 }
 0x30b   :  { %1431 = vadd.xlane.f32.xlu0 %v1430_v7  ;;  %v1550_v56 = vmul.f32 %v3633_v2, %v4707_v40  ;;  %1434 = vadd.xlane.f32.xlu1 %v1433_v26  ;;  %v1748_v20 = vmul.f32 %v3645_v48, %v4720_v15 }
 0x30d   :  { %v3656_v50 = vpop.permute.xlu0 %3655  ;;  %v1665_v31 = vadd.f32 %v1649_v43, %v1550_v56  ;;  %v3650_v36 = vpop.permute.xlu1 %3649 }
 0x30e   :  { %v3658_v4 = vunpack.i.h.bf16 %v3656_v50  ;;  %v3657_v39 = vunpack.i.l.bf16 %v3656_v50  ;;  %v3652_v13 = vunpack.i.h.bf16 %v3650_v36  ;;  %v3651_v58 = vunpack.i.l.bf16 %v3650_v36 }
 0x30f   :  { %1425 = vadd.xlane.f32.xlu0 %v1424_v42  ;;  %v4753_v63 = vadd.f32 %v1748_v20, %v1665_v31  ;;  %1428 = vadd.xlane.f32.xlu1 %v1427_v5 }
 0x310   :  { %v1656_v18 = vmul.f32 %v3658_v4, %v4703_v1  ;;  %v1655_v8 = vmul.f32 %v3657_v39, %v4703_v1  ;;  %v1557_v32 = vmul.f32 %v3652_v13, %v4707_v40  ;;  %v1556_v28 = vmul.f32 %v3651_v58, %v4707_v40 }
 0x311   :  { %v3667_v27 = vpop.permute.xlu1 %3666 }
 0x312   :  { %v3662_v21 = vpop.permute.xlu0 %3661  ;;  %v1671_v22 = vadd.f32 %v1655_v8, %v1556_v28  ;;  %v1672_v35 = vadd.f32 %v1656_v18, %v1557_v32  ;;  %v3669_v61 = vunpack.i.h.bf16 %v3667_v27  ;;  %v3668_v16 = vunpack.i.l.bf16 %v3667_v27 }
 0x313   :  { %1443 = vadd.xlane.f32.xlu0 %v1442_v37  ;;  %v3664_v38 = vunpack.i.h.bf16 %v3662_v21  ;;  %v3663_v10 = vunpack.i.l.bf16 %v3662_v21  ;;  %1446 = vadd.xlane.f32.xlu1 %v1445_v24 }
 0x314   :  { %v1555_v0 = vmul.f32 %v3669_v61, %v4707_v40  ;;  %v1554_v23 = vmul.f32 %v3668_v16, %v4707_v40 }
 0x315   :  { %v1755_v12 = vmul.f32 %v3664_v38, %v4720_v15  ;;  %v1754_v57 = vmul.f32 %v3663_v10, %v4720_v15 }
 0x316   :  { %v3673_v60 = vpop.permute.xlu1 %3672  ;;  %v3696_v56 = vpop.permute.xlu0 %3695 }
 0x317   :  { %1437 = vadd.xlane.f32.xlu0 %v1436_v3  ;;  %v3675_v9 = vunpack.i.h.bf16 %v3673_v60  ;;  %v3674_v33 = vunpack.i.l.bf16 %v3673_v60  ;;  %1440 = vadd.xlane.f32.xlu1 %v1439_v29  ;;  %v4767_v59 = vadd.f32 %v1754_v57, %v1671_v22  ;;  %v4769_v30 = vadd.f32 %v1755_v12, %v1672_v35 }
 0x318   :  { %v3698_v31 = vunpack.i.h.bf16 %v3696_v56  ;;  %v3697_v4 = vunpack.i.l.bf16 %v3696_v56 }
 0x319   :  { %5927 = vst [vmem:[#allocation8_spill] sm:$0xff] %v4767_v59  ;;  %5928 = vst [vmem:[#allocation10_spill] sm:$0xff] %v4769_v30  ;;  %v1654_v6 = vmul.f32 %v3675_v9, %v4703_v1  ;;  %v1653_v19 = vmul.f32 %v3674_v33, %v4703_v1 }
 0x31a   :  { %v1759_v37 = vmul.f32 %v3698_v31, %v4720_v15  ;;  %v1758_v17 = vmul.f32 %v3697_v4, %v4720_v15 }
 0x31b   :  { %v3679_v2 = vpop.permute.xlu1 %3678  ;;  %v1669_v11 = vadd.f32 %v1653_v19, %v1554_v23  ;;  %v1670_v43 = vadd.f32 %v1654_v6, %v1555_v0  ;;  %v3713_v36 = vpop.permute.xlu0 %3712 }
 0x31c   :  { %v3681_v7 = vunpack.i.h.bf16 %v3679_v2  ;;  %v3680_v48 = vunpack.i.l.bf16 %v3679_v2  ;;  %v3715_v38 = vunpack.i.h.bf16 %v3713_v36  ;;  %v3714_v10 = vunpack.i.l.bf16 %v3713_v36 }
 0x31e   :  { %v1753_v47 = vmul.f32 %v3681_v7, %v4720_v15  ;;  %v1752_v14 = vmul.f32 %v3680_v48, %v4720_v15  ;;  %v1757_v33 = vmul.f32 %v3715_v38, %v4720_v15  ;;  %v1756_v61 = vmul.f32 %v3714_v10, %v4720_v15 }
 0x320   :  { %v3685_v26 = vpop.permute.xlu1 %3684  ;;  %v4777_v42 = vadd.f32 %v1752_v14, %v1669_v11  ;;  %v4779_v20 = vadd.f32 %v1753_v47, %v1670_v43  ;;  %v3725_v18 = vpop.permute.xlu0 %3724 }
 0x321   :  { %v3687_v45 = vunpack.i.h.bf16 %v3685_v26  ;;  %v3686_v50 = vunpack.i.l.bf16 %v3685_v26  ;;  %v3727_v16 = vunpack.i.h.bf16 %v3725_v18  ;;  %v3726_v6 = vunpack.i.l.bf16 %v3725_v18 }
 0x322   :  { %5929 = vst [vmem:[#allocation11_spill] sm:$0xff] %v4777_v42  ;;  %5930 = vst [vmem:[#allocation12_spill] sm:$0xff] %v4779_v20 }
 0x323   :  { %v1561_v54 = vmul.f32 %v3687_v45, %v4707_v40  ;;  %v1560_v39 = vmul.f32 %v3686_v50, %v4707_v40  ;;  %v1664_v43 = vmul.f32 %v3727_v16, %v4703_v1  ;;  %v1663_v56 = vmul.f32 %v3726_v6, %v4703_v1 }
 0x325   :  { %v3691_v46 = vpop.permute.xlu1 %3690  ;;  %v3731_v60 = vpop.permute.xlu0 %3730 }
 0x326   :  { %v3693_v5 = vunpack.i.h.bf16 %v3691_v46  ;;  %v3692_v52 = vunpack.i.l.bf16 %v3691_v46  ;;  %v3733_v0 = vunpack.i.h.bf16 %v3731_v60  ;;  %v3732_v23 = vunpack.i.l.bf16 %v3731_v60 }
 0x328   :  { %v1660_v13 = vmul.f32 %v3693_v5, %v4703_v1  ;;  %v1659_v58 = vmul.f32 %v3692_v52, %v4703_v1  ;;  %v1762_v46 = vmul.f32 %v3732_v23, %v4720_v15  ;;  %v1763_v36 = vmul.f32 %v3733_v0, %v4720_v15 }
 0x329   :  { %v3747_v5 = vpop.permute.xlu0 %3746 }
 0x32a   :  { %v3702_v27 = vpop.permute.xlu1 %3701  ;;  %v1676_v24 = vadd.f32 %v1660_v13, %v1561_v54  ;;  %v1675_v41 = vadd.f32 %v1659_v58, %v1560_v39 }
 0x32b   :  { %v3704_v28 = vunpack.i.h.bf16 %v3702_v27  ;;  %v3703_v21 = vunpack.i.l.bf16 %v3702_v27 }
 0x32c   :  { %v4787_v8 = vadd.f32 %v1759_v37, %v1676_v24  ;;  %v4789_v32 = vadd.f32 %v1758_v17, %v1675_v41  ;;  %v3749_v37 = vunpack.i.h.bf16 %v3747_v5  ;;  %v3748_v17 = vunpack.i.l.bf16 %v3747_v5 }
 0x32d   :  { %v1559_v29 = vmul.f32 %v3704_v28, %v4707_v40  ;;  %v1558_v22 = vmul.f32 %v3703_v21, %v4707_v40 }
 0x32e   :  { %5931 = vst [vmem:[#allocation13_spill] sm:$0xff] %v4787_v8  ;;  %5932 = vst [vmem:[#allocation14_spill] sm:$0xff] %v4789_v32  ;;  %v1761_v38 = vmul.f32 %v3749_v37, %v4720_v15  ;;  %v1760_v10 = vmul.f32 %v3748_v17, %v4720_v15 }
 0x32f   :  { %v3708_v3 = vpop.permute.xlu1 %3707 }
 0x330   :  { %v3710_v12 = vunpack.i.h.bf16 %v3708_v3  ;;  %v3709_v57 = vunpack.i.l.bf16 %v3708_v3 }
 0x332   :  { %v1658_v35 = vmul.f32 %v3710_v12, %v4703_v1  ;;  %v1657_v9 = vmul.f32 %v3709_v57, %v4703_v1 }
 0x334   :  { %v1673_v19 = vadd.f32 %v1657_v9, %v1558_v22  ;;  %v1674_v2 = vadd.f32 %v1658_v35, %v1559_v29  ;;  %v3719_v7 = vpop.permute.xlu1 %3718 }
 0x335   :  { %v3721_v48 = vunpack.i.h.bf16 %v3719_v7  ;;  %v3720_v47 = vunpack.i.l.bf16 %v3719_v7 }
 0x336   :  { %v4797_v14 = vadd.f32 %v1756_v61, %v1673_v19  ;;  %v4799_v11 = vadd.f32 %v1757_v33, %v1674_v2 }
 0x337   :  { %v1565_v26 = vmul.f32 %v3721_v48, %v4707_v40  ;;  %v1564_v45 = vmul.f32 %v3720_v47, %v4707_v40 }
 0x338   :  { %5933 = vst [vmem:[#allocation15_spill] sm:$0xff] %v4797_v14  ;;  %5934 = vst [vmem:[#allocation16_spill] sm:$0xff] %v4799_v11  ;;  %v3736_v50 = vpop.permute.xlu1 %3735 }
 0x339   :  { %v1679_v31 = vadd.f32 %v1663_v56, %v1564_v45  ;;  %v1680_v4 = vadd.f32 %v1664_v43, %v1565_v26  ;;  %v3738_v39 = vunpack.i.h.bf16 %v3736_v50  ;;  %v3737_v13 = vunpack.i.l.bf16 %v3736_v50 }
 0x33b   :  { %v4807_v52 = vadd.f32 %v1762_v46, %v1679_v31  ;;  %v4809_v54 = vadd.f32 %v1763_v36, %v1680_v4  ;;  %v1563_v41 = vmul.f32 %v3738_v39, %v4707_v40  ;;  %v1562_v18 = vmul.f32 %v3737_v13, %v4707_v40 }
 0x33d   :  { %5935 = vst [vmem:[#allocation17_spill] sm:$0xff] %v4807_v52 }
 0x33e   :  { %v3742_v58 = vpop.permute.xlu1 %3741 }
 0x33f   :  { %v3744_v27 = vunpack.i.h.bf16 %v3742_v58  ;;  %v3743_v24 = vunpack.i.l.bf16 %v3742_v58 }
 0x341   :  { %v1662_v28 = vmul.f32 %v3744_v27, %v4703_v1  ;;  %v1661_v21 = vmul.f32 %v3743_v24, %v4703_v1 }
 0x342   :  { %v4932_v51 = vpop.permute.xlu1 %1898 }
 0x343   :  { %v1677_v3 = vadd.f32 %v1661_v21, %v1562_v18  ;;  %v1678_v12 = vadd.f32 %v1662_v28, %v1563_v41  ;;  %5943 = vst [vmem:[#allocation25_spill] sm:$0xff] %v4932_v51 }
 0x345   :  { %v4819_v60 = vadd.f32 %v1760_v10, %v1677_v3  ;;  %v4821_v29 = vadd.f32 %v1761_v38, %v1678_v12 }
 0x346   :  { %v4817_v57 = vpop.f32.mrf.mxu1  ;;  %v4937_v52 = vpop.permute.xlu1 %1900 }
 0x347   :  { %5936 = vst [vmem:[#allocation18_spill] sm:$0xff] %v4819_v60  ;;  %5937 = vst [vmem:[#allocation19_spill] sm:$0xff] %v4821_v29  ;;  %v2012_v22 = vsel %vm2005_vm3, %v4817_v57, -inf }
 0x348   :  { %v4825_v35 = vpop.f32.mrf.mxu1  ;;  %2013 = vmax.xlane.f32.xlu0 %v2012_v22  ;;  %5945 = vst [vmem:[#allocation27_spill] sm:$0xff] %v4937_v52 }
 0x349   :  { %v2006_v9 = vsel %vm2005_vm3, %v4825_v35, -inf }
 0x34a   :  { %v4829_v33 = vpop.f32.mrf.mxu1  ;;  %2007 = vmax.xlane.f32.xlu1 %v2006_v9 }
 0x34b   :  { %v2015_v6 = vsel %vm2005_vm3, %v4829_v33, -inf }
 0x34c   :  { %v4831_v61 = vpop.f32.mrf.mxu1 }
 0x34d   :  { %v2009_v16 = vsel %vm2005_vm3, %v4831_v61, -inf }
 0x34e   :  { %2010 = vmax.xlane.f32.xlu0 %v2009_v16  ;;  %2016 = vmax.xlane.f32.xlu1 %v2015_v6 }
 0x34f   :  { %v4837_v19 = vpop.f32.mrf.mxu1 }
 0x350   :  { %v2024_v0 = vsel %vm2005_vm3, %v4837_v19, -inf }
 0x351   :  { %v4839_v2 = vpop.f32.mrf.mxu1 }
 0x352   :  { %2025 = vmax.xlane.f32.xlu0 %v2024_v0  ;;  %v2018_v47 = vsel %vm2005_vm3, %v4839_v2, -inf }
 0x353   :  { %v4843_v23 = vpop.f32.mrf.mxu1 }
 0x354   :  { %v2027_v7 = vsel %vm2005_vm3, %v4843_v23, -inf }
 0x355   :  { %v4847_v48 = vpop.f32.mrf.mxu1  ;;  %2028 = vmax.xlane.f32.xlu1 %v2027_v7 }
 0x356   :  { %2019 = vmax.xlane.f32.xlu0 %v2018_v47  ;;  %v2021_v56 = vsel %vm2005_vm3, %v4847_v48, -inf }
 0x357   :  { %v4851_v43 = vpop.f32.mrf.mxu1 }
 0x358   :  { %v2036_v45 = vsel %vm2005_vm3, %v4851_v43, -inf }
 0x359   :  { %v4855_v26 = vpop.f32.mrf.mxu1  ;;  %2022 = vmax.xlane.f32.xlu1 %v2021_v56 }
 0x35a   :  { %2037 = vmax.xlane.f32.xlu0 %v2036_v45  ;;  %v2030_v4 = vsel %vm2005_vm3, %v4855_v26, -inf }
 0x35b   :  { %v4859_v50 = vpop.f32.mrf.mxu1 }
 0x35c   :  { %v2039_v46 = vsel %vm2005_vm3, %v4859_v50, -inf }
 0x35d   :  { %v4863_v31 = vpop.f32.mrf.mxu1  ;;  %2040 = vmax.xlane.f32.xlu1 %v2039_v46 }
 0x35e   :  { %2031 = vmax.xlane.f32.xlu0 %v2030_v4  ;;  %v2033_v5 = vsel %vm2005_vm3, %v4863_v31, -inf }
 0x35f   :  { %v4867_v36 = vpop.f32.mrf.mxu1 }
 0x360   :  { %v2048_v13 = vsel %vm2005_vm3, %v4867_v36, -inf }
 0x361   :  { %v4871_v39 = vpop.f32.mrf.mxu1  ;;  %2034 = vmax.xlane.f32.xlu1 %v2033_v5 }
 0x362   :  { %2049 = vmax.xlane.f32.xlu0 %v2048_v13  ;;  %v2042_v27 = vsel %vm2005_vm3, %v4871_v39, -inf }
 0x363   :  { %v4875_v58 = vpop.f32.mrf.mxu1 }
 0x364   :  { %v2051_v37 = vsel %vm2005_vm3, %v4875_v58, -inf }
 0x365   :  { %v4879_v17 = vpop.f32.mrf.mxu1  ;;  %2052 = vmax.xlane.f32.xlu1 %v2051_v37 }
 0x366   :  { %2043 = vmax.xlane.f32.xlu0 %v2042_v27  ;;  %v2045_v41 = vsel %vm2005_vm3, %v4879_v17, -inf }
 0x367   :  { %v4883_v24 = vpop.f32.mrf.mxu1 }
 0x368   :  { %5938 = vst [vmem:[#allocation20_spill] sm:$0xff] %v4883_v24  ;;  %v2380_v28 = vsel %vm2005_vm3, %v4883_v24, -inf  ;;  %v2648_v16 = vsub.f32 %v4883_v24, %v4817_v57 }
 0x369   :  { %v4887_v18 = vpop.f32.mrf.mxu1  ;;  %2046 = vmax.xlane.f32.xlu1 %v2045_v41 }
 0x36a   :  { %5939 = vst [vmem:[#allocation21_spill] sm:$0xff] %v4887_v18  ;;  %2381 = vmax.xlane.f32.xlu0 %v2380_v28  ;;  %v2374_v3 = vsel %vm2005_vm3, %v4887_v18, -inf  ;;  %v2776_v6 = vand.u32 2147483647, %v2648_v16  ;;  %v2808_v0 = vmul.f32 4.5, %v2648_v16  ;;  %v2646_v7 = vsub.f32 %v4887_v18, %v4825_v35 }
 0x36b   :  { %v4891_v21 = vpop.f32.mrf.mxu1 }
 0x36c   :  { %v2383_v38 = vsel %vm2005_vm3, %v4891_v21, -inf  ;;  %v2824_v47 = vmul.f32 %v2808_v0, %v2648_v16  ;;  %v3300_v56 = vadd.f32 -0.055555556, %v2776_v6  ;;  %vm2792_vm4 = vcmp.lt.f32.partialorder %v2776_v6, 0.11111111 }
 0x36d   :  { %v4895_v10 = vpop.f32.mrf.mxu1  ;;  %2384 = vmax.xlane.f32.xlu1 %v2383_v38  ;;  %v2774_v45 = vand.u32 2147483647, %v2646_v7  ;;  %v2806_v46 = vmul.f32 4.5, %v2646_v7  ;;  %v2649_v0 = vsub.f32 %v4891_v21, %v4829_v33 }
 0x36e   :  { %2375 = vmax.xlane.f32.xlu0 %v2374_v3  ;;  %v2377_v22 = vsel %vm2005_vm3, %v4895_v10, -inf  ;;  %v2856_v4 = vsel %vm2792_vm4, %v2824_v47, %v3300_v56  ;;  %v4919_v3 = vpop.permute.xlu0 %1896 }
 0x36f   :  { %v4899_v12 = vpop.f32.mrf.mxu1  ;;  %v2822_v5 = vmul.f32 %v2806_v46, %v2646_v7  ;;  %v3298_v13 = vadd.f32 -0.055555556, %v2774_v45  ;;  %vm2790_vm5 = vcmp.lt.f32.partialorder %v2774_v45, 0.11111111  ;;  %5942 = vst [vmem:[#allocation24_spill] sm:$0xff] %v4919_v3  ;;  %v2809_v46 = vmul.f32 4.5, %v2649_v0 }
 0x370   :  { %v2392_v9 = vsel %vm2005_vm3, %v4899_v12, -inf  ;;  %v2652_v56 = vsub.f32 %v4899_v12, %v4837_v19  ;;  %v2777_v45 = vand.u32 2147483647, %v2649_v0 }
 0x371   :  { %2378 = vmax.xlane.f32.xlu1 %v2377_v22  ;;  %v2854_v37 = vsel %vm2790_vm5, %v2822_v5, %v3298_v13  ;;  %v4911_v27 = vpop.f32.mrf.mxu1  ;;  %v2647_v22 = vsub.f32 %v4895_v10, %v4831_v61  ;;  %v2825_v13 = vmul.f32 %v2809_v46, %v2649_v0 }
 0x372   :  { %2393 = vmax.xlane.f32.xlu0 %v2392_v9  ;;  %5940 = vst [vmem:[#allocation22_spill] sm:$0xff] %v4911_v27  ;;  %v2386_v38 = vsel %vm2005_vm3, %v4911_v27, -inf  ;;  %v4923_v6 = vpop.permute.xlu0 %1892  ;;  %vm2793_vm7 = vcmp.lt.f32.partialorder %v2777_v45, 0.11111111 }
 0x373   :  { %v4913_v41 = vpop.f32.mrf.mxu1  ;;  %v2775_v9 = vand.u32 2147483647, %v2647_v22  ;;  %v2807_v16 = vmul.f32 4.5, %v2647_v22 }
 0x374   :  { %5941 = vst [vmem:[#allocation23_spill] sm:$0xff] %v4913_v41  ;;  %v2395_v28 = vsel %vm2005_vm3, %v4913_v41, -inf }
 0x375   :  { %v2823_v7 = vmul.f32 %v2807_v16, %v2647_v22  ;;  %v3299_v47 = vadd.f32 -0.055555556, %v2775_v9  ;;  %vm2791_vm6 = vcmp.lt.f32.partialorder %v2775_v9, 0.11111111 }
 0x377   :  { %v2855_v5 = vsel %vm2791_vm6, %v2823_v7, %v3299_v47  ;;  %v4942_v47 = vpop.permute.xlu1 %1902 }
 0x378   :  { %5947 = vst [vmem:[#allocation29_spill] sm:$0xff] %v4942_v47 }
 0x382   :  { %2890 = vrot.lane.b32.xlu1 %v2856_v4, %s3941_s23  ;;  %v4929_v4 = vpop.permute.xlu0 %1894 }
 0x386   :  { %v4934_v22 = vpop.permute.xlu0 %1904 }
 0x387   :  { %5944 = vst [vmem:[#allocation26_spill] sm:$0xff] %v4934_v22 }
 0x388   :  { %2886 = vrot.lane.b32.xlu0 %v2854_v37, %s3941_s23  ;;  %v3301_v37 = vadd.f32 -0.055555556, %v2777_v45  ;;  %v4946_v45 = vpop.permute.xlu1 %1912 }
 0x389   :  { %5949 = vst [vmem:[#allocation31_spill] sm:$0xff] %v4946_v45 }
 0x38a   :  { %v2857_v9 = vsel %vm2793_vm7, %v2825_v13, %v3301_v37  ;;  %v4940_v0 = vpop.permute.xlu0 %1906 }
 0x38b   :  { %5946 = vst [vmem:[#allocation28_spill] sm:$0xff] %v4940_v0 }
 0x38e   :  { %v4944_v46 = vpop.permute.xlu0 %1908 }
 0x38f   :  { %5948 = vst [vmem:[#allocation30_spill] sm:$0xff] %v4944_v46 }
 0x3a6   :  { %2396 = vmax.xlane.f32.xlu1 %v2395_v28  ;;  %v2780_v28 = vand.u32 2147483647, %v2652_v56 }
 0x3a7   :  { %2387 = vmax.xlane.f32.xlu0 %v2386_v38  ;;  %v2812_v38 = vmul.f32 4.5, %v2652_v56 }
 0x3a8   :  { %v3304_v62 = vadd.f32 -0.055555556, %v2780_v28  ;;  %vm2796_vm8 = vcmp.lt.f32.partialorder %v2780_v28, 0.11111111  ;;  %v4956_v28 = vpop.f32.mrf.mxu1 }
 0x3a9   :  { %v2828_v16 = vmul.f32 %v2812_v38, %v2652_v56  ;;  %v4950_v56 = vpop.permute.xlu1 %1910  ;;  %5954 = vst [vmem:[#allocation36_spill] sm:$0xff] %v4956_v28  ;;  %v2389_v38 = vsel %vm2005_vm3, %v4956_v28, -inf }
 0x3aa   :  { %5951 = vst [vmem:[#allocation33_spill] sm:$0xff] %v4950_v56 }
 0x3ab   :  { %v2860_v7 = vsel %vm2796_vm8, %v2828_v16, %v3304_v62  ;;  %v4964_v16 = vpop.f32.mrf.mxu1 }
 0x3ac   :  { %5957 = vst [vmem:[#allocation39_spill] sm:$0xff] %v4964_v16 }
 0x3ad   :  { %v4954_v37 = vpop.xlane.xlu1 %1407 }
 0x3ae   :  { %5953 = vst [vmem:[#allocation35_spill] sm:$0xff] %v4954_v37 }
 0x3b7   :  { %2888 = vrot.lane.b32.xlu1 %v2855_v5, %s3941_s23  ;;  %v4948_v5 = vpop.permute.xlu0 %1914 }
 0x3b8   :  { %5950 = vst [vmem:[#allocation32_spill] sm:$0xff] %v4948_v5 }
 0x3bb   :  { %v4952_v13 = vpop.permute.xlu0 %1920 }
 0x3bc   :  { %5952 = vst [vmem:[#allocation34_spill] sm:$0xff] %v4952_v13  ;;  %v2404_v13 = vsel %vm2005_vm3, %v4964_v16, -inf }
 0x3bd   :  { %2892 = vrot.lane.b32.xlu0 %v2857_v9, %s3941_s23  ;;  %v4962_v9 = vpop.xlane.xlu1 %1410 }
 0x3be   :  { %5956 = vst [vmem:[#allocation38_spill] sm:$0xff] %v4962_v9 }
 0x3bf   :  { %v4958_v62 = vpop.permute.xlu0 %1916 }
 0x3c0   :  { %5955 = vst [vmem:[#allocation37_spill] sm:$0xff] %v4958_v62  ;;  %v4974_v62 = vpop.f32.mrf.mxu1 }
 0x3c1   :  { %2898 = vrot.lane.b32.xlu0 %v2860_v7, %s3941_s23  ;;  %v2650_v7 = vsub.f32 %v4911_v27, %v4839_v2  ;;  %v4972_v37 = vpop.xlane.xlu1 %1422  ;;  %5960 = vst [vmem:[#allocation42_spill] sm:$0xff] %v4974_v62  ;;  %v2398_v29 = vsel %vm2005_vm3, %v4974_v62, -inf }
 0x3c2   :  { %5959 = vst [vmem:[#allocation41_spill] sm:$0xff] %v4972_v37  ;;  %v2653_v37 = vsub.f32 %v4913_v41, %v4843_v23 }
 0x3c3   :  { %v4970_v60 = vpop.permute.xlu0 %1918  ;;  %v2778_v9 = vand.u32 2147483647, %v2650_v7 }
 0x3c4   :  { %5958 = vst [vmem:[#allocation40_spill] sm:$0xff] %v4970_v60 }
 0x3c5   :  { %v4980_v32 = vpop.xlane.xlu1 %1416  ;;  %v3302_v8 = vadd.f32 -0.055555556, %v2778_v9  ;;  %vm2794_vm9 = vcmp.lt.f32.partialorder %v2778_v9, 0.11111111 }
 0x3c6   :  { %5962 = vst [vmem:[#allocation44_spill] sm:$0xff] %v4980_v32  ;;  %v2813_v32 = vmul.f32 4.5, %v2653_v37 }
 0x3c7   :  { %v4978_v45 = vpop.xlane.xlu0 %1401 }
 0x3c8   :  { %5961 = vst [vmem:[#allocation43_spill] sm:$0xff] %v4978_v45  ;;  %v2781_v45 = vand.u32 2147483647, %v2653_v37  ;;  %v2829_v9 = vmul.f32 %v2813_v32, %v2653_v37 }
 0x3c9   :  { %v4987_v60 = vpop.xlane.xlu1 %1434 }
 0x3ca   :  { %5964 = vst [vmem:[#allocation46_spill] sm:$0xff] %v4987_v60  ;;  %vm2797_vm10 = vcmp.lt.f32.partialorder %v2781_v45, 0.11111111 }
 0x3cb   :  { %v4982_v46 = vpop.xlane.xlu0 %1404 }
 0x3cc   :  { %5963 = vst [vmem:[#allocation45_spill] sm:$0xff] %v4982_v46 }
 0x3cf   :  { %v4989_v14 = vpop.xlane.xlu0 %1419 }
 0x3d0   :  { %5965 = vst [vmem:[#allocation47_spill] sm:$0xff] %v4989_v14 }
 0x3db   :  { %2390 = vmax.xlane.f32.xlu1 %v2389_v38  ;;  %v2810_v38 = vmul.f32 4.5, %v2650_v7 }
 0x3dd   :  { %v2826_v5 = vmul.f32 %v2810_v38, %v2650_v7  ;;  %v4993_v7 = vpop.xlane.xlu1 %1428  ;;  %v3305_v38 = vadd.f32 -0.055555556, %v2781_v45 }
 0x3de   :  { %5966 = vst [vmem:[#allocation48_spill] sm:$0xff] %v4993_v7 }
 0x3df   :  { %v2861_v56 = vsel %vm2797_vm10, %v2829_v9, %v3305_v38  ;;  %v5015_v9 = vpop.f32.mrf.mxu1 }
 0x3e0   :  { %2405 = vmax.xlane.f32.xlu0 %v2404_v13  ;;  %v2858_v13 = vsel %vm2794_vm9, %v2826_v5, %v3302_v8  ;;  %v4995_v5 = vpop.xlane.xlu0 %1413  ;;  %5973 = vst [vmem:[#allocation55_spill] sm:$0xff] %v5015_v9 }
 0x3e1   :  { %5967 = vst [vmem:[#allocation49_spill] sm:$0xff] %v4995_v5 }
 0x3e4   :  { %2399 = vmax.xlane.f32.xlu0 %v2398_v29  ;;  %v2651_v29 = vsub.f32 %v4956_v28, %v4847_v48  ;;  %v5000_v14 = vpop.xlane.xlu0 %1431 }
 0x3e5   :  { %5969 = vst [vmem:[#allocation51_spill] sm:$0xff] %v5000_v14  ;;  %v2654_v14 = vsub.f32 %v4974_v62, %v4855_v26 }
 0x3e6   :  { %v2779_v46 = vand.u32 2147483647, %v2651_v29  ;;  %v2811_v8 = vmul.f32 4.5, %v2651_v29 }
 0x3e7   :  { %v2782_v52 = vand.u32 2147483647, %v2654_v14 }
 0x3e8   :  { %v2827_v60 = vmul.f32 %v2811_v8, %v2651_v29  ;;  %v3303_v11 = vadd.f32 -0.055555556, %v2779_v46  ;;  %vm2795_vm11 = vcmp.lt.f32.partialorder %v2779_v46, 0.11111111  ;;  %v5005_v37 = vpop.xlane.xlu0 %1425 }
 0x3e9   :  { %5971 = vst [vmem:[#allocation53_spill] sm:$0xff] %v5005_v37  ;;  %v3306_v28 = vadd.f32 -0.055555556, %v2782_v52  ;;  %vm2798_vm14 = vcmp.lt.f32.partialorder %v2782_v52, 0.11111111 }
 0x3ea   :  { %v2859_v22 = vsel %vm2795_vm11, %v2827_v60, %v3303_v11  ;;  %v2407_v11 = vsel %vm2005_vm3, %v5015_v9, -inf  ;;  %v5021_v60 = vpop.f32.mrf.mxu1 }
 0x3eb   :  { %v2401_v38 = vsel %vm2005_vm3, %v5021_v60, -inf }
 0x3ec   :  { %2894 = vrot.lane.b32.xlu1 %v2858_v13, %s3941_s23  ;;  %v4997_v13 = vpop.xlane.xlu1 %1446  ;;  %v5009_v45 = vpop.xlane.xlu0 %1443 }
 0x3ed   :  { %5968 = vst [vmem:[#allocation50_spill] sm:$0xff] %v4997_v13  ;;  %5972 = vst [vmem:[#allocation54_spill] sm:$0xff] %v5009_v45  ;;  %v2656_v45 = vsub.f32 %v4964_v16, %v4851_v43 }
 0x3f0   :  { %v5003_v32 = vpop.xlane.xlu1 %1440  ;;  %v5017_v46 = vpop.xlane.xlu0 %1437 }
 0x3f1   :  { %5970 = vst [vmem:[#allocation52_spill] sm:$0xff] %v5003_v32  ;;  %5974 = vst [vmem:[#allocation56_spill] sm:$0xff] %v5017_v46  ;;  %v5033_v46 = vpop.f32.mrf.mxu1 }
 0x3f2   :  { %5975 = vst [vmem:[#allocation57_spill] sm:$0xff] %v5033_v46 }
 0x3f3   :  { %v5046_v59 = vpop.f32.mrf.mxu1 }
 0x3f4   :  { %v5007_v7 = vpop.xlane.xlu1 %2007  ;;  %5977 = vst [vmem:[#allocation59_spill] sm:$0xff] %v5046_v59  ;;  %v2410_v0 = vsel %vm2005_vm3, %v5046_v59, -inf }
 0x3f5   :  { %v5094_v41 = vpop.f32.mrf.mxu1  ;;  %vm2054_vm9 = vcmp.ge.f32.partialorder %v4825_v35, %v5007_v7 }
 0x3f8   :  { %v5011_v13 = vpop.xlane.xlu1 %2016 }
 0x3f9   :  { %vm2057_vm10 = vcmp.ge.f32.partialorder %v4829_v33, %v5011_v13 }
 0x3fa   :  { %2900 = vrot.lane.b32.xlu0 %v2861_v56, %s3941_s23  ;;  %v2073_v35 = vsel %vm2057_vm10, %v4686_v53, 8 }
 0x3fc   :  { %v5013_v29 = vpop.xlane.xlu1 %2028 }
 0x3fe   :  { %2896 = vrot.lane.b32.xlu0 %v2859_v22, %s3941_s23  ;;  %v5023_v22 = vpop.xlane.xlu0 %2013 }
 0x3ff   :  { %vm2056_vm8 = vcmp.ge.f32.partialorder %v4817_v57, %v5023_v22 }
 0x400   :  { %v2023_v56 = vpop.xlane.xlu1 %2022 }
 0x401   :  { %vm2059_vm12 = vcmp.ge.f32.partialorder %v4847_v48, %v2023_v56  ;;  %v2784_v48 = vand.u32 2147483647, %v2656_v45  ;;  %v2657_v56 = vsub.f32 %v5015_v9, %v4859_v50 }
 0x402   :  { %v5027_v8 = vpop.xlane.xlu0 %2010  ;;  %v2075_v32 = vsel %vm2059_vm12, %v4686_v53, 8 }
 0x403   :  { %v5040_v5 = vsel %vm2005_vm3, %v2075_v32, 2147483647  ;;  %v3308_v30 = vadd.f32 -0.055555556, %v2784_v48  ;;  %v2814_v32 = vmul.f32 4.5, %v2654_v14  ;;  %v2817_v3 = vmul.f32 4.5, %v2657_v56 }
 0x404   :  { %5976 = vst [vmem:[#allocation58_spill] sm:$0xff] %v5040_v5  ;;  %v2163_v20 = vshra.s32 %v5040_v5, 16  ;;  %vm2800_vm13 = vcmp.lt.f32.partialorder %v2784_v48, 0.11111111  ;;  %vm2055_vm11 = vcmp.ge.f32.partialorder %v4831_v61, %v5027_v8 }
 0x405   :  { %v2830_v9 = vmul.f32 %v2814_v32, %v2654_v14  ;;  %v2833_v5 = vmul.f32 %v2817_v3, %v2657_v56  ;;  %v5979_v14 = vld [vmem:[#allocation6_spill] sm:$0xff]  ;;  %v5065_v32 = vpop.xlane.xlu1 %2040  ;;  %v2071_v33 = vsel %vm2055_vm11, %v4686_v53, 8 }
 0x406   :  { %v5037_v37 = vpop.xlane.xlu0 %2025  ;;  %v5053_v51 = vcvt.s32.f32 %v2163_v20  ;;  %v5206_v61 = vsel %vm2005_vm3, %v2071_v33, 2147483647 }
 0x407   :  { %vm2060_vm12 = vcmp.ge.f32.partialorder %v4837_v19, %v5037_v37 }
 0x408   :  { %5978 = vst [vmem:[#allocation60_spill] sm:$0xff] %v5053_v51  ;;  %v2076_v8 = vsel %vm2060_vm12, %v4686_v53, 8 }
 0x409   :  { %v5216_v19 = vsel %vm2005_vm3, %v2076_v8, 2147483647 }
 0x40a   :  { %v5051_v42 = vpop.xlane.xlu0 %2019 }
 0x410   :  { %2408 = vmax.xlane.f32.xlu1 %v2407_v11  ;;  %v2816_v11 = vmul.f32 4.5, %v2656_v45 }
 0x412   :  { %v2832_v47 = vmul.f32 %v2816_v11, %v2656_v45  ;;  %v5057_v45 = vpop.xlane.xlu0 %2037  ;;  %v2862_v11 = vsel %vm2798_vm14, %v2830_v9, %v3306_v28  ;;  %vm2061_vm14 = vcmp.ge.f32.partialorder %v4843_v23, %v5013_v29 }
 0x414   :  { %2402 = vmax.xlane.f32.xlu1 %v2401_v38  ;;  %v2416_v38 = vsel %vm2005_vm3, %v5033_v46, -inf  ;;  %v2864_v44 = vsel %vm2800_vm13, %v2832_v47, %v3308_v30  ;;  %v1795_v47 = vand.u32 2147483647, %v5979_v14  ;;  %vm2058_vm13 = vcmp.ge.f32.partialorder %v4839_v2, %v5051_v42 }
 0x415   :  { %v2074_v37 = vsel %vm2058_vm13, %v4686_v53, 8  ;;  %v2178_v42 = vshra.s32 %v5216_v19, 16 }
 0x416   :  { %v5061_v30 = vpop.xlane.xlu0 %2031  ;;  %v3265_v28 = vadd.f32 -0.055555556, %v1795_v47  ;;  %vm1811_vm0 = vcmp.lt.f32.partialorder %v1795_v47, 0.11111111  ;;  %v3640_v47 = vunpack.i.h.bf16 %v4723_v34  ;;  %v2419_v34 = vsel %vm2005_vm3, %v5094_v41, -inf }
 0x417   :  { %v5228_v2 = vsel %vm2005_vm3, %v2074_v37, 2147483647 }
 0x418   :  { %v2148_v23 = vshra.s32 %v5228_v2, 16 }
 0x41a   :  { %v2050_v48 = vpop.xlane.xlu0 %2049 }
 0x41b   :  { %vm2068_vm1 = vcmp.ge.f32.partialorder %v4867_v36, %v2050_v48  ;;  %v3646_v48 = vunpack.i.h.bf16 %v4739_v49 }
 0x41d   :  { %2417 = vmax.xlane.f32.xlu0 %v2416_v38  ;;  %v2785_v38 = vand.u32 2147483647, %v2657_v56 }
 0x41e   :  { %v5068_v3 = vpop.xlane.xlu0 %2043 }
 0x41f   :  { %vm2801_vm15 = vcmp.lt.f32.partialorder %v2785_v38, 0.11111111 }
 0x421   :  { %2411 = vmax.xlane.f32.xlu0 %v2410_v0  ;;  %v3309_v0 = vadd.f32 -0.055555556, %v2785_v38 }
 0x422   :  { %v5073_v56 = vpop.xlane.xlu0 %2381 }
 0x423   :  { %v2865_v20 = vsel %vm2801_vm15, %v2833_v5, %v3309_v0  ;;  %v5071_v5 = vpop.xlane.xlu1 %2034  ;;  %5980 = vst [vmem:[#allocation6_spill] sm:$0xff] %v5073_v56  ;;  %vm2064_vm15 = vcmp.ge.f32.partialorder %v4851_v43, %v5057_v45 }
 0x425   :  { %2906 = vrot.lane.b32.xlu1 %v2864_v44, %s3941_s23  ;;  %2166 = vmin.xlane.f32.xlu0 %v5053_v51  ;;  %v1827_v44 = vmul.f32 4.5, %v5979_v14  ;;  %v2084_v51 = vsel %vm2068_vm1, %v4686_v53, 8  ;;  %vm2065_vm1 = vcmp.ge.f32.partialorder %v4859_v50, %v5065_v32 }
 0x427   :  { %v1843_v52 = vmul.f32 %v1827_v44, %v5979_v14  ;;  %v5075_v38 = vpop.xlane.xlu1 %2052  ;;  %v3634_v14 = vunpack.i.h.bf16 %v4732_v25  ;;  %v1650_v25 = vmul.f32 %v3640_v47, %v4703_v1  ;;  %v2655_v1 = vsub.f32 %v5021_v60, %v4863_v31 }
 0x429   :  { %2902 = vrot.lane.b32.xlu1 %v2862_v11, %s3941_s23  ;;  %v1875_v9 = vsel %vm1811_vm0, %v1843_v52, %v3265_v28  ;;  %v5077_v11 = vpop.xlane.xlu0 %2375  ;;  %vm2062_vm0 = vcmp.ge.f32.partialorder %v4855_v26, %v5061_v30 }
 0x42a   :  { %5981 = vst [vmem:[#allocation61_spill] sm:$0xff] %v5077_v11  ;;  %v2422_v28 = vsub.f32 %v4887_v18, %v5077_v11  ;;  %v1749_v18 = vmul.f32 %v3646_v48, %v4720_v15 }
 0x42b   :  { %v5079_v0 = vpop.xlane.xlu1 %2046 }
 0x42d   :  { %2908 = vrot.lane.b32.xlu1 %v2865_v20, %s3941_s23  ;;  %v2424_v20 = vsub.f32 %v4883_v24, %v5073_v56  ;;  %v5086_v44 = vpop.xlane.xlu0 %2393 }
 0x42e   :  { %5982 = vst [vmem:[#allocation62_spill] sm:$0xff] %v5086_v44 }
 0x42f   :  { %v2442_v52 = vmul.f32 1.442695, %v2424_v20  ;;  %v5092_v55 = vpop.xlane.xlu1 %2384  ;;  %v5101_v20 = vsel %vm2005_vm3, %v2084_v51, 2147483647  ;;  %v2428_v51 = vsub.f32 %v4899_v12, %v5086_v44 }
 0x430   :  { %5983 = vst [vmem:[#allocation63_spill] sm:$0xff] %v5092_v55  ;;  %v2298_v49 = vshra.s32 %v5101_v20, 16 }
 0x431   :  { %3862 = vpow2.f32 %v2442_v52  ;;  %v5105_v56 = vpop.permute.xlu0 %2886  ;;  %v2450_v15 = vmul.f32 1.442695, %v2428_v51 }
 0x435   :  { %v5113_v24 = vpop.xlane.xlu0 %2387 }
 0x436   :  { %5984 = vst [vmem:[#allocation64_spill] sm:$0xff] %v5113_v24  ;;  %v2426_v48 = vsub.f32 %v4911_v27, %v5113_v24 }
 0x43b   :  { %1922 = vrot.lane.b32.xlu0 %v1875_v9, %s3940_s2  ;;  %v1551_v9 = vmul.f32 %v3634_v14, %v4707_v40  ;;  %v2425_v40 = vsub.f32 %v4891_v21, %v5092_v55  ;;  %v2438_v14 = vmul.f32 1.442695, %v2422_v28 }
 0x43d   :  { %v1666_v11 = vadd.f32 %v1650_v25, %v1551_v9  ;;  %v2444_v47 = vmul.f32 1.442695, %v2425_v40  ;;  %3864 = vpow2.f32 %v2438_v14  ;;  %v5116_v9 = vcvt.s32.f32 %v2298_v49 }
 0x43e   :  { %v2783_v25 = vand.u32 2147483647, %v2655_v1  ;;  %v3863_v44 = vpop.eup %3862 }
 0x43f   :  { %v1765_v52 = vadd.f32 %v1749_v18, %v1666_v11  ;;  %3866 = vpow2.f32 %v2444_v47  ;;  %v2446_v18 = vmul.f32 1.442695, %v2426_v48  ;;  %v2476_v47 = vsel %vm2005_vm3, %v3863_v44, 0.0 }
 0x440   :  { %3868 = vpow2.f32 %v2450_v15  ;;  %v3307_v14 = vadd.f32 -0.055555556, %v2783_v25  ;;  %vm2799_vm4 = vcmp.lt.f32.partialorder %v2783_v25, 0.11111111 }
 0x441   :  { %v1941_v28 = vmul.f32 %v4929_v4, %v1765_v52  ;;  %v5122_v4 = vpop.permute.xlu0 %2892  ;;  %3870 = vpow2.f32 %v2446_v18 }
 0x443   :  { %v1960_v40 = vsel %vm1956_vm2, %v1941_v28, 0.0 }
 0x445   :  { %v5126_v52 = vpop.permute.xlu0 %2898 }
 0x44a   :  { %v3865_v51 = vpop.eup %3864 }
 0x44b   :  { %v2470_v28 = vsel %vm2005_vm3, %v3865_v51, 0.0 }
 0x44c   :  { %v3867_v15 = vpop.eup %3866 }
 0x44d   :  { %v2479_v25 = vsel %vm2005_vm3, %v3867_v15, 0.0  ;;  %v3869_v48 = vpop.eup %3868 }
 0x44e   :  { %v2488_v18 = vsel %vm2005_vm3, %v3869_v48, 0.0  ;;  %v5142_v48 = vpop.f32.mrf.mxu1 }
 0x44f   :  { %5987 = vst [vmem:[#allocation67_spill] sm:$0xff] %v5142_v48 }
 0x451   :  { %2420 = vmax.xlane.f32.xlu1 %v2419_v34  ;;  %v2815_v34 = vmul.f32 4.5, %v2655_v1 }
 0x453   :  { %v2831_v11 = vmul.f32 %v2815_v34, %v2655_v1 }
 0x455   :  { %v2863_v49 = vsel %vm2799_vm4, %v2831_v11, %v3307_v14  ;;  %v3871_v11 = vpop.eup %3870  ;;  %vm2063_vm4 = vcmp.ge.f32.partialorder %v4863_v31, %v5071_v5 }
 0x456   :  { %v2079_v37 = vsel %vm2063_vm4, %v4686_v53, 8 }
 0x457   :  { %v5286_v5 = vsel %vm2005_vm3, %v2079_v37, 2147483647 }
 0x45a   :  { %2301 = vmin.xlane.f32.xlu0 %v5116_v9 }
 0x45e   :  { %1961 = vadd.xlane.f32.xlu0 %v1960_v40 }
 0x462   :  { %2904 = vrot.lane.b32.xlu1 %v2863_v49, %s3941_s23  ;;  %2477 = vadd.xlane.f32.xlu0 %v2476_v47  ;;  %v2482_v47 = vsel %vm2005_vm3, %v3871_v11, 0.0 }
 0x466   :  { %2471 = vadd.xlane.f32.xlu0 %v2470_v28 }
 0x469   :  { %v5129_v1 = vpop.xlane.xlu0 %2405 }
 0x46a   :  { %5985 = vst [vmem:[#allocation65_spill] sm:$0xff] %v5129_v1  ;;  %v2432_v34 = vsub.f32 %v4964_v16, %v5129_v1  ;;  %2480 = vadd.xlane.f32.xlu0 %v2479_v25 }
 0x46c   :  { %v2458_v44 = vmul.f32 1.442695, %v2432_v34  ;;  %v2413_v34 = vsel %vm2005_vm3, %v5142_v48, -inf }
 0x46d   :  { %v5134_v40 = vpop.xlane.xlu0 %2399 }
 0x46e   :  { %5986 = vst [vmem:[#allocation66_spill] sm:$0xff] %v5134_v40  ;;  %3872 = vpow2.f32 %v2458_v44  ;;  %v2430_v14 = vsub.f32 %v4974_v62, %v5134_v40  ;;  %2489 = vadd.xlane.f32.xlu0 %v2488_v18  ;;  %v2660_v44 = vsub.f32 %v5033_v46, %v4867_v36 }
 0x470   :  { %v2454_v49 = vmul.f32 1.442695, %v2430_v14  ;;  %v2788_v18 = vand.u32 2147483647, %v2660_v44  ;;  %v2820_v11 = vmul.f32 4.5, %v2660_v44  ;;  %v2658_v14 = vsub.f32 %v5046_v59, %v4871_v39 }
 0x472   :  { %3874 = vpow2.f32 %v2454_v49  ;;  %2483 = vadd.xlane.f32.xlu0 %v2482_v47  ;;  %v2836_v49 = vmul.f32 %v2820_v11, %v2660_v44  ;;  %v3312_v47 = vadd.f32 -0.055555556, %v2788_v18  ;;  %vm2804_vm5 = vcmp.lt.f32.partialorder %v2788_v18, 0.11111111  ;;  %v5154_v44 = vpop.permute.xlu0 %2900 }
 0x473   :  { %5988 = vst [vmem:[#allocation68_spill] sm:$0xff] %v5154_v44 }
 0x476   :  { %v5157_v18 = vpop.permute.xlu0 %2896 }
 0x477   :  { %5989 = vst [vmem:[#allocation69_spill] sm:$0xff] %v5157_v18 }
 0x47b   :  { %v3873_v51 = vpop.eup %3872 }
 0x47c   :  { %v2500_v28 = vsel %vm2005_vm3, %v3873_v51, 0.0  ;;  %v2659_v51 = vsub.f32 %v5142_v48, %v4879_v17 }
 0x47d   :  { %2501 = vadd.xlane.f32.xlu0 %v2500_v28  ;;  %v2786_v28 = vand.u32 2147483647, %v2658_v14 }
 0x47e   :  { %v2819_v1 = vmul.f32 4.5, %v2659_v51  ;;  %v2787_v24 = vand.u32 2147483647, %v2659_v51 }
 0x47f   :  { %v3875_v15 = vpop.eup %3874  ;;  %vm2802_vm6 = vcmp.lt.f32.partialorder %v2786_v28, 0.11111111 }
 0x480   :  { %v2494_v25 = vsel %vm2005_vm3, %v3875_v15, 0.0  ;;  %v2818_v15 = vmul.f32 4.5, %v2658_v14  ;;  %v2835_v55 = vmul.f32 %v2819_v1, %v2659_v51  ;;  %v3311_v62 = vadd.f32 -0.055555556, %v2787_v24 }
 0x481   :  { %2495 = vadd.xlane.f32.xlu0 %v2494_v25  ;;  %v2868_v25 = vsel %vm2804_vm5, %v2836_v49, %v3312_v47  ;;  %vm2803_vm7 = vcmp.lt.f32.partialorder %v2787_v24, 0.11111111  ;;  %v2072_v51 = vsel %vm2056_vm8, %v4686_v53, 8  ;;  %vm2066_vm5 = vcmp.ge.f32.partialorder %v4871_v39, %v5068_v3 }
 0x482   :  { %v2834_v40 = vmul.f32 %v2818_v15, %v2658_v14  ;;  %v2867_v11 = vsel %vm2803_vm7, %v2835_v55, %v3311_v62  ;;  %v2223_v39 = vshra.s32 %v5286_v5, 16  ;;  %vm2067_vm7 = vcmp.ge.f32.partialorder %v4879_v17, %v5079_v0 }
 0x483   :  { %v2083_v37 = vsel %vm2067_vm7, %v4686_v53, 8 }
 0x486   :  { %2414 = vmax.xlane.f32.xlu1 %v2413_v34  ;;  %v3310_v34 = vadd.f32 -0.055555556, %v2786_v28 }
 0x488   :  { %v2866_v36 = vsel %vm2802_vm6, %v2834_v40, %v3310_v34  ;;  %v5179_v34 = vsel %vm2005_vm3, %v2072_v51, 2147483647  ;;  %v5219_v51 = vpop.xlane.xlu1 %2378  ;;  %vm2069_vm6 = vcmp.ge.f32.partialorder %v4875_v58, %v5075_v38 }
 0x489   :  { %v2118_v57 = vshra.s32 %v5179_v34, 16  ;;  %5993 = vst [vmem:[#allocation73_spill] sm:$0xff] %v5219_v51 }
 0x48b   :  { %v5192_v7 = vcvt.s32.f32 %v2118_v57 }
 0x497   :  { %2914 = vrot.lane.b32.xlu1 %v2868_v25, %s3941_s23 }
 0x49b   :  { %2910 = vrot.lane.b32.xlu1 %v2866_v36, %s3941_s23  ;;  %v2070_v36 = vsel %vm2054_vm9, %v4686_v53, 8 }
 0x49c   :  { %v5187_v22 = vsel %vm2005_vm3, %v2070_v36, 2147483647  ;;  %v5234_v36 = vpop.permute.xlu1 %2890 }
 0x49f   :  { %2912 = vrot.lane.b32.xlu1 %v2867_v11, %s3941_s23 }
 0x4a0   :  { %v5246_v57 = vpop.xlane.xlu1 %2396 }
 0x4a1   :  { %5994 = vst [vmem:[#allocation74_spill] sm:$0xff] %v5246_v57 }
 0x4a4   :  { %v5265_v8 = vpop.permute.xlu1 %2888 }
 0x4a6   :  { %v5159_v49 = vpop.xlane.xlu0 %2417 }
 0x4a7   :  { %5990 = vst [vmem:[#allocation70_spill] sm:$0xff] %v5159_v49  ;;  %v2436_v14 = vsub.f32 %v5033_v46, %v5159_v49  ;;  %v5318_v49 = vsel %vm2005_vm3, %v2083_v37, 2147483647 }
 0x4a9   :  { %v2466_v47 = vmul.f32 1.442695, %v2436_v14  ;;  %v2088_v14 = vshra.s32 %v5187_v22, 16 }
 0x4aa   :  { %v5163_v28 = vpop.xlane.xlu0 %2411 }
 0x4ab   :  { %5991 = vst [vmem:[#allocation71_spill] sm:$0xff] %v5163_v28  ;;  %3876 = vpow2.f32 %v2466_v47  ;;  %v2434_v1 = vsub.f32 %v5046_v59, %v5163_v28  ;;  %v5196_v47 = vsel %vm2005_vm3, %v2073_v35, 2147483647  ;;  %v5202_v13 = vcvt.s32.f32 %v2088_v14 }
 0x4ac   :  { %v5248_v35 = vcvt.s32.f32 %v2148_v23  ;;  %v2078_v14 = vsel %vm2062_vm0, %v4686_v53, 8  ;;  %v2082_v23 = vsel %vm2066_vm5, %v4686_v53, 8 }
 0x4ad   :  { %v2462_v24 = vmul.f32 1.442695, %v2434_v1  ;;  %v2133_v1 = vshra.s32 %v5196_v47, 16  ;;  %v5262_v30 = vsel %vm2005_vm3, %v2078_v14, 2147483647  ;;  %v2085_v14 = vsel %vm2069_vm6, %v4686_v53, 8 }
 0x4ae   :  { %v5167_v40 = vpop.xlane.xlu0 %2166  ;;  %v2208_v50 = vshra.s32 %v5262_v30, 16  ;;  %v5298_v3 = vsel %vm2005_vm3, %v2082_v23, 2147483647 }
 0x4af   :  { %3878 = vpow2.f32 %v2462_v24  ;;  %v5212_v24 = vcvt.s32.f32 %v2133_v1  ;;  %v2081_v1 = vsel %vm2065_vm1, %v4686_v53, 8  ;;  %v2268_v38 = vshra.s32 %v5298_v3, 16 }
 0x4b0   :  { %v5274_v32 = vsel %vm2005_vm3, %v2081_v1, 2147483647  ;;  %v5306_v1 = vcvt.s32.f32 %v2223_v39  ;;  %v2283_v39 = vshra.s32 %v5318_v49, 16 }
 0x4b1   :  { %v2253_v31 = vshra.s32 %v5274_v32, 16 }
 0x4b2   :  { %v1923_v55 = vpop.permute.xlu0 %1922  ;;  %v5329_v28 = vcvt.s32.f32 %v2283_v39 }
 0x4b3   :  { %v5170_v62 = vmul.f32 %v1923_v55, %v4809_v54  ;;  %v2103_v55 = vshra.s32 %v5206_v61, 16 }
 0x4b5   :  { %5992 = vst [vmem:[#allocation72_spill] sm:$0xff] %v5170_v62 }
 0x4b8   :  { %v3877_v15 = vpop.eup %3876 }
 0x4b9   :  { %v2512_v25 = vsel %vm2005_vm3, %v3877_v15, 0.0  ;;  %v5224_v15 = vcvt.s32.f32 %v2103_v55 }
 0x4ba   :  { %2513 = vadd.xlane.f32.xlu0 %v2512_v25  ;;  %v2077_v25 = vsel %vm2061_vm14, %v4686_v53, 8 }
 0x4bb   :  { %v5240_v29 = vsel %vm2005_vm3, %v2077_v25, 2147483647  ;;  %v5282_v25 = vcvt.s32.f32 %v2208_v50  ;;  %v5310_v50 = vsel %vm2005_vm3, %v2085_v14, 2147483647 }
 0x4bc   :  { %v3879_v11 = vpop.eup %3878  ;;  %v2193_v43 = vshra.s32 %v5240_v29, 16  ;;  %v2313_v23 = vshra.s32 %v5310_v50, 16 }
 0x4bd   :  { %v2506_v54 = vsel %vm2005_vm3, %v3879_v11, 0.0  ;;  %v5236_v11 = vcvt.s32.f32 %v2178_v42  ;;  %v5277_v42 = vpop.xlane.xlu1 %2390 }
 0x4be   :  { %2507 = vadd.xlane.f32.xlu0 %v2506_v54  ;;  %v2080_v54 = vsel %vm2064_vm15, %v4686_v53, 8  ;;  %v5258_v33 = vcvt.s32.f32 %v2193_v43  ;;  %5995 = vst [vmem:[#allocation75_spill] sm:$0xff] %v5277_v42  ;;  %v5294_v43 = vcvt.s32.f32 %v2253_v31  ;;  %v5314_v31 = vcvt.s32.f32 %v2268_v38 }
 0x4bf   :  { %v5252_v45 = vsel %vm2005_vm3, %v2080_v54, 2147483647  ;;  %v5323_v0 = vcvt.s32.f32 %v2313_v23  ;;  %v2661_v38 = vsub.f32 %v5094_v41, %v4875_v58 }
 0x4c0   :  { %v2238_v26 = vshra.s32 %v5252_v45, 16 }
 0x4c1   :  { %v5292_v54 = vpop.permute.xlu1 %2894  ;;  %v2789_v62 = vand.u32 2147483647, %v2661_v38  ;;  %v2821_v59 = vmul.f32 4.5, %v2661_v38 }
 0x4c2   :  { %v5270_v55 = vcvt.s32.f32 %v2238_v26  ;;  %5996 = vst [vmem:[#allocation76_spill] sm:$0xff] %v5292_v54 }
 0x4c3   :  { %2121 = vmin.xlane.f32.xlu1 %v5192_v7  ;;  %v2837_v23 = vmul.f32 %v2821_v59, %v2661_v38  ;;  %v3313_v18 = vadd.f32 -0.055555556, %v2789_v62  ;;  %vm2805_vm8 = vcmp.lt.f32.partialorder %v2789_v62, 0.11111111  ;;  %v2423_v59 = vsub.f32 %v4895_v10, %v5219_v51  ;;  %v6005_v62 = vld [vmem:[#allocation23_spill] sm:$0xff]  ;;  %v6009_v51 = vld [vmem:[#allocation9_spill] sm:$0xff] }
 0x4c4   :  { %v2429_v38 = vsub.f32 %v6005_v62, %v5246_v57 }
 0x4c5   :  { %v5304_v26 = vpop.xlane.xlu1 %2408  ;;  %v2869_v44 = vsel %vm2805_vm8, %v2837_v23, %v3313_v18  ;;  %v1940_v18 = vmul.f32 %v4923_v6, %v4753_v63  ;;  %v6006_v23 = vld [vmem:[#allocation7_spill] sm:$0xff] }
 0x4c6   :  { %5997 = vst [vmem:[#allocation77_spill] sm:$0xff] %v5304_v26  ;;  %v6011_v6 = vld [vmem:[#allocation55_spill] sm:$0xff] }
 0x4c7   :  { %2091 = vmin.xlane.f32.xlu1 %v5202_v13 }
 0x4c9   :  { %v5320_v17 = vpop.xlane.xlu1 %2402 }
 0x4ca   :  { %5998 = vst [vmem:[#allocation78_spill] sm:$0xff] %v5320_v17 }
 0x4cb   :  { %2136 = vmin.xlane.f32.xlu1 %v5212_v24 }
 0x4cd   :  { %v5327_v14 = vpop.permute.xlu1 %2906 }
 0x4ce   :  { %5999 = vst [vmem:[#allocation79_spill] sm:$0xff] %v5327_v14 }
 0x4cf   :  { %2106 = vmin.xlane.f32.xlu1 %v5224_v15 }
 0x4d1   :  { %v5334_v37 = vpop.permute.xlu1 %2902 }
 0x4d2   :  { %6000 = vst [vmem:[#allocation80_spill] sm:$0xff] %v5334_v37 }
 0x4d3   :  { %2181 = vmin.xlane.f32.xlu1 %v5236_v11 }
 0x4d5   :  { %v5336_v46 = vpop.permute.xlu1 %2908 }
 0x4d6   :  { %6001 = vst [vmem:[#allocation81_spill] sm:$0xff] %v5336_v46 }
 0x4d7   :  { %2151 = vmin.xlane.f32.xlu1 %v5248_v35 }
 0x4da   :  { %v5338_v16 = vpop.xlane.xlu1 %2420 }
 0x4db   :  { %2196 = vmin.xlane.f32.xlu1 %v5258_v33  ;;  %6002 = vst [vmem:[#allocation82_spill] sm:$0xff] %v5338_v16 }
 0x4de   :  { %v5341_v39 = vpop.permute.xlu1 %2904 }
 0x4df   :  { %2241 = vmin.xlane.f32.xlu1 %v5270_v55  ;;  %6003 = vst [vmem:[#allocation83_spill] sm:$0xff] %v5341_v39  ;;  %v6007_v39 = vld [vmem:[#allocation24_spill] sm:$0xff] }
 0x4e0   :  { %v1942_v27 = vmul.f32 %v6007_v39, %v6006_v23 }
 0x4e2   :  { %v1963_v57 = vsel %vm1956_vm2, %v1942_v27, 0.0 }
 0x4e3   :  { %2211 = vmin.xlane.f32.xlu1 %v5282_v25 }
 0x4e7   :  { %2256 = vmin.xlane.f32.xlu1 %v5294_v43 }
 0x4eb   :  { %2226 = vmin.xlane.f32.xlu1 %v5306_v1 }
 0x4ef   :  { %2271 = vmin.xlane.f32.xlu1 %v5314_v31 }
 0x4f3   :  { %2316 = vmin.xlane.f32.xlu1 %v5323_v0 }
 0x4f7   :  { %2286 = vmin.xlane.f32.xlu1 %v5329_v28 }
 0x508   :  { %2916 = vrot.lane.b32.xlu1 %v2869_v44, %s3941_s23  ;;  %v2440_v44 = vmul.f32 1.442695, %v2423_v59  ;;  %v2433_v59 = vsub.f32 %v6011_v6, %v5304_v26 }
 0x50f   :  { %v5343_v14 = vpop.xlane.xlu1 %2414 }
 0x510   :  { %6004 = vst [vmem:[#allocation84_spill] sm:$0xff] %v5343_v14  ;;  %v2435_v58 = vsub.f32 %v5142_v48, %v5343_v14 }
 0x512   :  { %v2464_v37 = vmul.f32 1.442695, %v2435_v58  ;;  %v2452_v58 = vmul.f32 1.442695, %v2429_v38  ;;  %v6013_v38 = vld [vmem:[#allocation27_spill] sm:$0xff] }
 0x514   :  { %3880 = vpow2.f32 %v2464_v37  ;;  %v6008_v37 = vld [vmem:[#allocation36_spill] sm:$0xff] }
 0x515   :  { %3882 = vpow2.f32 %v2440_v44  ;;  %v2427_v14 = vsub.f32 %v6008_v37, %v5277_v42  ;;  %v6012_v44 = vld [vmem:[#allocation11_spill] sm:$0xff]  ;;  %v2460_v42 = vmul.f32 1.442695, %v2433_v59 }
 0x516   :  { %3884 = vpow2.f32 %v2452_v58  ;;  %v1944_v23 = vmul.f32 %v6013_v38, %v6012_v44 }
 0x517   :  { %v2448_v63 = vmul.f32 1.442695, %v2427_v14 }
 0x518   :  { %v1969_v14 = vsel %vm1956_vm2, %v1944_v23, 0.0  ;;  %v2117_v23 = vand.u32 65535, %v5179_v34 }
 0x519   :  { %3886 = vpow2.f32 %v2448_v63 }
 0x51a   :  { %3888 = vpow2.f32 %v2460_v42 }
 0x521   :  { %v3881_v54 = vpop.eup %3880 }
 0x522   :  { %v2509_v46 = vsel %vm2005_vm3, %v3881_v54, 0.0  ;;  %v1957_v54 = vsel %vm1956_vm2, %v1940_v18, 0.0  ;;  %v2431_v18 = vsub.f32 %v5021_v60, %v5320_v17  ;;  %v3883_v58 = vpop.eup %3882 }
 0x523   :  { %2510 = vadd.xlane.f32.xlu0 %v2509_v46  ;;  %v6010_v46 = vld [vmem:[#allocation25_spill] sm:$0xff]  ;;  %v2473_v27 = vsel %vm2005_vm3, %v3883_v58, 0.0  ;;  %v2087_v58 = vand.u32 65535, %v5187_v22 }
 0x524   :  { %v1943_v48 = vmul.f32 %v6010_v46, %v6009_v51  ;;  %v2456_v51 = vmul.f32 1.442695, %v2431_v18 }
 0x526   :  { %v1966_v39 = vsel %vm1956_vm2, %v1943_v48, 0.0  ;;  %3890 = vpow2.f32 %v2456_v51  ;;  %v5371_v48 = vpop.permute.xlu1 %2914 }
 0x52a   :  { %v5374_v63 = vpop.permute.xlu1 %2910 }
 0x52c   :  { %1958 = vadd.xlane.f32.xlu1 %v1957_v54 }
 0x52e   :  { %v5378_v38 = vpop.permute.xlu1 %2912 }
 0x530   :  { %1964 = vadd.xlane.f32.xlu1 %v1963_v57  ;;  %v3885_v57 = vpop.eup %3884 }
 0x531   :  { %v2491_v54 = vsel %vm2005_vm3, %v3885_v57, 0.0  ;;  %v3887_v46 = vpop.eup %3886 }
 0x532   :  { %v2485_v42 = vsel %vm2005_vm3, %v3887_v46, 0.0  ;;  %v3889_v59 = vpop.eup %3888  ;;  %v2132_v46 = vand.u32 65535, %v5196_v47 }
 0x533   :  { %v3891_v44 = vpop.eup %3890 }
 0x534   :  { %1967 = vadd.xlane.f32.xlu1 %v1966_v39  ;;  %v2503_v39 = vsel %vm2005_vm3, %v3889_v59, 0.0  ;;  %v2497_v18 = vsel %vm2005_vm3, %v3891_v44, 0.0  ;;  %v2134_v59 = vcvt.s32.f32 %v2132_v46  ;;  %v2102_v44 = vand.u32 65535, %v5206_v61 }
 0x538   :  { %1970 = vadd.xlane.f32.xlu1 %v1969_v14  ;;  %v2119_v14 = vcvt.s32.f32 %v2117_v23  ;;  %v6015_v23 = vld [vmem:[#allocation60_spill] sm:$0xff] }
 0x539   :  { %vm2168_vm12 = vcmp.eq.f32.partialorder %v6015_v23, %v5167_v40 }
 0x53c   :  { %2474 = vadd.xlane.f32.xlu1 %v2473_v27 }
 0x540   :  { %2492 = vadd.xlane.f32.xlu1 %v2491_v54  ;;  %v2089_v54 = vcvt.s32.f32 %v2087_v58 }
 0x544   :  { %2486 = vadd.xlane.f32.xlu1 %v2485_v42 }
 0x548   :  { %2504 = vadd.xlane.f32.xlu1 %v2503_v39  ;;  %v6014_v39 = vld [vmem:[#allocation58_spill] sm:$0xff] }
 0x549   :  { %v2162_v22 = vand.u32 65535, %v6014_v39 }
 0x54c   :  { %2498 = vadd.xlane.f32.xlu1 %v2497_v18  ;;  %v5382_v51 = vpop.xlane.xlu1 %2121  ;;  %v2104_v18 = vcvt.s32.f32 %v2102_v44 }
 0x54d   :  { %vm2123_vm9 = vcmp.eq.f32.partialorder %v5192_v7, %v5382_v51 }
 0x54e   :  { %v2124_v27 = vsel %vm2123_vm9, %v2119_v14, inf  ;;  %v2177_v14 = vand.u32 65535, %v5216_v19 }
 0x54f   :  { %2125 = vmin.xlane.f32.xlu0 %v2124_v27 }
 0x550   :  { %v5387_v57 = vpop.xlane.xlu1 %2091 }
 0x551   :  { %vm2093_vm10 = vcmp.eq.f32.partialorder %v5202_v13, %v5387_v57  ;;  %v2164_v13 = vcvt.s32.f32 %v2162_v22 }
 0x552   :  { %v2094_v34 = vsel %vm2093_vm10, %v2089_v54, inf  ;;  %v2147_v54 = vand.u32 65535, %v5228_v2  ;;  %v2237_v2 = vand.u32 65535, %v5252_v45 }
 0x553   :  { %2095 = vmin.xlane.f32.xlu1 %v2094_v34  ;;  %v2169_v58 = vsel %vm2168_vm12, %v2164_v13, inf }
 0x554   :  { %v5392_v42 = vpop.xlane.xlu1 %2136  ;;  %v2149_v19 = vcvt.s32.f32 %v2147_v54 }
 0x555   :  { %vm2138_vm11 = vcmp.eq.f32.partialorder %v5212_v24, %v5392_v42  ;;  %v2179_v24 = vcvt.s32.f32 %v2177_v14 }
 0x556   :  { %v2139_v7 = vsel %vm2138_vm11, %v2134_v59, inf  ;;  %v2192_v59 = vand.u32 65535, %v5240_v29  ;;  %v2207_v29 = vand.u32 65535, %v5262_v30 }
 0x557   :  { %2140 = vmin.xlane.f32.xlu1 %v2139_v7  ;;  %v2239_v7 = vcvt.s32.f32 %v2237_v2  ;;  %v2282_v2 = vand.u32 65535, %v5318_v49 }
 0x558   :  { %v5400_v47 = vpop.xlane.xlu1 %2106  ;;  %v2194_v22 = vcvt.s32.f32 %v2192_v59  ;;  %v2209_v45 = vcvt.s32.f32 %v2207_v29  ;;  %v2312_v59 = vand.u32 65535, %v5310_v50  ;;  %v6017_v29 = vld [vmem:[#allocation28_spill] sm:$0xff] }
 0x559   :  { %vm2108_vm13 = vcmp.eq.f32.partialorder %v5224_v15, %v5400_v47  ;;  %v2284_v50 = vcvt.s32.f32 %v2282_v2 }
 0x55a   :  { %v2109_v27 = vsel %vm2108_vm13, %v2104_v18, inf }
 0x55b   :  { %2170 = vmin.xlane.f32.xlu1 %v2169_v58  ;;  %2110 = vmin.xlane.f32.xlu0 %v2109_v27 }
 0x55c   :  { %v5405_v61 = vpop.xlane.xlu1 %2181 }
 0x55d   :  { %vm2183_vm14 = vcmp.eq.f32.partialorder %v5236_v11, %v5405_v61 }
 0x55e   :  { %v2184_v46 = vsel %vm2183_vm14, %v2179_v24, inf  ;;  %v5437_v24 = vpop.xlane.xlu0 %2301 }
 0x55f   :  { %2185 = vmin.xlane.f32.xlu0 %v2184_v46  ;;  %vm2303_vm7 = vcmp.eq.f32.partialorder %v5116_v9, %v5437_v24 }
 0x560   :  { %v5410_v34 = vpop.xlane.xlu1 %2151 }
 0x561   :  { %vm2153_vm15 = vcmp.eq.f32.partialorder %v5248_v35, %v5410_v34  ;;  %v2437_v35 = vsub.f32 %v5094_v41, %v5338_v16  ;;  %v2143_v16 = vcvt.f32.s32 %v5392_v42 }
 0x562   :  { %v2154_v15 = vsel %vm2153_vm15, %v2149_v19, inf  ;;  %v2267_v19 = vand.u32 65535, %v5298_v3 }
 0x563   :  { %2155 = vmin.xlane.f32.xlu0 %v2154_v15  ;;  %v2468_v18 = vmul.f32 1.442695, %v2437_v35 }
 0x564   :  { %v5415_v39 = vpop.xlane.xlu1 %2196 }
 0x565   :  { %vm2198_vm0 = vcmp.eq.f32.partialorder %v5258_v33, %v5415_v39  ;;  %v2252_v33 = vand.u32 65535, %v5274_v32  ;;  %3892 = vpow2.f32 %v2468_v18  ;;  %v6020_v18 = vld [vmem:[#allocation8_spill] sm:$0xff] }
 0x566   :  { %v2199_v11 = vsel %vm2198_vm0, %v2194_v22, inf  ;;  %v2314_v22 = vcvt.s32.f32 %v2312_v59  ;;  %v6026_v59 = vld [vmem:[#allocation13_spill] sm:$0xff] }
 0x567   :  { %2200 = vmin.xlane.f32.xlu0 %v2199_v11  ;;  %v2254_v58 = vcvt.s32.f32 %v2252_v33 }
 0x568   :  { %v5420_v44 = vpop.xlane.xlu1 %2241 }
 0x569   :  { %vm2243_vm1 = vcmp.eq.f32.partialorder %v5270_v55, %v5420_v44  ;;  %v2222_v55 = vand.u32 65535, %v5286_v5 }
 0x56a   :  { %v2244_v23 = vsel %vm2243_vm1, %v2239_v7, inf  ;;  %vm2950_vm1 = vcmask 261120  }
 0x56b   :  { %2245 = vmin.xlane.f32.xlu1 %v2244_v23  ;;  %v2224_v54 = vcvt.s32.f32 %v2222_v55  ;;  %v6018_v23 = vld [vmem:[#allocation12_spill] sm:$0xff] }
 0x56c   :  { %v5427_v13 = vpop.xlane.xlu1 %2211  ;;  %v6022_v55 = vld [vmem:[#allocation16_spill] sm:$0xff] }
 0x56d   :  { %vm2213_vm4 = vcmp.eq.f32.partialorder %v5282_v25, %v5427_v13  ;;  %v2297_v25 = vand.u32 65535, %v5101_v20 }
 0x56e   :  { %v2214_v14 = vsel %vm2213_vm4, %v2209_v45, inf  ;;  %v6019_v45 = vld [vmem:[#allocation29_spill] sm:$0xff] }
 0x56f   :  { %2215 = vmin.xlane.f32.xlu1 %v2214_v14  ;;  %v1945_v49 = vmul.f32 %v6019_v45, %v6018_v23  ;;  %v6021_v14 = vld [vmem:[#allocation26_spill] sm:$0xff] }
 0x570   :  { %v5432_v30 = vpop.xlane.xlu1 %2256  ;;  %v6032_v45 = vld [vmem:[#allocation18_spill] sm:$0xff] }
 0x571   :  { %vm2258_vm5 = vcmp.eq.f32.partialorder %v5294_v43, %v5432_v30  ;;  %v2299_v43 = vcvt.s32.f32 %v2297_v25 }
 0x572   :  { %v2259_v27 = vsel %vm2258_vm5, %v2254_v58, inf  ;;  %v3893_v7 = vpop.eup %3892  ;;  %v1946_v58 = vmul.f32 %v6021_v14, %v6020_v18  ;;  %v6034_v14 = vld [vmem:[#allocation17_spill] sm:$0xff] }
 0x573   :  { %2260 = vmin.xlane.f32.xlu1 %v2259_v27  ;;  %v2304_v15 = vsel %vm2303_vm7, %v2299_v43, inf  ;;  %v2515_v33 = vsel %vm2005_vm3, %v3893_v7, 0.0  ;;  %v6023_v27 = vld [vmem:[#allocation33_spill] sm:$0xff]  ;;  %v6025_v43 = vld [vmem:[#allocation30_spill] sm:$0xff] }
 0x574   :  { %v5439_v32 = vpop.xlane.xlu1 %2226  ;;  %v1975_v2 = vsel %vm1956_vm2, %v1946_v58, 0.0  ;;  %v6035_v58 = vld [vmem:[#allocation34_spill] sm:$0xff] }
 0x575   :  { %vm2228_vm6 = vcmp.eq.f32.partialorder %v5306_v1, %v5439_v32  ;;  %v2269_v1 = vcvt.s32.f32 %v2267_v19 }
 0x576   :  { %v2229_v46 = vsel %vm2228_vm6, %v2224_v54, inf  ;;  %v1949_v54 = vmul.f32 %v6023_v27, %v6022_v55  ;;  %v1954_v55 = vmul.f32 %v6035_v58, %v6034_v14 }
 0x577   :  { %2230 = vmin.xlane.f32.xlu0 %v2229_v46  ;;  %v6024_v46 = vld [vmem:[#allocation15_spill] sm:$0xff] }
 0x578   :  { %v5446_v5 = vpop.xlane.xlu1 %2271  ;;  %v1948_v19 = vmul.f32 %v6025_v43, %v6024_v46 }
 0x579   :  { %vm2273_vm8 = vcmp.eq.f32.partialorder %v5314_v31, %v5446_v5  ;;  %v6016_v31 = vld [vmem:[#allocation10_spill] sm:$0xff] }
 0x57a   :  { %v2274_v9 = vsel %vm2273_vm8, %v2269_v1, inf  ;;  %v1947_v35 = vmul.f32 %v6017_v29, %v6016_v31  ;;  %v6031_v31 = vld [vmem:[#allocation40_spill] sm:$0xff]  ;;  %v1981_v23 = vsel %vm1956_vm2, %v1948_v19, 0.0 }
 0x57b   :  { %2305 = vmin.xlane.f32.xlu0 %v2304_v15  ;;  %v6027_v15 = vld [vmem:[#allocation32_spill] sm:$0xff] }
 0x57c   :  { %v5452_v20 = vpop.xlane.xlu1 %2316  ;;  %v1978_v25 = vsel %vm1956_vm2, %v1947_v35, 0.0  ;;  %v1951_v1 = vmul.f32 %v6027_v15, %v6026_v59 }
 0x57d   :  { %vm2318_vm9 = vcmp.eq.f32.partialorder %v5323_v0, %v5452_v20 }
 0x57e   :  { %v2319_v11 = vsel %vm2318_vm9, %v2314_v22, inf  ;;  %v1984_v22 = vsel %vm1956_vm2, %v1949_v54, 0.0  ;;  %v1990_v35 = vsel %vm1956_vm2, %v1951_v1, 0.0  ;;  %v1999_v54 = vsel %vm1956_vm2, %v1954_v55, 0.0 }
 0x57f   :  { %2275 = vmin.xlane.f32.xlu0 %v2274_v9  ;;  %2320 = vmin.xlane.f32.xlu1 %v2319_v11  ;;  %v6028_v9 = vld [vmem:[#allocation14_spill] sm:$0xff]  ;;  %v6029_v11 = vld [vmem:[#allocation31_spill] sm:$0xff] }
 0x580   :  { %v5457_v3 = vpop.xlane.xlu1 %2286  ;;  %v1950_v7 = vmul.f32 %v6029_v11, %v6028_v9 }
 0x581   :  { %vm2288_vm10 = vcmp.eq.f32.partialorder %v5329_v28, %v5457_v3  ;;  %v1972_v28 = vsel %vm1956_vm2, %v1945_v49, 0.0  ;;  %v6033_v49 = vld [vmem:[#allocation37_spill] sm:$0xff] }
 0x582   :  { %v2289_v0 = vsel %vm2288_vm10, %v2284_v50, inf  ;;  %v6030_v50 = vld [vmem:[#allocation19_spill] sm:$0xff]  ;;  %v1987_v18 = vsel %vm1956_vm2, %v1950_v7, 0.0 }
 0x583   :  { %2516 = vadd.xlane.f32.xlu0 %v2515_v33  ;;  %2290 = vmin.xlane.f32.xlu1 %v2289_v0  ;;  %v1953_v29 = vmul.f32 %v6031_v31, %v6030_v50  ;;  %v1952_v33 = vmul.f32 %v6033_v49, %v6032_v45 }
 0x584   :  { %v5500_v19 = vpop.permute.xlu1 %2916 }
 0x585   :  { %v1996_v0 = vsel %vm1956_vm2, %v1953_v29, 0.0  ;;  %v1993_v27 = vsel %vm1956_vm2, %v1952_v33, 0.0  ;;  %v2128_v33 = vcvt.f32.s32 %v5382_v51 }
 0x587   :  { %1979 = vadd.xlane.f32.xlu0 %v1978_v25  ;;  %1973 = vadd.xlane.f32.xlu1 %v1972_v28  ;;  %v5492_v25 = vpop.xlane.xlu0 %1961  ;;  %v2129_v58 = vshll.u32 %v2128_v33, 16 }
 0x58b   :  { %1985 = vadd.xlane.f32.xlu0 %v1984_v22  ;;  %1976 = vadd.xlane.f32.xlu1 %v1975_v2  ;;  %v5494_v28 = vpop.xlane.xlu0 %2477 }
 0x58c   :  { %3894 = vlog2.f32 %v5494_v28 }
 0x58f   :  { %1991 = vadd.xlane.f32.xlu0 %v1990_v35  ;;  %1982 = vadd.xlane.f32.xlu1 %v1981_v23  ;;  %v5496_v46 = vpop.xlane.xlu0 %2471 }
 0x590   :  { %3896 = vlog2.f32 %v5496_v46  ;;  %v6062_v46 = vld [vmem:[#allocation6_spill] sm:$0xff] }
 0x593   :  { %1997 = vadd.xlane.f32.xlu0 %v1996_v0  ;;  %1988 = vadd.xlane.f32.xlu1 %v1987_v18  ;;  %v5498_v43 = vpop.xlane.xlu0 %2480  ;;  %v2098_v0 = vcvt.f32.s32 %v5387_v57 }
 0x594   :  { %3898 = vlog2.f32 %v5498_v43  ;;  %v6063_v43 = vld [vmem:[#allocation35_spill] sm:$0xff] }
 0x597   :  { %1994 = vadd.xlane.f32.xlu1 %v1993_v27  ;;  %v5504_v15 = vpop.xlane.xlu0 %2489 }
 0x59b   :  { %2000 = vadd.xlane.f32.xlu1 %v1999_v54  ;;  %v5508_v22 = vpop.xlane.xlu0 %2483  ;;  %v2099_v54 = vshll.u32 %v2098_v0, 16  ;;  %v2113_v0 = vcvt.f32.s32 %v5400_v47 }
 0x59f   :  { %v5512_v9 = vpop.xlane.xlu0 %2501 }
 0x5a0   :  { %6036 = vst [vmem:[#allocation23_spill] sm:$0xff] %v5512_v9 }
 0x5a3   :  { %v5518_v50 = vpop.xlane.xlu0 %2495 }
 0x5a7   :  { %v5522_v29 = vpop.xlane.xlu0 %2513 }
 0x5a8   :  { %6038 = vst [vmem:[#allocation24_spill] sm:$0xff] %v5522_v29  ;;  %v6042_v29 = vld [vmem:[#allocation5_spill] sm:$0xff] }
 0x5ab   :  { %v5526_v23 = vpop.xlane.xlu0 %2507 }
 0x5ac   :  { %6039 = vst [vmem:[#allocation36_spill] sm:$0xff] %v5526_v23  ;;  %v6044_v23 = vld [vmem:[#allocation20_spill] sm:$0xff] }
 0x5af   :  { %v5530_v49 = vpop.xlane.xlu0 %2510 }
 0x5b0   :  { %6040 = vst [vmem:[#allocation9_spill] sm:$0xff] %v5530_v49  ;;  %v6043_v49 = vmov 0.0  }
 0x5b5   :  { %v5502_v59 = vpop.xlane.xlu1 %1958 }
 0x5b9   :  { %v5506_v1 = vpop.xlane.xlu1 %1964 }
 0x5bd   :  { %v5510_v2 = vpop.xlane.xlu1 %1967 }
 0x5c1   :  { %v5514_v11 = vpop.xlane.xlu1 %1970 }
 0x5c2   :  { %6037 = vst [vmem:[#allocation7_spill] sm:$0xff] %v5514_v11 }
 0x5c5   :  { %v5516_v7 = vpop.xlane.xlu1 %2474 }
 0x5c6   :  { %3900 = vlog2.f32 %v5516_v7 }
 0x5c7   :  { %3902 = vlog2.f32 %v5508_v22 }
 0x5c8   :  { %3904 = vlog2.f32 %v5504_v15 }
 0x5c9   :  { %v5520_v31 = vpop.xlane.xlu1 %2492 }
 0x5ca   :  { %3906 = vlog2.f32 %v5520_v31 }
 0x5cd   :  { %v5524_v35 = vpop.xlane.xlu1 %2486 }
 0x5ce   :  { %3908 = vlog2.f32 %v5524_v35 }
 0x5d1   :  { %v5528_v45 = vpop.xlane.xlu1 %2504 }
 0x5d2   :  { %3910 = vlog2.f32 %v5528_v45 }
 0x5d3   :  { %3912 = vlog2.f32 %v5518_v50 }
 0x5d5   :  { %v5534_v18 = vpop.xlane.xlu1 %2498 }
 0x5d6   :  { %6041 = vst [vmem:[#allocation25_spill] sm:$0xff] %v5534_v18 }
 0x5d8   :  { %v2126_v14 = vpop.xlane.xlu0 %2125 }
 0x5d9   :  { %v2127_v55 = vcvt.f32.s32 %v2126_v14  ;;  %v2144_v14 = vshll.u32 %v2143_v16, 16  ;;  %v2188_v16 = vcvt.f32.s32 %v5405_v61 }
 0x5db   :  { %v2130_v27 = vadd.s32 %v2129_v58, %v2127_v55  ;;  %v2189_v61 = vshll.u32 %v2188_v16, 16 }
 0x5dc   :  { %v2096_v17 = vpop.xlane.xlu1 %2095 }
 0x5dd   :  { %v2097_v26 = vcvt.f32.s32 %v2096_v17  ;;  %vm2328_vm11 = vcmp.eq.s32.totalorder %v4686_v53, %v2130_v27  ;;  %vm2664_vm12 = vcmp.eq.s32.totalorder %v6042_v29, %v2130_v27  ;;  %vm2680_vm13 = vcmp.ge.s32.totalorder %v2130_v27, 1 }
 0x5de   :  { %v3268_v51 = vsel %vm2328_vm11, 1.0, %v6043_v49  ;;  %vm2728_vm14 = vmand %vm2664_vm12, %vm2680_vm13  ;;  %v2173_v27 = vcvt.f32.s32 %v5167_v40 }
 0x5df   :  { %v2100_v57 = vadd.s32 %v2099_v54, %v2097_v26  ;;  %v2568_v18 = vmul.f32 %v6044_v23, %v3268_v51  ;;  %v3284_v33 = vsel %vm2728_vm14, 1.0, %v6043_v49  ;;  %v6045_v23 = vld [vmem:[#allocation21_spill] sm:$0xff] }
 0x5e0   :  { %v2141_v58 = vpop.xlane.xlu1 %2140  ;;  %v2936_v42 = vmul.f32 %v3284_v33, %v5234_v36  ;;  %v2114_v36 = vshll.u32 %v2113_v0, 16  ;;  %v2174_v9 = vshll.u32 %v2173_v27, 16 }
 0x5e1   :  { %v2142_v17 = vcvt.f32.s32 %v2141_v58  ;;  %v2588_v55 = vsel %vm2005_vm3, %v2568_v18, 0.0  ;;  %vm2326_vm15 = vcmp.eq.s32.totalorder %v4686_v53, %v2100_v57  ;;  %vm2662_vm0 = vcmp.eq.s32.totalorder %v6042_v29, %v2100_v57 }
 0x5e2   :  { %2589 = vadd.xlane.f32.xlu0 %v2588_v55  ;;  %v3266_v26 = vsel %vm2326_vm15, 1.0, %v6043_v49  ;;  %vm2678_vm4 = vcmp.ge.s32.totalorder %v2100_v57, 1  ;;  %v2957_v11 = vsel %vm2950_vm1, %v2936_v42, 0.0  ;;  %v2158_v42 = vcvt.f32.s32 %v5410_v34 }
 0x5e3   :  { %v2145_v47 = vadd.s32 %v2144_v14, %v2142_v17  ;;  %v2566_v54 = vmul.f32 %v3266_v26, %v6045_v23  ;;  %vm2726_vm5 = vmand %vm2662_vm0, %vm2678_vm4 }
 0x5e4   :  { %v2111_v51 = vpop.xlane.xlu0 %2110  ;;  %v2171_v18 = vpop.xlane.xlu1 %2170  ;;  %v3282_v33 = vsel %vm2726_vm5, 1.0, %v6043_v49 }
 0x5e5   :  { %v2112_v58 = vcvt.f32.s32 %v2111_v51  ;;  %v2582_v40 = vsel %vm2005_vm3, %v2566_v54, 0.0  ;;  %v2934_v55 = vmul.f32 %v3282_v33, %v5105_v56  ;;  %vm2665_vm6 = vcmp.eq.s32.totalorder %v6042_v29, %v2145_v47 }
 0x5e6   :  { %2958 = vadd.xlane.f32.xlu0 %v2957_v11  ;;  %2583 = vadd.xlane.f32.xlu1 %v2582_v40  ;;  %vm2681_vm7 = vcmp.ge.s32.totalorder %v2145_v47, 1  ;;  %vm2329_vm8 = vcmp.eq.s32.totalorder %v4686_v53, %v2145_v47  ;;  %v2172_v14 = vcvt.f32.s32 %v2171_v18  ;;  %v2203_v51 = vcvt.f32.s32 %v5415_v39 }
 0x5e7   :  { %v2115_v57 = vadd.s32 %v2114_v36, %v2112_v58  ;;  %vm2729_vm9 = vmand %vm2665_vm6, %vm2681_vm7  ;;  %v3269_v0 = vsel %vm2329_vm8, 1.0, %v6043_v49  ;;  %v2951_v26 = vsel %vm2950_vm1, %v2934_v55, 0.0 }
 0x5e8   :  { %v2186_v17 = vpop.xlane.xlu0 %2185  ;;  %v3285_v56 = vsel %vm2729_vm9, 1.0, %v6043_v49  ;;  %v2569_v11 = vmul.f32 %v4891_v21, %v3269_v0  ;;  %v5566_v47 = vadd.s32 %v2174_v9, %v2172_v14  ;;  %v2159_v21 = vshll.u32 %v2158_v42, 16 }
 0x5e9   :  { %v2187_v27 = vcvt.f32.s32 %v2186_v17  ;;  %v2937_v23 = vmul.f32 %v3285_v56, %v5122_v4  ;;  %vm2327_vm10 = vcmp.eq.s32.totalorder %v4686_v53, %v2115_v57  ;;  %vm2663_vm11 = vcmp.eq.s32.totalorder %v6042_v29, %v2115_v57 }
 0x5ea   :  { %2952 = vadd.xlane.f32.xlu1 %v2951_v26  ;;  %v3267_v16 = vsel %vm2327_vm10, 1.0, %v6043_v49  ;;  %vm2679_vm12 = vcmp.ge.s32.totalorder %v2115_v57, 1  ;;  %v2248_v4 = vcvt.f32.s32 %v5420_v44  ;;  %v2591_v40 = vsel %vm2005_vm3, %v2569_v11, 0.0 }
 0x5eb   :  { %v2190_v34 = vadd.s32 %v2189_v61, %v2187_v27  ;;  %v2960_v54 = vsel %vm2950_vm1, %v2937_v23, 0.0  ;;  %v2567_v36 = vmul.f32 %v3267_v16, %v4895_v10  ;;  %vm2727_vm13 = vmand %vm2663_vm11, %vm2679_vm12  ;;  %vm2331_vm5 = vcmp.eq.s32.totalorder %v4686_v53, %v5566_v47  ;;  %v6046_v16 = vld [vmem:[#allocation22_spill] sm:$0xff] }
 0x5ec   :  { %2961 = vadd.xlane.f32.xlu0 %v2960_v54  ;;  %v2156_v18 = vpop.xlane.xlu0 %2155  ;;  %v3283_v33 = vsel %vm2727_vm13, 1.0, %v6043_v49  ;;  %v2204_v61 = vshll.u32 %v2203_v51, 16  ;;  %v2249_v57 = vshll.u32 %v2248_v4, 16  ;;  %vm2667_vm10 = vcmp.eq.s32.totalorder %v6042_v29, %v5566_v47 }
 0x5ed   :  { %v2157_v58 = vcvt.f32.s32 %v2156_v18  ;;  %v2585_v9 = vsel %vm2005_vm3, %v2567_v36, 0.0  ;;  %vm2332_vm14 = vcmp.eq.s32.totalorder %v4686_v53, %v2190_v34  ;;  %vm2668_vm15 = vcmp.eq.s32.totalorder %v6042_v29, %v2190_v34  ;;  %v6047_v36 = vld [vmem:[#allocation76_spill] sm:$0xff] }
 0x5ee   :  { %2592 = vadd.xlane.f32.xlu1 %v2591_v40  ;;  %v3272_v10 = vsel %vm2332_vm14, 1.0, %v6043_v49  ;;  %vm2684_vm0 = vcmp.ge.s32.totalorder %v2190_v34, 1  ;;  %v2935_v55 = vmul.f32 %v3283_v33, %v5265_v8  ;;  %v3271_v8 = vsel %vm2331_vm5, 1.0, %v6043_v49 }
 0x5ef   :  { %v2160_v39 = vadd.s32 %v2159_v21, %v2157_v58  ;;  %v2572_v44 = vmul.f32 %v4899_v12, %v3272_v10  ;;  %vm2732_vm4 = vmand %vm2668_vm15, %vm2684_vm0  ;;  %v2218_v12 = vcvt.f32.s32 %v5427_v13  ;;  %vm2683_vm11 = vcmp.ge.s32.totalorder %v5566_v47, 1 }
 0x5f0   :  { %2586 = vadd.xlane.f32.xlu0 %v2585_v9  ;;  %v2201_v14 = vpop.xlane.xlu0 %2200  ;;  %v3288_v0 = vsel %vm2732_vm4, 1.0, %v6043_v49  ;;  %v2954_v11 = vsel %vm2950_vm1, %v2935_v55, 0.0  ;;  %v2263_v40 = vcvt.f32.s32 %v5432_v30  ;;  %v2571_v10 = vmul.f32 %v3271_v8, %v6008_v37  ;;  %vm2731_vm0 = vmand %vm2667_vm10, %vm2683_vm11 }
 0x5f1   :  { %v2202_v42 = vcvt.f32.s32 %v2201_v14  ;;  %v2600_v17 = vsel %vm2005_vm3, %v2572_v44, 0.0  ;;  %v2940_v26 = vmul.f32 %v3288_v0, %v5126_v52  ;;  %vm2666_vm6 = vcmp.eq.s32.totalorder %v6042_v29, %v2160_v39 }
 0x5f2   :  { %2601 = vadd.xlane.f32.xlu1 %v2600_v17  ;;  %vm2682_vm7 = vcmp.ge.s32.totalorder %v2160_v39, 1  ;;  %vm2330_vm8 = vcmp.eq.s32.totalorder %v4686_v53, %v2160_v39  ;;  %v2219_v58 = vshll.u32 %v2218_v12, 16  ;;  %v3287_v14 = vsel %vm2731_vm0, 1.0, %v6043_v49 }
 0x5f3   :  { %v2205_v56 = vadd.s32 %v2204_v61, %v2202_v42  ;;  %vm2730_vm9 = vmand %vm2666_vm6, %vm2682_vm7  ;;  %v3270_v27 = vsel %vm2330_vm8, 1.0, %v6043_v49  ;;  %v2969_v23 = vsel %vm2950_vm1, %v2940_v26, 0.0  ;;  %v6048_v61 = vld [vmem:[#allocation68_spill] sm:$0xff]  ;;  %v2233_v47 = vcvt.f32.s32 %v5439_v32  ;;  %v6049_v42 = vld [vmem:[#allocation39_spill] sm:$0xff] }
 0x5f4   :  { %2955 = vadd.xlane.f32.xlu0 %v2954_v11  ;;  %v2246_v52 = vpop.xlane.xlu1 %2245  ;;  %v3286_v13 = vsel %vm2730_vm9, 1.0, %v6043_v49  ;;  %v2570_v34 = vmul.f32 %v3270_v27, %v6046_v16  ;;  %v2264_v26 = vshll.u32 %v2263_v40, 16  ;;  %v2597_v8 = vsel %vm2005_vm3, %v2571_v10, 0.0  ;;  %v6050_v11 = vld [vmem:[#allocation69_spill] sm:$0xff] }
 0x5f5   :  { %v2247_v54 = vcvt.f32.s32 %v2246_v52  ;;  %v2938_v21 = vmul.f32 %v3286_v13, %v6047_v36  ;;  %vm2333_vm12 = vcmp.eq.s32.totalorder %v4686_v53, %v2205_v56  ;;  %vm2669_vm13 = vcmp.eq.s32.totalorder %v6042_v29, %v2205_v56 }
 0x5f6   :  { %2970 = vadd.xlane.f32.xlu1 %v2969_v23  ;;  %v3273_v51 = vsel %vm2333_vm12, 1.0, %v6043_v49  ;;  %vm2685_vm14 = vcmp.ge.s32.totalorder %v2205_v56, 1  ;;  %v2594_v55 = vsel %vm2005_vm3, %v2570_v34, 0.0  ;;  %v2939_v27 = vmul.f32 %v3287_v14, %v6050_v11  ;;  %v6056_v11 = vld [vmem:[#allocation80_spill] sm:$0xff] }
 0x5f7   :  { %v2250_v4 = vadd.s32 %v2249_v57, %v2247_v54  ;;  %v2963_v18 = vsel %vm2950_vm1, %v2938_v21, 0.0  ;;  %v2573_v33 = vmul.f32 %v6005_v62, %v3273_v51  ;;  %vm2733_vm15 = vmand %vm2669_vm13, %vm2685_vm14  ;;  %v2308_v32 = vcvt.f32.s32 %v5437_v24  ;;  %v6051_v54 = vld [vmem:[#allocation79_spill] sm:$0xff] }
 0x5f8   :  { %2964 = vadd.xlane.f32.xlu0 %v2963_v18  ;;  %v2216_v9 = vpop.xlane.xlu1 %2215  ;;  %v3289_v39 = vsel %vm2733_vm15, 1.0, %v6043_v49  ;;  %v2234_v13 = vshll.u32 %v2233_v47, 16  ;;  %v2278_v18 = vcvt.f32.s32 %v5446_v5  ;;  %v2323_v10 = vcvt.f32.s32 %v5452_v20 }
 0x5f9   :  { %v2217_v44 = vcvt.f32.s32 %v2216_v9  ;;  %v2603_v62 = vsel %vm2005_vm3, %v2573_v33, 0.0  ;;  %vm2336_vm4 = vcmp.eq.s32.totalorder %v4686_v53, %v2250_v4  ;;  %vm2672_vm5 = vcmp.eq.s32.totalorder %v6042_v29, %v2250_v4 }
 0x5fa   :  { %2595 = vadd.xlane.f32.xlu1 %v2594_v55  ;;  %v3276_v30 = vsel %vm2336_vm4, 1.0, %v6043_v49  ;;  %vm2688_vm6 = vcmp.ge.s32.totalorder %v2250_v4, 1  ;;  %v2941_v57 = vmul.f32 %v3289_v39, %v6048_v61  ;;  %v2309_v9 = vshll.u32 %v2308_v32, 16 }
 0x5fb   :  { %v2220_v37 = vadd.s32 %v2219_v58, %v2217_v44  ;;  %vm2736_vm7 = vmand %vm2672_vm5, %vm2688_vm6  ;;  %v2576_v17 = vmul.f32 %v6049_v42, %v3276_v30  ;;  %v2966_v58 = vsel %vm2950_vm1, %v2939_v27, 0.0  ;;  %v6054_v44 = vld [vmem:[#allocation42_spill] sm:$0xff]  ;;  %v2279_v20 = vshll.u32 %v2278_v18, 16 }
 0x5fc   :  { %2604 = vadd.xlane.f32.xlu0 %v2603_v62  ;;  %v2261_v0 = vpop.xlane.xlu1 %2260  ;;  %v3292_v56 = vsel %vm2736_vm7, 1.0, %v6043_v49  ;;  %v2972_v23 = vsel %vm2950_vm1, %v2941_v57, 0.0  ;;  %v6055_v57 = vld [vmem:[#allocation81_spill] sm:$0xff]  ;;  %v2324_v47 = vshll.u32 %v2323_v10, 16  ;;  %v6059_v10 = vld [vmem:[#allocation59_spill] sm:$0xff] }
 0x5fd   :  { %v2262_v12 = vcvt.f32.s32 %v2261_v0  ;;  %vm2334_vm8 = vcmp.eq.s32.totalorder %v4686_v53, %v2220_v37  ;;  %vm2670_vm9 = vcmp.eq.s32.totalorder %v6042_v29, %v2220_v37  ;;  %vm2686_vm10 = vcmp.ge.s32.totalorder %v2220_v37, 1 }
 0x5fe   :  { %2598 = vadd.xlane.f32.xlu1 %v2597_v8  ;;  %v2612_v34 = vsel %vm2005_vm3, %v2576_v17, 0.0  ;;  %v2944_v36 = vmul.f32 %v3292_v56, %v6051_v54  ;;  %v3274_v51 = vsel %vm2334_vm8, 1.0, %v6043_v49  ;;  %vm5635_vm14 = vmand %vm2670_vm9, %vm2686_vm10  ;;  %v2293_v0 = vcvt.f32.s32 %v5457_v3 }
 0x5ff   :  { %v2265_v52 = vadd.s32 %v2264_v26, %v2262_v12  ;;  %v2574_v55 = vmul.f32 %v3274_v51, %v6054_v44  ;;  %v6057_v51 = vld [vmem:[#allocation57_spill] sm:$0xff] }
 0x600   :  { %2973 = vadd.xlane.f32.xlu0 %v2972_v23  ;;  %v2231_v16 = vpop.xlane.xlu0 %2230  ;;  %v2981_v37 = vsel %vm2950_vm1, %v2944_v36, 0.0 }
 0x601   :  { %v2232_v21 = vcvt.f32.s32 %v2231_v16  ;;  %vm2337_vm11 = vcmp.eq.s32.totalorder %v4686_v53, %v2265_v52  ;;  %vm2673_vm12 = vcmp.eq.s32.totalorder %v6042_v29, %v2265_v52  ;;  %vm2689_vm13 = vcmp.ge.s32.totalorder %v2265_v52, 1 }
 0x602   :  { %2613 = vadd.xlane.f32.xlu1 %v2612_v34  ;;  %v3277_v4 = vsel %vm2337_vm11, 1.0, %v6043_v49  ;;  %vm2737_vm15 = vmand %vm2673_vm12, %vm2689_vm13  ;;  %v2606_v26 = vsel %vm2005_vm3, %v2574_v55, 0.0  ;;  %v2294_v16 = vshll.u32 %v2293_v0, 16 }
 0x603   :  { %v2235_v33 = vadd.s32 %v2234_v13, %v2232_v21  ;;  %v2577_v40 = vmul.f32 %v6011_v6, %v3277_v4  ;;  %v3293_v62 = vsel %vm2737_vm15, 1.0, %v6043_v49  ;;  %v3290_v6 = vsel %vm5635_vm14, 1.0, %v6043_v49 }
 0x604   :  { %2967 = vadd.xlane.f32.xlu0 %v2966_v58  ;;  %v2306_v39 = vpop.xlane.xlu0 %2305  ;;  %v2945_v14 = vmul.f32 %v3293_v62, %v6055_v57  ;;  %v2942_v27 = vmul.f32 %v3290_v6, %v6056_v11 }
 0x605   :  { %v2307_v30 = vcvt.f32.s32 %v2306_v39  ;;  %v2615_v5 = vsel %vm2005_vm3, %v2577_v40, 0.0  ;;  %vm2335_vm0 = vcmp.eq.s32.totalorder %v4686_v53, %v2235_v33  ;;  %vm2671_vm4 = vcmp.eq.s32.totalorder %v6042_v29, %v2235_v33 }
 0x606   :  { %2982 = vadd.xlane.f32.xlu1 %v2981_v37  ;;  %vm2687_vm5 = vcmp.ge.s32.totalorder %v2235_v33, 1  ;;  %v3275_v12 = vsel %vm2335_vm0, 1.0, %v6043_v49  ;;  %v2984_v32 = vsel %vm2950_vm1, %v2945_v14, 0.0  ;;  %v2975_v21 = vsel %vm2950_vm1, %v2942_v27, 0.0  ;;  %v6058_v33 = vld [vmem:[#allocation83_spill] sm:$0xff] }
 0x607   :  { %v2310_v61 = vadd.s32 %v2309_v9, %v2307_v30  ;;  %vm2735_vm7 = vmand %vm2671_vm4, %vm2687_vm5  ;;  %v2575_v13 = vmul.f32 %v3275_v12, %v5021_v60 }
 0x608   :  { %2616 = vadd.xlane.f32.xlu0 %v2615_v5  ;;  %v2276_v42 = vpop.xlane.xlu0 %2275  ;;  %v2321_v17 = vpop.xlane.xlu1 %2320  ;;  %v3291_v54 = vsel %vm2735_vm7, 1.0, %v6043_v49 }
 0x609   :  { %v2277_v8 = vcvt.f32.s32 %v2276_v42  ;;  %v2322_v56 = vcvt.f32.s32 %v2321_v17  ;;  %vm2340_vm6 = vcmp.eq.s32.totalorder %v4686_v53, %v2310_v61  ;;  %v2609_v18 = vsel %vm2005_vm3, %v2575_v13, 0.0 }
 0x60a   :  { %2607 = vadd.xlane.f32.xlu1 %v2606_v26  ;;  %v3280_v3 = vsel %vm2340_vm6, 1.0, %v6043_v49  ;;  %v2943_v58 = vmul.f32 %v3291_v54, %v6058_v33  ;;  %vm2676_vm13 = vcmp.eq.s32.totalorder %v6042_v29, %v2310_v61  ;;  %vm2692_vm14 = vcmp.ge.s32.totalorder %v2310_v61, 1 }
 0x60b   :  { %v2280_v52 = vadd.s32 %v2279_v20, %v2277_v8  ;;  %v2325_v23 = vadd.s32 %v2324_v47, %v2322_v56  ;;  %v2580_v4 = vmul.f32 %v6057_v51, %v3280_v3  ;;  %vm2740_vm4 = vmand %vm2676_vm13, %vm2692_vm14  ;;  %v6060_v20 = vld [vmem:[#allocation67_spill] sm:$0xff]  ;;  %v3001_v51 = vadd.f32 %v5506_v1, %v6063_v43 }
 0x60c   :  { %2985 = vadd.xlane.f32.xlu0 %v2984_v32  ;;  %v2291_v34 = vpop.xlane.xlu1 %2290  ;;  %v2978_v55 = vsel %vm2950_vm1, %v2943_v58, 0.0  ;;  %v5703_v8 = vpop.xlane.xlu0 %2516  ;;  %v6070_v43 = vld [vmem:[#allocation23_spill] sm:$0xff] }
 0x60d   :  { %v2292_v36 = vcvt.f32.s32 %v2291_v34  ;;  %vm2338_vm8 = vcmp.eq.s32.totalorder %v4686_v53, %v2280_v52  ;;  %vm2341_vm9 = vcmp.eq.s32.totalorder %v4686_v53, %v2325_v23  ;;  %vm2674_vm10 = vcmp.eq.s32.totalorder %v6042_v29, %v2280_v52 }
 0x60e   :  { %2976 = vadd.xlane.f32.xlu1 %v2975_v21  ;;  %v3278_v24 = vsel %vm2338_vm8, 1.0, %v6043_v49  ;;  %vm2690_vm11 = vcmp.ge.s32.totalorder %v2280_v52, 1  ;;  %v3281_v40 = vsel %vm2341_vm9, 1.0, %v6043_v49  ;;  %v2624_v9 = vsel %vm2005_vm3, %v2580_v4, 0.0  ;;  %v3895_v52 = vpop.eup %3894 }
 0x60f   :  { %v2295_v60 = vadd.s32 %v2294_v16, %v2292_v36  ;;  %vm2738_vm12 = vmand %vm2674_vm10, %vm2690_vm11  ;;  %v2578_v39 = vmul.f32 %v3278_v24, %v6059_v10  ;;  %v2581_v62 = vmul.f32 %v5094_v41, %v3281_v40  ;;  %vm2677_vm6 = vcmp.eq.s32.totalorder %v6042_v29, %v2325_v23  ;;  %v3897_v13 = vpop.eup %3896  ;;  %v6065_v40 = vld [vmem:[#allocation43_spill] sm:$0xff] }
 0x610   :  { %2610 = vadd.xlane.f32.xlu0 %v2609_v18  ;;  %v3294_v44 = vsel %vm2738_vm12, 1.0, %v6043_v49  ;;  %vm2693_vm7 = vcmp.ge.s32.totalorder %v2325_v23, 1  ;;  %v5707_v56 = vpop.xlane.xlu0 %1979  ;;  %v2523_v28 = vmul.f32 0.6931472, %v3895_v52  ;;  %v2519_v54 = vmul.f32 0.6931472, %v3897_v13  ;;  %v3899_v21 = vpop.eup %3898 }
 0x611   :  { %vm2339_vm15 = vcmp.eq.s32.totalorder %v4686_v53, %v2295_v60  ;;  %vm2675_vm0 = vcmp.eq.s32.totalorder %v6042_v29, %v2295_v60  ;;  %vm2691_vm5 = vcmp.ge.s32.totalorder %v2295_v60, 1  ;;  %v2618_v37 = vsel %vm2005_vm3, %v2578_v39, 0.0  ;;  %vm2741_vm9 = vmand %vm2677_vm6, %vm2693_vm7  ;;  %v6064_v18 = vld [vmem:[#allocation61_spill] sm:$0xff] }
 0x612   :  { %2625 = vadd.xlane.f32.xlu1 %v2624_v9  ;;  %v3279_v30 = vsel %vm2339_vm15, 1.0, %v6043_v49  ;;  %v2946_v5 = vmul.f32 %v3294_v44, %v5374_v63  ;;  %vm2739_vm8 = vmand %vm2675_vm0, %vm2691_vm5  ;;  %v3296_v53 = vsel %vm2740_vm4, 1.0, %v6043_v49  ;;  %v2627_v6 = vsel %vm2005_vm3, %v2581_v62, 0.0  ;;  %v3901_v44 = vpop.eup %3900 }
 0x613   :  { %v2579_v41 = vmul.f32 %v3279_v30, %v6060_v20  ;;  %v3295_v61 = vsel %vm2739_vm8, 1.0, %v6043_v49  ;;  %v2948_v29 = vmul.f32 %v3296_v53, %v5371_v48  ;;  %v3297_v14 = vsel %vm2741_vm9, 1.0, %v6043_v49  ;;  %v6061_v48 = vld [vmem:[#allocation72_spill] sm:$0xff]  ;;  %v5701_v49 = vpop.xlane.xlu1 %1973 }
 0x614   :  { %2979 = vadd.xlane.f32.xlu0 %v2978_v55  ;;  %v2987_v57 = vsel %vm2950_vm1, %v2946_v5, 0.0  ;;  %v2947_v47 = vmul.f32 %v3295_v61, %v5378_v38  ;;  %v2949_v42 = vmul.f32 %v3297_v14, %v5500_v19  ;;  %v2002_v12 = vsel %vm1956_vm2, %v6061_v48, 0.0  ;;  %v5712_v11 = vpop.xlane.xlu0 %1985  ;;  %v6068_v14 = vld [vmem:[#allocation73_spill] sm:$0xff] }
 0x615   :  { %v2621_v63 = vsel %vm2005_vm3, %v2579_v41, 0.0  ;;  %v2993_v0 = vsel %vm2950_vm1, %v2948_v29, 0.0  ;;  %v2552_v36 = vadd.f32 %v2523_v28, %v6062_v46  ;;  %v2550_v33 = vadd.f32 %v2519_v54, %v6064_v18  ;;  %v6067_v41 = vld [vmem:[#allocation38_spill] sm:$0xff]  ;;  %v6072_v18 = vld [vmem:[#allocation49_spill] sm:$0xff] }
 0x616   :  { %2619 = vadd.xlane.f32.xlu1 %v2618_v37  ;;  %v2990_v17 = vsel %vm2950_vm1, %v2947_v47, 0.0  ;;  %v2996_v26 = vsel %vm2950_vm1, %v2949_v42, 0.0  ;;  %v2525_v58 = vmul.f32 0.6931472, %v3899_v21  ;;  %v2999_v9 = vadd.f32 %v5502_v59, %v6065_v40  ;;  %v6066_v37 = vld [vmem:[#allocation63_spill] sm:$0xff]  ;;  %v3903_v47 = vpop.eup %3902  ;;  %v6069_v42 = vld [vmem:[#allocation45_spill] sm:$0xff] }
 0x617   :  { %v5705_v38 = vpop.xlane.xlu1 %1976  ;;  %v3017_v10 = vmul.f32 0.0026041667, %v3001_v51  ;;  %v3002_v59 = vadd.f32 %v5510_v2, %v6067_v41  ;;  %v3905_v52 = vpop.eup %3904  ;;  %v2527_v28 = vmul.f32 0.6931472, %v3903_v47  ;;  %3914 = vlog2.f32 %v6070_v43 }
 0x618   :  { %2628 = vadd.xlane.f32.xlu0 %v2627_v6  ;;  %v5718_v3 = vpop.xlane.xlu0 %1991  ;;  %v2553_v5 = vadd.f32 %v2525_v58, %v6066_v37  ;;  %v3015_v53 = vmul.f32 0.0026041667, %v2999_v9  ;;  %v2521_v6 = vmul.f32 0.6931472, %v3901_v44  ;;  %v2531_v21 = vmul.f32 0.6931472, %v3905_v52 }
 0x619   :  { %vm3079_vm3 = vcmask 7168   ;;  %v6080_v52 = vld [vmem:[#allocation44_spill] sm:$0xff] }
 0x61a   :  { %2988 = vadd.xlane.f32.xlu1 %v2987_v57 }
 0x61b   :  { %v5710_v19 = vpop.xlane.xlu1 %1982 }
 0x61c   :  { %2622 = vadd.xlane.f32.xlu0 %v2621_v63  ;;  %v5723_v32 = vpop.xlane.xlu0 %1997  ;;  %v2551_v63 = vadd.f32 %v2521_v6, %v6068_v14 }
 0x61e   :  { %2994 = vadd.xlane.f32.xlu1 %v2993_v0 }
 0x61f   :  { %v5715_v27 = vpop.xlane.xlu1 %1988 }
 0x620   :  { %2991 = vadd.xlane.f32.xlu0 %v2990_v17  ;;  %v3000_v17 = vadd.f32 %v5492_v25, %v6069_v42 }
 0x622   :  { %2997 = vadd.xlane.f32.xlu1 %v2996_v26  ;;  %v3018_v26 = vmul.f32 0.0026041667, %v3002_v59  ;;  %v3016_v46 = vmul.f32 0.0026041667, %v3000_v17  ;;  %v6078_v17 = vld [vmem:[#allocation75_spill] sm:$0xff] }
 0x623   :  { %v5720_v23 = vpop.xlane.xlu1 %1994 }
 0x624   :  { %2003 = vadd.xlane.f32.xlu0 %v2002_v12 }
 0x627   :  { %v5725_v16 = vpop.xlane.xlu1 %2000 }
 0x66b   :  { %v2590_v34 = vpop.xlane.xlu0 %2589 }
 0x66c   :  { %v2632_v4 = vsub.f32 %v2552_v36, %v2590_v34  ;;  %v3907_v34 = vpop.eup %3906 }
 0x66d   :  { %v2533_v51 = vmul.f32 0.6931472, %v3907_v34 }
 0x66f   :  { %v2959_v24 = vpop.xlane.xlu0 %2958  ;;  %v2584_v60 = vpop.xlane.xlu1 %2583 }
 0x670   :  { %v3033_v7 = vadd.f32 %v2959_v24, %v2632_v4  ;;  %v2630_v22 = vsub.f32 %v2550_v33, %v2584_v60  ;;  %v6071_v24 = vld [vmem:[#allocation64_spill] sm:$0xff]  ;;  %v6073_v33 = vld [vmem:[#allocation7_spill] sm:$0xff] }
 0x671   :  { %v2554_v60 = vadd.f32 %v2527_v28, %v6071_v24  ;;  %v3003_v45 = vadd.f32 %v6073_v33, %v6072_v18 }
 0x672   :  { %v3049_v39 = vmul.f32 0.0078125, %v3033_v7  ;;  %v3909_v7 = vpop.eup %3908 }
 0x673   :  { %v2953_v55 = vpop.xlane.xlu1 %2952  ;;  %v3019_v6 = vmul.f32 0.0026041667, %v3003_v45 }
 0x674   :  { %v3065_v1 = vadd.f32 %v3049_v39, %v3017_v10  ;;  %v3031_v62 = vadd.f32 %v2953_v55, %v2630_v22  ;;  %v6074_v10 = vld [vmem:[#allocation25_spill] sm:$0xff]  ;;  %v6075_v39 = vld [vmem:[#allocation62_spill] sm:$0xff] }
 0x675   :  { %v2962_v30 = vpop.xlane.xlu0 %2961  ;;  %3916 = vlog2.f32 %v6074_v10  ;;  %v2556_v22 = vadd.f32 %v2531_v21, %v6075_v39  ;;  %v6084_v39 = vld [vmem:[#allocation77_spill] sm:$0xff] }
 0x676   :  { %v3047_v15 = vmul.f32 0.0078125, %v3031_v62  ;;  %v2529_v62 = vmul.f32 0.6931472, %v3909_v7  ;;  %v6082_v7 = vld [vmem:[#allocation24_spill] sm:$0xff] }
 0x677   :  { %v2593_v20 = vpop.xlane.xlu1 %2592 }
 0x678   :  { %v3063_v61 = vadd.f32 %v3047_v15, %v3015_v53  ;;  %v2633_v31 = vsub.f32 %v2553_v5, %v2593_v20  ;;  %v6076_v5 = vld [vmem:[#allocation74_spill] sm:$0xff]  ;;  %v6077_v15 = vld [vmem:[#allocation41_spill] sm:$0xff] }
 0x679   :  { %v2587_v57 = vpop.xlane.xlu0 %2586  ;;  %v2557_v53 = vadd.f32 %v2533_v51, %v6076_v5  ;;  %v3006_v20 = vadd.f32 %v5707_v56, %v6077_v15  ;;  %v3004_v56 = vadd.f32 %v5701_v49, %v6080_v52  ;;  %v6086_v5 = vld [vmem:[#allocation66_spill] sm:$0xff]  ;;  %v6087_v15 = vld [vmem:[#allocation65_spill] sm:$0xff] }
 0x67a   :  { %v3034_v29 = vadd.f32 %v2962_v30, %v2633_v31  ;;  %v2631_v12 = vsub.f32 %v2551_v63, %v2587_v57  ;;  %v3080_v40 = vsel %vm3079_vm3, %v3063_v61, 0.0  ;;  %v3083_v30 = vsel %vm3079_vm3, %v3065_v1, 0.0 }
 0x67b   :  { %v2602_v0 = vpop.xlane.xlu1 %2601  ;;  %v2555_v1 = vadd.f32 %v2529_v62, %v6078_v17  ;;  %v3020_v18 = vmul.f32 0.0026041667, %v3004_v56 }
 0x67c   :  { %v3050_v48 = vmul.f32 0.0078125, %v3034_v29  ;;  %v2636_v31 = vsub.f32 %v2556_v22, %v2602_v0 }
 0x67d   :  { %v2956_v35 = vpop.xlane.xlu0 %2955 }
 0x67e   :  { %v3066_v2 = vadd.f32 %v3050_v48, %v3018_v26  ;;  %v3032_v13 = vadd.f32 %v2956_v35, %v2631_v12  ;;  %v3911_v48 = vpop.eup %3910  ;;  %v6079_v12 = vld [vmem:[#allocation36_spill] sm:$0xff]  ;;  %v3022_v35 = vmul.f32 0.0026041667, %v3006_v20 }
 0x67f   :  { %v2971_v54 = vpop.xlane.xlu1 %2970  ;;  %3918 = vlog2.f32 %v6079_v12  ;;  %v6089_v12 = vld [vmem:[#allocation78_spill] sm:$0xff] }
 0x680   :  { %v3048_v36 = vmul.f32 0.0078125, %v3032_v13  ;;  %v3085_v61 = vsel %vm3079_vm3, %v3066_v2, 0.0  ;;  %v3037_v47 = vadd.f32 %v2971_v54, %v2636_v31  ;;  %v3913_v13 = vpop.eup %3912  ;;  %v6081_v2 = vld [vmem:[#allocation47_spill] sm:$0xff]  ;;  %3920 = vlog2.f32 %v6082_v7 }
 0x681   :  { %v2965_v25 = vpop.xlane.xlu0 %2964  ;;  %v3005_v0 = vadd.f32 %v5705_v38, %v6081_v2  ;;  %v3915_v43 = vpop.eup %3914  ;;  %v6083_v38 = vld [vmem:[#allocation9_spill] sm:$0xff] }
 0x682   :  { %v3064_v4 = vadd.f32 %v3048_v36, %v3016_v46  ;;  %v3053_v51 = vmul.f32 0.0078125, %v3037_v47  ;;  %3922 = vlog2.f32 %v6083_v38 }
 0x683   :  { %v2596_v58 = vpop.xlane.xlu1 %2595  ;;  %v3021_v33 = vmul.f32 0.0026041667, %v3005_v0  ;;  %3924 = vlog2.f32 %v5703_v8 }
 0x684   :  { %v3081_v50 = vsel %vm3079_vm3, %v3064_v4, 0.0  ;;  %v2634_v9 = vsub.f32 %v2554_v60, %v2596_v58  ;;  %v2535_v60 = vmul.f32 0.6931472, %v3913_v13  ;;  %v2539_v58 = vmul.f32 0.6931472, %v3915_v43 }
 0x685   :  { %v3082_v44 = vadd.f32 %v3081_v50, %v3080_v40  ;;  %v2605_v55 = vpop.xlane.xlu0 %2604  ;;  %v3917_v50 = vpop.eup %3916 }
 0x686   :  { %v3035_v37 = vadd.f32 %v2965_v25, %v2634_v9  ;;  %v2637_v29 = vsub.f32 %v2557_v53, %v2605_v55  ;;  %v2541_v25 = vmul.f32 0.6931472, %v3911_v48  ;;  %v3069_v9 = vadd.f32 %v3053_v51, %v3021_v33 }
 0x687   :  { %v3084_v41 = vadd.f32 %v3083_v30, %v3082_v44  ;;  %v2599_v59 = vpop.xlane.xlu1 %2598  ;;  %v6085_v44 = vld [vmem:[#allocation46_spill] sm:$0xff]  ;;  %v2558_v53 = vadd.f32 %v2535_v60, %v6086_v5  ;;  %v2560_v20 = vadd.f32 %v2539_v58, %v6087_v15 }
 0x688   :  { %v3051_v57 = vmul.f32 0.0078125, %v3035_v37  ;;  %v2635_v46 = vsub.f32 %v2555_v1, %v2599_v59  ;;  %v2561_v22 = vadd.f32 %v2541_v25, %v6084_v39  ;;  %v3010_v55 = vadd.f32 %v5718_v3, %v6085_v44 }
 0x689   :  { %v2974_v14 = vpop.xlane.xlu0 %2973  ;;  %v3086_v63 = vadd.f32 %v3085_v61, %v3084_v41  ;;  %v6088_v61 = vld [vmem:[#allocation53_spill] sm:$0xff] }
 0x68a   :  { %v3067_v42 = vadd.f32 %v3051_v57, %v3019_v6  ;;  %v3038_v26 = vadd.f32 %v2974_v14, %v2637_v29  ;;  %v2537_v6 = vmul.f32 0.6931472, %v3917_v50  ;;  %v3007_v31 = vadd.f32 %v5710_v19, %v6088_v61  ;;  %v6092_v50 = vld [vmem:[#allocation71_spill] sm:$0xff] }
 0x68b   :  { %v2614_v28 = vpop.xlane.xlu1 %2613  ;;  %v3091_v57 = vsel %vm3079_vm3, %v3069_v9, 0.0  ;;  %v3026_v14 = vmul.f32 0.0026041667, %v3010_v55 }
 0x68c   :  { %v3087_v34 = vsel %vm3079_vm3, %v3067_v42, 0.0  ;;  %v3054_v54 = vmul.f32 0.0078125, %v3038_v26  ;;  %v3919_v47 = vpop.eup %3918  ;;  %v2640_v17 = vsub.f32 %v2560_v20, %v2614_v28  ;;  %v3023_v56 = vmul.f32 0.0026041667, %v3007_v31  ;;  %v6095_v20 = vld [vmem:[#allocation84_spill] sm:$0xff] }
 0x68d   :  { %v2968_v36 = vpop.xlane.xlu0 %2967  ;;  %v3088_v21 = vadd.f32 %v3087_v34, %v3086_v63  ;;  %v2543_v0 = vmul.f32 0.6931472, %v3919_v47  ;;  %v6098_v47 = vld [vmem:[#allocation82_spill] sm:$0xff] }
 0x68e   :  { %v3070_v4 = vadd.f32 %v3054_v54, %v3022_v35  ;;  %v3036_v24 = vadd.f32 %v2968_v36, %v2635_v46  ;;  %v2559_v35 = vadd.f32 %v2537_v6, %v6089_v12  ;;  %v3921_v46 = vpop.eup %3920  ;;  %v6090_v54 = vld [vmem:[#allocation48_spill] sm:$0xff] }
 0x68f   :  { %v2983_v49 = vpop.xlane.xlu1 %2982  ;;  %v3008_v36 = vadd.f32 %v5712_v11, %v6090_v54  ;;  %v2562_v11 = vadd.f32 %v2543_v0, %v6092_v50 }
 0x690   :  { %v3052_v45 = vmul.f32 0.0078125, %v3036_v24  ;;  %v3093_v42 = vsel %vm3079_vm3, %v3070_v4, 0.0  ;;  %v3041_v13 = vadd.f32 %v2983_v49, %v2640_v17  ;;  %v3923_v4 = vpop.eup %3922  ;;  %v2547_v49 = vmul.f32 0.6931472, %v3921_v46 }
 0x691   :  { %v2617_v40 = vpop.xlane.xlu0 %2616  ;;  %v3024_v58 = vmul.f32 0.0026041667, %v3008_v36  ;;  %v2545_v9 = vmul.f32 0.6931472, %v3923_v4 }
 0x692   :  { %v3068_v10 = vadd.f32 %v3052_v45, %v3020_v18  ;;  %v2641_v37 = vsub.f32 %v2561_v22, %v2617_v40  ;;  %v3057_v24 = vmul.f32 0.0078125, %v3041_v13  ;;  %v3925_v45 = vpop.eup %3924 }
 0x693   :  { %v2608_v62 = vpop.xlane.xlu1 %2607 }
 0x694   :  { %v3089_v30 = vsel %vm3079_vm3, %v3068_v10, 0.0  ;;  %v2638_v8 = vsub.f32 %v2558_v53, %v2608_v62  ;;  %v2549_v62 = vmul.f32 0.6931472, %v3925_v45 }
 0x695   :  { %v3090_v41 = vadd.f32 %v3089_v30, %v3088_v21  ;;  %v2986_v59 = vpop.xlane.xlu0 %2985  ;;  %v6091_v21 = vld [vmem:[#allocation51_spill] sm:$0xff] }
 0x696   :  { %v3042_v29 = vadd.f32 %v2986_v59, %v2641_v37  ;;  %v3009_v43 = vadd.f32 %v5715_v27, %v6091_v21  ;;  %v6093_v27 = vld [vmem:[#allocation56_spill] sm:$0xff]  ;;  %v6094_v37 = vld [vmem:[#allocation70_spill] sm:$0xff] }
 0x697   :  { %v3092_v3 = vadd.f32 %v3091_v57, %v3090_v41  ;;  %v2977_v63 = vpop.xlane.xlu1 %2976  ;;  %v3011_v39 = vadd.f32 %v5720_v23, %v6093_v27  ;;  %v2564_v5 = vadd.f32 %v2547_v49, %v6094_v37  ;;  %v2563_v41 = vadd.f32 %v2545_v9, %v6095_v20  ;;  %v6096_v23 = vld [vmem:[#allocation52_spill] sm:$0xff] }
 0x698   :  { %v3058_v1 = vmul.f32 0.0078125, %v3042_v29  ;;  %v3039_v26 = vadd.f32 %v2977_v63, %v2638_v8  ;;  %v3025_v38 = vmul.f32 0.0026041667, %v3009_v43  ;;  %v3012_v29 = vadd.f32 %v5723_v32, %v6096_v23 }
 0x699   :  { %v3094_v48 = vadd.f32 %v3093_v42, %v3092_v3  ;;  %v2611_v52 = vpop.xlane.xlu0 %2610  ;;  %v3027_v61 = vmul.f32 0.0026041667, %v3011_v39  ;;  %v2565_v42 = vadd.f32 %v2549_v62, %v6098_v47 }
 0x69a   :  { %v3074_v19 = vadd.f32 %v3058_v1, %v3026_v14  ;;  %v3055_v2 = vmul.f32 0.0078125, %v3039_v26  ;;  %v2639_v25 = vsub.f32 %v2559_v35, %v2611_v52  ;;  %v3073_v22 = vadd.f32 %v3057_v24, %v3025_v38  ;;  %v6097_v14 = vld [vmem:[#allocation54_spill] sm:$0xff] }
 0x69b   :  { %v2626_v34 = vpop.xlane.xlu1 %2625  ;;  %v3013_v3 = vadd.f32 %v5725_v16, %v6097_v14  ;;  %v3028_v0 = vmul.f32 0.0026041667, %v3012_v29 }
 0x69c   :  { %v3071_v28 = vadd.f32 %v3055_v2, %v3023_v56  ;;  %v3099_v31 = vsel %vm3079_vm3, %v3073_v22, 0.0  ;;  %v2644_v57 = vsub.f32 %v2564_v5, %v2626_v34  ;;  %v3101_v1 = vsel %vm3079_vm3, %v3074_v19, 0.0  ;;  %v6099_v19 = vld [vmem:[#allocation50_spill] sm:$0xff] }
 0x69d   :  { %v2980_v51 = vpop.xlane.xlu0 %2979  ;;  %v3029_v32 = vmul.f32 0.0026041667, %v3013_v3 }
 0x69e   :  { %v3095_v60 = vsel %vm3079_vm3, %v3071_v28, 0.0  ;;  %v3040_v7 = vadd.f32 %v2980_v51, %v2639_v25 }
 0x69f   :  { %v3096_v18 = vadd.f32 %v3095_v60, %v3094_v48  ;;  %v2620_v33 = vpop.xlane.xlu1 %2619 }
 0x6a0   :  { %v3056_v40 = vmul.f32 0.0078125, %v3040_v7  ;;  %v2642_v55 = vsub.f32 %v2562_v11, %v2620_v33 }
 0x6a1   :  { %v2629_v10 = vpop.xlane.xlu0 %2628 }
 0x6a2   :  { %v3072_v44 = vadd.f32 %v3056_v40, %v3024_v58  ;;  %v2645_v56 = vsub.f32 %v2565_v42, %v2629_v10 }
 0x6a3   :  { %v2989_v30 = vpop.xlane.xlu1 %2988 }
 0x6a4   :  { %v3097_v53 = vsel %vm3079_vm3, %v3072_v44, 0.0  ;;  %v3043_v6 = vadd.f32 %v2989_v30, %v2642_v55 }
 0x6a5   :  { %v3098_v15 = vadd.f32 %v3097_v53, %v3096_v18  ;;  %v2623_v59 = vpop.xlane.xlu0 %2622 }
 0x6a6   :  { %v3059_v8 = vmul.f32 0.0078125, %v3043_v6  ;;  %v2643_v48 = vsub.f32 %v2563_v41, %v2623_v59 }
 0x6a7   :  { %v3100_v63 = vadd.f32 %v3099_v31, %v3098_v15  ;;  %v2995_v17 = vpop.xlane.xlu1 %2994 }
 0x6a8   :  { %v3075_v26 = vadd.f32 %v3059_v8, %v3027_v61  ;;  %v3045_v12 = vadd.f32 %v2995_v17, %v2644_v57 }
 0x6a9   :  { %v3102_v35 = vadd.f32 %v3101_v1, %v3100_v63  ;;  %v2992_v52 = vpop.xlane.xlu0 %2991 }
 0x6aa   :  { %v3061_v13 = vmul.f32 0.0078125, %v3045_v12  ;;  %v3044_v2 = vadd.f32 %v2992_v52, %v2643_v48  ;;  %v3103_v46 = vsel %vm3079_vm3, %v3075_v26, 0.0 }
 0x6ab   :  { %v2998_v34 = vpop.xlane.xlu1 %2997  ;;  %v3104_v51 = vadd.f32 %v3103_v46, %v3102_v35 }
 0x6ac   :  { %v3060_v16 = vmul.f32 0.0078125, %v3044_v2  ;;  %v3046_v54 = vadd.f32 %v2998_v34, %v2645_v56  ;;  %v3077_v21 = vadd.f32 %v3061_v13, %v3029_v32 }
 0x6ad   :  { %v2004_v36 = vpop.xlane.xlu0 %2003 }
 0x6ae   :  { %v3076_v43 = vadd.f32 %v3060_v16, %v3028_v0  ;;  %v3062_v28 = vmul.f32 0.0078125, %v3046_v54  ;;  %v3014_v25 = vadd.f32 %v2004_v36, %v6099_v19  ;;  %v3107_v7 = vsel %vm3079_vm3, %v3077_v21, 0.0 }
 0x6b0   :  { %v3105_v4 = vsel %vm3079_vm3, %v3076_v43, 0.0  ;;  %v3030_v24 = vmul.f32 0.0026041667, %v3014_v25 }
 0x6b1   :  { %v3106_v60 = vadd.f32 %v3105_v4, %v3104_v51 }
 0x6b2   :  { %v3078_v49 = vadd.f32 %v3062_v28, %v3030_v24 }
 0x6b3   :  { %v3108_v18 = vadd.f32 %v3107_v7, %v3106_v60 }
 0x6b4   :  { %v3109_v33 = vsel %vm3079_vm3, %v3078_v49, 0.0 }
 0x6b5   :  { %v3110_v45 = vadd.f32 %v3109_v33, %v3108_v18 }
 0x6b7   :  { %3111 = vadd.xlane.f32.xlu0 %v3110_v45 }
 0x740   :  { %v3112_v58 = vpop.xlane.xlu0 %3111 }
 0x741   :  { %v3113_v38 = vrot.slane %v3112_v58, 4 }
 0x743   :  { %v3114_v40 = vadd.f32 %v3113_v38, %v3112_v58 }
 0x745   :  { %v3115_v50 = vrot.slane %v3114_v40, 2 }
 0x747   :  { %v3116_v11 = vadd.f32 %v3115_v50, %v3114_v40 }
 0x749   :  { %v3117_v9 = vrot.slane %v3116_v11, 1 }
 0x74b   :  { %v3118_v10 = vadd.f32 %v3117_v9, %v3116_v11 }
 0x74d   :  { %3602 = vpush %v3118_v10 }
 0x77e   :  { %s3603_s24 = spop %3602 }
 0x77f   :  { %3121 = sst [smem:[#allocation2]] %s3603_s24 }
 0x780   :  { %3129 = dma.smem_to_hbm %s3942_s25, 16, %s5808_s3, [#allocation3]  }
 0x781   :  { %3934 = dma.done.wait [#allocation3], 16  }
 0x782   :  { %3935 = vsyncadd [#allocation3], 4294967280 }
 0x783   :  { %3133 = sfence }
 0x784   :  { %3134 = vsyncpa [#allocation3], 1 }

</bundles_post_ra>
